<compile_context>
chip_gen: v5e
topology: v5e:2x2
jax: 0.10.0
libtpu: 0.0.40
codegen_flags: <defaults>
</compile_context>

<pallas_src>
import functools

import jax
import jax.numpy as jnp
from jax import lax
from jax.experimental import pallas as pl
from jax.experimental.pallas import tpu as pltpu

# Geometry implied by the module: 44x44 spatial input, two 2x2 stride-1 convs,
# one 2x2/stride-2 max-pool, fc 100 -> 4.
H = W = 44
KER = 2
H1, W1 = H - KER + 1, W - KER + 1            # 43, 43  conv1 output
H2, W2 = H1 - KER + 1, W1 - KER + 1          # 42, 42  conv2 output
PH, PW = H2 // 2, W2 // 2                    # 21, 21  pooled
HID = 100                                    # fc1 hidden
HIDP = 128                                   # fc1 hidden padded to a full lane width
NCLASS = 4


# ---------------- the single fused Pallas kernel (one sample per grid step) ----------------

def _fused_kernel(x_ref, bd1_ref, b1_ref, bd2_ref, b2_ref, sel_ref, bigw_ref,
                  bf1_ref, wf2_ref, bf2_ref, o_ref, y1_s, y2_s, p_s, *, c2):
    # ---- conv1 (2x2, stride 1) + ReLU: kw folded into the weight -> 2 bf16 matmuls ----
    acc = jnp.dot(x_ref[0, 0:H1, :], bd1_ref[0], preferred_element_type=jnp.float32)
    acc = acc + jnp.dot(x_ref[0, 1:H, :], bd1_ref[1], preferred_element_type=jnp.float32)
    y1_s[...] = jnp.maximum(acc + b1_ref[...], 0.0).astype(jnp.bfloat16)   # (43, 43*c1)

    # ---- conv2 (2x2, stride 1): 2 bf16 matmuls, full-width row slices ----
    acc = jnp.dot(y1_s[0:H2, :], bd2_ref[0], preferred_element_type=jnp.float32)
    acc = acc + jnp.dot(y1_s[1:H1, :], bd2_ref[1], preferred_element_type=jnp.float32)
    y2_s[...] = acc + b2_ref[...]                                          # (42, 42*c2)

    # ---- 2x2/stride-2 max-pool: pair-max over h and over w.  The stride-2 column
    #      selection is folded into zero rows of bigw; the stride-2 row selection is
    #      a tiny selection matmul (exact 0/1 weights, avoids a strided sublane read).
    pooled = jnp.maximum(
        jnp.maximum(y2_s[0:H2 - 1, 0:(W2 - 1) * c2], y2_s[1:H2, 0:(W2 - 1) * c2]),
        jnp.maximum(y2_s[0:H2 - 1, c2:W2 * c2], y2_s[1:H2, c2:W2 * c2]),
    )                                                                      # (41, 41*c2)
    pooled_even = jnp.dot(sel_ref[...], pooled.astype(jnp.bfloat16),
                          preferred_element_type=jnp.float32)              # (21, 41*c2)

    # ---- fc1: one lane-dense bf16 matmul (f32 accumulate) against the
    #      block-expanded / flatten-permuted / 128-padded weight ----
    p_s[...] = jnp.dot(pooled_even.astype(jnp.bfloat16), bigw_ref[...],
                       preferred_element_type=jnp.float32)                 # (21, 21*128)
    # pick the diagonal 128-blocks and sum them with a balanced tree (log depth)
    terms = [p_s[i:i + 1, i * HIDP:(i + 1) * HIDP] for i in range(PH)]
    while len(terms) > 1:
        nxt = [terms[j] + terms[j + 1] for j in range(0, len(terms) - 1, 2)]
        if len(terms) % 2:
            nxt.append(terms[-1])
        terms = nxt
    hidden = jnp.maximum(terms[0] + bf1_ref[...], 0.0)                     # (1, 128)
    # TODO(synk): Dropout2d(0.25)/Dropout(0.5) are identity (inference mode).

    # ---- fc2 + log_softmax ----
    logits = jnp.dot(hidden, wf2_ref[...],
                     preferred_element_type=jnp.float32) + bf2_ref[...]    # (1, 4)
    s = logits - jnp.max(logits, axis=1, keepdims=True)
    lse = jnp.log(jnp.sum(jnp.exp(s), axis=1, keepdims=True))
    o_ref[0] = s - lse


# ---------------- wrapper ----------------

@jax.jit
def net_forward(x_nchw, prep):
    n, cin = x_nchw.shape[0], x_nchw.shape[1]
    c1 = prep["b1t"].shape[1] // W1
    c2 = prep["b2t"].shape[1] // W2
    # NCHW -> per-sample lane-dense (H, W*Cin) slab, stored bf16 (input-only transform).
    x_slab = jnp.transpose(x_nchw, (0, 2, 3, 1)).reshape(n, H, W * cin)
    x_slab = x_slab.astype(jnp.bfloat16)
    # TODO(synk): in a serving loop, cross-call prefetch of the prepared weights would
    # hide the remaining ~1.1 MB of weight DMA behind the previous step.
    out = pl.pallas_call(
        functools.partial(_fused_kernel, c2=c2),
        out_shape=jax.ShapeDtypeStruct((n, 1, NCLASS), jnp.float32),
        grid=(n,),
        in_specs=[
            pl.BlockSpec((1, H, W * cin), lambda i: (i, 0, 0)),      # per-sample input
            pl.BlockSpec(prep["bd1"].shape, lambda i: (0, 0, 0)),    # weights: resident
            pl.BlockSpec(prep["b1t"].shape, lambda i: (0, 0)),
            pl.BlockSpec(prep["bd2"].shape, lambda i: (0, 0, 0)),
            pl.BlockSpec(prep["b2t"].shape, lambda i: (0, 0)),
            pl.BlockSpec(prep["sel"].shape, lambda i: (0, 0)),
            pl.BlockSpec(prep["bigw"].shape, lambda i: (0, 0)),
            pl.BlockSpec(prep["bf1p"].shape, lambda i: (0, 0)),
            pl.BlockSpec(prep["wf2p"].shape, lambda i: (0, 0)),
            pl.BlockSpec(prep["bf2t"].shape, lambda i: (0, 0)),
        ],
        out_specs=pl.BlockSpec((1, 1, NCLASS), lambda i: (i, 0, 0)),
        scratch_shapes=[
            pltpu.VMEM((H1, W1 * c1), jnp.bfloat16),       # y1 slab (bf16 storage)
            pltpu.VMEM((H2, W2 * c2), jnp.float32),        # y2 slab
            pltpu.VMEM((PH, PH * HIDP), jnp.float32),      # fc1 block products
        ],
        compiler_params=pltpu.CompilerParams(dimension_semantics=("parallel",)),
    )(x_slab, prep["bd1"], prep["b1t"], prep["bd2"], prep["b2t"], prep["sel"],
      prep["bigw"], prep["bf1p"], prep["wf2p"], prep["bf2t"])
    return out.reshape(n, NCLASS)


# ---------------- parameters (PyTorch layout) + one-time weight import ----------------

def init_params(key, cin):
    c1, c2 = 2 * cin, 4 * cin
    final = PH * PW * c2
    ks = jax.random.split(key, 8)
    s = 0.05
    return dict(
        conv1_w=jax.random.normal(ks[0], (c1, cin, KER, KER), jnp.float32) * s,
        conv1_b=jax.random.normal(ks[1], (c1,), jnp.float32) * s,
        conv2_w=jax.random.normal(ks[2], (c2, c1, KER, KER), jnp.float32) * s,
        conv2_b=jax.random.normal(ks[3], (c2,), jnp.float32) * s,
        fc1_w=jax.random.normal(ks[4], (HID, final), jnp.float32) * s,
        fc1_b=jax.random.normal(ks[5], (HID,), jnp.float32) * s,
        fc2_w=jax.random.normal(ks[6], (NCLASS, HID), jnp.float32) * s,
        fc2_b=jax.random.normal(ks[7], (NCLASS,), jnp.float32) * s,
    )


def prepare_params(p):
    """One-time weight-import transform (runs outside the forward hot path)."""
    c2 = p["conv2_w"].shape[0]

    def folded_conv_weight(wt, win):
        # wt: (cout, cinn, 2, 2) torch OIHW layout.  Fold kw as off-diagonal blocks:
        # weight[kh][w_in*cinn+ci, w_out*cout+co] = wt[co, ci, kh, w_in-w_out].
        wout = win - KER + 1
        mats = []
        for kh in range(KER):
            m = jnp.zeros((win * wt.shape[1], wout * wt.shape[0]), wt.dtype)
            for kw in range(KER):
                m = m + jnp.kron(jnp.eye(win, wout, k=-kw, dtype=wt.dtype),
                                 wt[:, :, kh, kw].T)
            mats.append(m)
        return jnp.stack(mats).astype(jnp.bfloat16)       # (2, win*cinn, wout*cout)

    bd1 = folded_conv_weight(p["conv1_w"], W)              # (2, 44*cin, 43*c1)  bf16
    bd2 = folded_conv_weight(p["conv2_w"], W1)             # (2, 43*c1, 42*c2)   bf16
    b1t = jnp.tile(p["conv1_b"], W1)[None, :]               # (1, 43*c1)
    b2t = jnp.tile(p["conv2_b"], W2)[None, :]               # (1, 42*c2)

    # even-row selection matrix for the h-direction of the stride-2 pool
    sel = jnp.zeros((PH, W2 - 1), jnp.float32)
    sel = sel.at[jnp.arange(PH), 2 * jnp.arange(PH)].set(1.0).astype(jnp.bfloat16)

    # fc1 weight: fold (a) PyTorch NCHW flatten order, (b) the stride-2 pooling
    # column selection (zero rows at odd-w positions) and (c) the 100->128 pad
    # into one block-expanded matrix indexed by pooled-slab columns.
    wf1 = p["fc1_w"].T                                      # (c2*21*21, 100), rows = (c, hp, wp)
    w3 = wf1.reshape(c2, PH, PW, HID)
    w3 = jnp.pad(w3, ((0, 0), (0, 0), (0, 0), (0, HIDP - HID)))
    w4 = jnp.transpose(w3, (2, 0, 1, 3)).reshape(PW, c2, PH * HIDP)   # (wp, c, hp*128+k)
    w5 = jnp.concatenate([w4, jnp.zeros_like(w4)], axis=1)            # odd-w rows -> 0
    bigw = w5.reshape(PW * 2 * c2, PH * HIDP)[:(W2 - 1) * c2]         # (41*c2, 21*128)
    bigw = bigw.astype(jnp.bfloat16)        # storage dtype only; matmul accumulates f32
    # TODO(synk): for v5e, drop bigw's explicitly-zero odd-w rows (K 328->164) and gather
    # the even-w pooled columns in-kernel once the gather relayout cost is verified.

    bf1p = jnp.pad(p["fc1_b"], (0, HIDP - HID))[None, :]              # (1, 128)
    wf2p = jnp.pad(p["fc2_w"].T, ((0, HIDP - HID), (0, 0)))           # (128, 4)
    bf2t = p["fc2_b"][None, :]                                        # (1, 4)
    return dict(bd1=bd1, b1t=b1t, bd2=bd2, b2t=b2t, sel=sel, bigw=bigw,
                bf1p=bf1p, wf2p=wf2p, bf2t=bf2t)


# ---------------- pure-JAX reference (for correctness) ----------------

def reference_forward(x, p):
    dn = ("NCHW", "OIHW", "NCHW")
    y = lax.conv_general_dilated(x, p["conv1_w"], (1, 1), "VALID", dimension_numbers=dn)
    y = jnp.maximum(y + p["conv1_b"][None, :, None, None], 0.0)
    y = lax.conv_general_dilated(y, p["conv2_w"], (1, 1), "VALID", dimension_numbers=dn)
    y = y + p["conv2_b"][None, :, None, None]
    y = lax.reduce_window(y, -jnp.inf, lax.max, (1, 1, 2, 2), (1, 1, 2, 2), "VALID")
    flat = y.reshape(y.shape[0], -1)                    # NCHW flatten, dropouts = identity
    h = jnp.maximum(flat @ p["fc1_w"].T + p["fc1_b"], 0.0)
    logits = h @ p["fc2_w"].T + p["fc2_b"]
    return jax.nn.log_softmax(logits, axis=1)


if __name__ == "__main__":
    # input_channel = 2 (e.g. duration=2000, channel=1), 44x44 spatial, batch 2.
    N, CIN = 2, 2
    key = jax.random.PRNGKey(0)
    kx, kp = jax.random.split(key)
    x = jax.random.normal(kx, (N, CIN, H, W), jnp.float32)
    params = init_params(kp, CIN)
    prep = prepare_params(params)

    out = jax.block_until_ready(net_forward(x, prep))
    ref = jax.block_until_ready(reference_forward(x, params))

    assert out.shape == (N, NCLASS) and out.dtype == jnp.float32
    # log_softmax rows must exponentiate-sum to 1
    assert bool(jnp.allclose(jnp.sum(jnp.exp(out), axis=1), 1.0, atol=1e-4))
    # match the f32 reference (convs/fc1 use bf16 storage / f32 accumulation)
    assert bool(jnp.allclose(out, ref, atol=2e-2)), (out, ref)
    print("KERNEL_OK")
</pallas_src>

<mosaic_0001>
module attributes {stable_mosaic.version = 11 : i64} {
  func.func @_fused_kernel(%arg0: i32, %arg1: memref<1x44x88xbf16, #tpu.memory_space<vmem>>, %arg2: memref<2x88x172xbf16, #tpu.memory_space<vmem>>, %arg3: memref<1x172xf32, #tpu.memory_space<vmem>>, %arg4: memref<2x172x336xbf16, #tpu.memory_space<vmem>>, %arg5: memref<1x336xf32, #tpu.memory_space<vmem>>, %arg6: memref<21x41xbf16, #tpu.memory_space<vmem>>, %arg7: memref<328x2688xbf16, #tpu.memory_space<vmem>>, %arg8: memref<1x128xf32, #tpu.memory_space<vmem>>, %arg9: memref<128x4xf32, #tpu.memory_space<vmem>>, %arg10: memref<1x4xf32, #tpu.memory_space<vmem>>, %arg11: memref<1x1x4xf32, #tpu.memory_space<vmem>>, %arg12: memref<43x172xbf16, #tpu.memory_space<vmem>>, %arg13: memref<42x336xf32, #tpu.memory_space<vmem>>, %arg14: memref<21x2688xf32, #tpu.memory_space<vmem>>) attributes {dimension_semantics = [#tpu.dimension_semantics<parallel>], iteration_bounds = array<i64: 2>, scalar_prefetch = 0 : i64, scratch_operands = 3 : i64, tpu.core_type = #tpu.core_type<tc>, window_params = [{transform_indices = @transform_0, window_bounds = array<i64: 1, 44, 88>}, {pipeline_mode = #tpu.pipeline_mode<synchronous>, transform_indices = @transform_1, window_bounds = array<i64: 2, 88, 172>}, {pipeline_mode = #tpu.pipeline_mode<synchronous>, transform_indices = @transform_2, window_bounds = array<i64: 1, 172>}, {pipeline_mode = #tpu.pipeline_mode<synchronous>, transform_indices = @transform_3, window_bounds = array<i64: 2, 172, 336>}, {pipeline_mode = #tpu.pipeline_mode<synchronous>, transform_indices = @transform_4, window_bounds = array<i64: 1, 336>}, {pipeline_mode = #tpu.pipeline_mode<synchronous>, transform_indices = @transform_5, window_bounds = array<i64: 21, 41>}, {pipeline_mode = #tpu.pipeline_mode<synchronous>, transform_indices = @transform_6, window_bounds = array<i64: 328, 2688>}, {pipeline_mode = #tpu.pipeline_mode<synchronous>, transform_indices = @transform_7, window_bounds = array<i64: 1, 128>}, {pipeline_mode = #tpu.pipeline_mode<synchronous>, transform_indices = @transform_8, window_bounds = array<i64: 128, 4>}, {pipeline_mode = #tpu.pipeline_mode<synchronous>, transform_indices = @transform_9, window_bounds = array<i64: 1, 4>}, {transform_indices = @transform_10, window_bounds = array<i64: 1, 1, 4>}]} {
    %c0 = arith.constant 0 : index
    %c0_0 = arith.constant 0 : index
    %c0_1 = arith.constant 0 : index
    %0 = vector.load %arg1[%c0, %c0_0, %c0_1] : memref<1x44x88xbf16, #tpu.memory_space<vmem>>, vector<1x43x88xbf16>
    %1 = vector.shape_cast %0 : vector<1x43x88xbf16> to vector<43x88xbf16>
    %c0_2 = arith.constant 0 : index
    %c0_3 = arith.constant 0 : index
    %c0_4 = arith.constant 0 : index
    %2 = vector.load %arg2[%c0_2, %c0_3, %c0_4] : memref<2x88x172xbf16, #tpu.memory_space<vmem>>, vector<1x88x172xbf16>
    %3 = vector.shape_cast %2 : vector<1x88x172xbf16> to vector<88x172xbf16>
    %cst = arith.constant dense<0.000000e+00> : vector<43x172xf32>
    %4 = tpu.matmul %1, %3, %cst {dimension_numbers = #tpu.dot_dimension_numbers<[1], [0], [0], [1], [0, 0, 1, 1], [], []>} : vector<43x88xbf16>, vector<88x172xbf16>, vector<43x172xf32> -> vector<43x172xf32>
    %c0_5 = arith.constant 0 : index
    %c1 = arith.constant 1 : index
    %c0_6 = arith.constant 0 : index
    %5 = vector.load %arg1[%c0_5, %c1, %c0_6] : memref<1x44x88xbf16, #tpu.memory_space<vmem>>, vector<1x43x88xbf16>
    %6 = vector.shape_cast %5 : vector<1x43x88xbf16> to vector<43x88xbf16>
    %c1_7 = arith.constant 1 : index
    %c0_8 = arith.constant 0 : index
    %c0_9 = arith.constant 0 : index
    %7 = vector.load %arg2[%c1_7, %c0_8, %c0_9] : memref<2x88x172xbf16, #tpu.memory_space<vmem>>, vector<1x88x172xbf16>
    %8 = vector.shape_cast %7 : vector<1x88x172xbf16> to vector<88x172xbf16>
    %cst_10 = arith.constant dense<0.000000e+00> : vector<43x172xf32>
    %9 = tpu.matmul %6, %8, %cst_10 {dimension_numbers = #tpu.dot_dimension_numbers<[1], [0], [0], [1], [0, 0, 1, 1], [], []>} : vector<43x88xbf16>, vector<88x172xbf16>, vector<43x172xf32> -> vector<43x172xf32>
    %10 = arith.addf %4, %9 : vector<43x172xf32>
    %c0_11 = arith.constant 0 : index
    %c0_12 = arith.constant 0 : index
    %11 = vector.load %arg3[%c0_11, %c0_12] : memref<1x172xf32, #tpu.memory_space<vmem>>, vector<1x172xf32>
    %12 = vector.broadcast %11 : vector<1x172xf32> to vector<43x172xf32>
    %13 = arith.addf %10, %12 : vector<43x172xf32>
    %cst_13 = arith.constant 0.000000e+00 : f32
    %14 = vector.broadcast %cst_13 : f32 to vector<43x172xf32>
    %15 = arith.maximumf %13, %14 : vector<43x172xf32>
    %16 = arith.truncf %15 : vector<43x172xf32> to vector<43x172xbf16>
    %c0_14 = arith.constant 0 : index
    %c0_15 = arith.constant 0 : index
    %17 = vector.load %arg12[%c0_14, %c0_15] : memref<43x172xbf16, #tpu.memory_space<vmem>>, vector<43x172xbf16>
    tpu.vector_store %arg12[%c0_14, %c0_15], %16 {strides = array<i32>} : memref<43x172xbf16, #tpu.memory_space<vmem>>, vector<43x172xbf16>,
    %c0_16 = arith.constant 0 : index
    %c0_17 = arith.constant 0 : index
    %18 = vector.load %arg12[%c0_16, %c0_17] : memref<43x172xbf16, #tpu.memory_space<vmem>>, vector<42x172xbf16>
    %c0_18 = arith.constant 0 : index
    %c0_19 = arith.constant 0 : index
    %c0_20 = arith.constant 0 : index
    %19 = vector.load %arg4[%c0_18, %c0_19, %c0_20] : memref<2x172x336xbf16, #tpu.memory_space<vmem>>, vector<1x172x336xbf16>
    %20 = vector.shape_cast %19 : vector<1x172x336xbf16> to vector<172x336xbf16>
    %cst_21 = arith.constant dense<0.000000e+00> : vector<42x336xf32>
    %21 = tpu.matmul %18, %20, %cst_21 {dimension_numbers = #tpu.dot_dimension_numbers<[1], [0], [0], [1], [0, 0, 1, 1], [], []>} : vector<42x172xbf16>, vector<172x336xbf16>, vector<42x336xf32> -> vector<42x336xf32>
    %c1_22 = arith.constant 1 : index
    %c0_23 = arith.constant 0 : index
    %22 = vector.load %arg12[%c1_22, %c0_23] : memref<43x172xbf16, #tpu.memory_space<vmem>>, vector<42x172xbf16>
    %c1_24 = arith.constant 1 : index
    %c0_25 = arith.constant 0 : index
    %c0_26 = arith.constant 0 : index
    %23 = vector.load %arg4[%c1_24, %c0_25, %c0_26] : memref<2x172x336xbf16, #tpu.memory_space<vmem>>, vector<1x172x336xbf16>
    %24 = vector.shape_cast %23 : vector<1x172x336xbf16> to vector<172x336xbf16>
    %cst_27 = arith.constant dense<0.000000e+00> : vector<42x336xf32>
    %25 = tpu.matmul %22, %24, %cst_27 {dimension_numbers = #tpu.dot_dimension_numbers<[1], [0], [0], [1], [0, 0, 1, 1], [], []>} : vector<42x172xbf16>, vector<172x336xbf16>, vector<42x336xf32> -> vector<42x336xf32>
    %26 = arith.addf %21, %25 : vector<42x336xf32>
    %c0_28 = arith.constant 0 : index
    %c0_29 = arith.constant 0 : index
    %27 = vector.load %arg5[%c0_28, %c0_29] : memref<1x336xf32, #tpu.memory_space<vmem>>, vector<1x336xf32>
    %28 = vector.broadcast %27 : vector<1x336xf32> to vector<42x336xf32>
    %29 = arith.addf %26, %28 : vector<42x336xf32>
    %c0_30 = arith.constant 0 : index
    %c0_31 = arith.constant 0 : index
    %30 = vector.load %arg13[%c0_30, %c0_31] : memref<42x336xf32, #tpu.memory_space<vmem>>, vector<42x336xf32>
    tpu.vector_store %arg13[%c0_30, %c0_31], %29 {strides = array<i32>} : memref<42x336xf32, #tpu.memory_space<vmem>>, vector<42x336xf32>,
    %c0_32 = arith.constant 0 : index
    %c0_33 = arith.constant 0 : index
    %31 = vector.load %arg13[%c0_32, %c0_33] : memref<42x336xf32, #tpu.memory_space<vmem>>, vector<41x328xf32>
    %c1_34 = arith.constant 1 : index
    %c0_35 = arith.constant 0 : index
    %32 = vector.load %arg13[%c1_34, %c0_35] : memref<42x336xf32, #tpu.memory_space<vmem>>, vector<41x328xf32>
    %33 = arith.maximumf %31, %32 : vector<41x328xf32>
    %c0_36 = arith.constant 0 : index
    %c8 = arith.constant 8 : index
    %34 = vector.load %arg13[%c0_36, %c8] : memref<42x336xf32, #tpu.memory_space<vmem>>, vector<41x328xf32>
    %c1_37 = arith.constant 1 : index
    %c8_38 = arith.constant 8 : index
    %35 = vector.load %arg13[%c1_37, %c8_38] : memref<42x336xf32, #tpu.memory_space<vmem>>, vector<41x328xf32>
    %36 = arith.maximumf %34, %35 : vector<41x328xf32>
    %37 = arith.maximumf %33, %36 : vector<41x328xf32>
    %c0_39 = arith.constant 0 : index
    %c0_40 = arith.constant 0 : index
    %38 = vector.load %arg6[%c0_39, %c0_40] : memref<21x41xbf16, #tpu.memory_space<vmem>>, vector<21x41xbf16>
    %39 = arith.truncf %37 : vector<41x328xf32> to vector<41x328xbf16>
    %cst_41 = arith.constant dense<0.000000e+00> : vector<21x328xf32>
    %40 = tpu.matmul %38, %39, %cst_41 {dimension_numbers = #tpu.dot_dimension_numbers<[1], [0], [0], [1], [0, 0, 1, 1], [], []>} : vector<21x41xbf16>, vector<41x328xbf16>, vector<21x328xf32> -> vector<21x328xf32>
    %41 = arith.truncf %40 : vector<21x328xf32> to vector<21x328xbf16>
    %c0_42 = arith.constant 0 : index
    %c0_43 = arith.constant 0 : index
    %42 = vector.load %arg7[%c0_42, %c0_43] : memref<328x2688xbf16, #tpu.memory_space<vmem>>, vector<328x2688xbf16>
    %cst_44 = arith.constant dense<0.000000e+00> : vector<21x2688xf32>
    %43 = tpu.matmul %41, %42, %cst_44 {dimension_numbers = #tpu.dot_dimension_numbers<[1], [0], [0], [1], [0, 0, 1, 1], [], []>} : vector<21x328xbf16>, vector<328x2688xbf16>, vector<21x2688xf32> -> vector<21x2688xf32>
    %c0_45 = arith.constant 0 : index
    %c0_46 = arith.constant 0 : index
    %44 = vector.load %arg14[%c0_45, %c0_46] : memref<21x2688xf32, #tpu.memory_space<vmem>>, vector<21x2688xf32>
    tpu.vector_store %arg14[%c0_45, %c0_46], %43 {strides = array<i32>} : memref<21x2688xf32, #tpu.memory_space<vmem>>, vector<21x2688xf32>,
    %c0_47 = arith.constant 0 : index
    %c0_48 = arith.constant 0 : index
    %45 = vector.load %arg14[%c0_47, %c0_48] : memref<21x2688xf32, #tpu.memory_space<vmem>>, vector<1x128xf32>
    %c1_49 = arith.constant 1 : index
    %c128 = arith.constant 128 : index
    %46 = vector.load %arg14[%c1_49, %c128] : memref<21x2688xf32, #tpu.memory_space<vmem>>, vector<1x128xf32>
    %c2 = arith.constant 2 : index
    %c256 = arith.constant 256 : index
    %47 = vector.load %arg14[%c2, %c256] : memref<21x2688xf32, #tpu.memory_space<vmem>>, vector<1x128xf32>
    %c3 = arith.constant 3 : index
    %c384 = arith.constant 384 : index
    %48 = vector.load %arg14[%c3, %c384] : memref<21x2688xf32, #tpu.memory_space<vmem>>, vector<1x128xf32>
    %c4 = arith.constant 4 : index
    %c512 = arith.constant 512 : index
    %49 = vector.load %arg14[%c4, %c512] : memref<21x2688xf32, #tpu.memory_space<vmem>>, vector<1x128xf32>
    %c5 = arith.constant 5 : index
    %c640 = arith.constant 640 : index
    %50 = vector.load %arg14[%c5, %c640] : memref<21x2688xf32, #tpu.memory_space<vmem>>, vector<1x128xf32>
    %c6 = arith.constant 6 : index
    %c768 = arith.constant 768 : index
    %51 = vector.load %arg14[%c6, %c768] : memref<21x2688xf32, #tpu.memory_space<vmem>>, vector<1x128xf32>
    %c7 = arith.constant 7 : index
    %c896 = arith.constant 896 : index
    %52 = vector.load %arg14[%c7, %c896] : memref<21x2688xf32, #tpu.memory_space<vmem>>, vector<1x128xf32>
    %c8_50 = arith.constant 8 : index
    %c1024 = arith.constant 1024 : index
    %53 = vector.load %arg14[%c8_50, %c1024] : memref<21x2688xf32, #tpu.memory_space<vmem>>, vector<1x128xf32>
    %c9 = arith.constant 9 : index
    %c1152 = arith.constant 1152 : index
    %54 = vector.load %arg14[%c9, %c1152] : memref<21x2688xf32, #tpu.memory_space<vmem>>, vector<1x128xf32>
    %c10 = arith.constant 10 : index
    %c1280 = arith.constant 1280 : index
    %55 = vector.load %arg14[%c10, %c1280] : memref<21x2688xf32, #tpu.memory_space<vmem>>, vector<1x128xf32>
    %c11 = arith.constant 11 : index
    %c1408 = arith.constant 1408 : index
    %56 = vector.load %arg14[%c11, %c1408] : memref<21x2688xf32, #tpu.memory_space<vmem>>, vector<1x128xf32>
    %c12 = arith.constant 12 : index
    %c1536 = arith.constant 1536 : index
    %57 = vector.load %arg14[%c12, %c1536] : memref<21x2688xf32, #tpu.memory_space<vmem>>, vector<1x128xf32>
    %c13 = arith.constant 13 : index
    %c1664 = arith.constant 1664 : index
    %58 = vector.load %arg14[%c13, %c1664] : memref<21x2688xf32, #tpu.memory_space<vmem>>, vector<1x128xf32>
    %c14 = arith.constant 14 : index
    %c1792 = arith.constant 1792 : index
    %59 = vector.load %arg14[%c14, %c1792] : memref<21x2688xf32, #tpu.memory_space<vmem>>, vector<1x128xf32>
    %c15 = arith.constant 15 : index
    %c1920 = arith.constant 1920 : index
    %60 = vector.load %arg14[%c15, %c1920] : memref<21x2688xf32, #tpu.memory_space<vmem>>, vector<1x128xf32>
    %c16 = arith.constant 16 : index
    %c2048 = arith.constant 2048 : index
    %61 = vector.load %arg14[%c16, %c2048] : memref<21x2688xf32, #tpu.memory_space<vmem>>, vector<1x128xf32>
    %c17 = arith.constant 17 : index
    %c2176 = arith.constant 2176 : index
    %62 = vector.load %arg14[%c17, %c2176] : memref<21x2688xf32, #tpu.memory_space<vmem>>, vector<1x128xf32>
    %c18 = arith.constant 18 : index
    %c2304 = arith.constant 2304 : index
    %63 = vector.load %arg14[%c18, %c2304] : memref<21x2688xf32, #tpu.memory_space<vmem>>, vector<1x128xf32>
    %c19 = arith.constant 19 : index
    %c2432 = arith.constant 2432 : index
    %64 = vector.load %arg14[%c19, %c2432] : memref<21x2688xf32, #tpu.memory_space<vmem>>, vector<1x128xf32>
    %c20 = arith.constant 20 : index
    %c2560 = arith.constant 2560 : index
    %65 = vector.load %arg14[%c20, %c2560] : memref<21x2688xf32, #tpu.memory_space<vmem>>, vector<1x128xf32>
    %66 = arith.addf %45, %46 : vector<1x128xf32>
    %67 = arith.addf %47, %48 : vector<1x128xf32>
    %68 = arith.addf %49, %50 : vector<1x128xf32>
    %69 = arith.addf %51, %52 : vector<1x128xf32>
    %70 = arith.addf %53, %54 : vector<1x128xf32>
    %71 = arith.addf %55, %56 : vector<1x128xf32>
    %72 = arith.addf %57, %58 : vector<1x128xf32>
    %73 = arith.addf %59, %60 : vector<1x128xf32>
    %74 = arith.addf %61, %62 : vector<1x128xf32>
    %75 = arith.addf %63, %64 : vector<1x128xf32>
    %76 = arith.addf %66, %67 : vector<1x128xf32>
    %77 = arith.addf %68, %69 : vector<1x128xf32>
    %78 = arith.addf %70, %71 : vector<1x128xf32>
    %79 = arith.addf %72, %73 : vector<1x128xf32>
    %80 = arith.addf %74, %75 : vector<1x128xf32>
    %81 = arith.addf %76, %77 : vector<1x128xf32>
    %82 = arith.addf %78, %79 : vector<1x128xf32>
    %83 = arith.addf %80, %65 : vector<1x128xf32>
    %84 = arith.addf %81, %82 : vector<1x128xf32>
    %85 = arith.addf %84, %83 : vector<1x128xf32>
    %c0_51 = arith.constant 0 : index
    %c0_52 = arith.constant 0 : index
    %86 = vector.load %arg8[%c0_51, %c0_52] : memref<1x128xf32, #tpu.memory_space<vmem>>, vector<1x128xf32>
    %87 = arith.addf %85, %86 : vector<1x128xf32>
    %cst_53 = arith.constant 0.000000e+00 : f32
    %88 = vector.broadcast %cst_53 : f32 to vector<1x128xf32>
    %89 = arith.maximumf %87, %88 : vector<1x128xf32>
    %c0_54 = arith.constant 0 : index
    %c0_55 = arith.constant 0 : index
    %90 = vector.load %arg9[%c0_54, %c0_55] : memref<128x4xf32, #tpu.memory_space<vmem>>, vector<128x4xf32>
    %cst_56 = arith.constant dense<0.000000e+00> : vector<1x4xf32>
    %91 = tpu.matmul %89, %90, %cst_56 {dimension_numbers = #tpu.dot_dimension_numbers<[1], [0], [0], [1], [0, 0, 1, 1], [], []>} : vector<1x128xf32>, vector<128x4xf32>, vector<1x4xf32> -> vector<1x4xf32>
    %c0_57 = arith.constant 0 : index
    %c0_58 = arith.constant 0 : index
    %92 = vector.load %arg10[%c0_57, %c0_58] : memref<1x4xf32, #tpu.memory_space<vmem>>, vector<1x4xf32>
    %93 = arith.addf %91, %92 : vector<1x4xf32>
    %cst_59 = arith.constant dense<0xFF800000> : vector<1xf32>
    %94 = vector.multi_reduction <maximumf>, %93, %cst_59 [1] : vector<1x4xf32> to vector<1xf32>
    %95 = vector.shape_cast %94 : vector<1xf32> to vector<1x1xf32>
    %96 = vector.broadcast %95 : vector<1x1xf32> to vector<1x4xf32>
    %97 = arith.subf %93, %96 : vector<1x4xf32>
    %98 = math.exp %97 : vector<1x4xf32>
    %cst_60 = arith.constant dense<0.000000e+00> : vector<1xf32>
    %99 = vector.multi_reduction <add>, %98, %cst_60 [1] : vector<1x4xf32> to vector<1xf32>
    %100 = vector.shape_cast %99 : vector<1xf32> to vector<1x1xf32>
    %101 = math.log %100 : vector<1x1xf32>
    %102 = vector.broadcast %101 : vector<1x1xf32> to vector<1x4xf32>
    %103 = arith.subf %97, %102 : vector<1x4xf32>
    %c0_61 = arith.constant 0 : index
    %c0_62 = arith.constant 0 : index
    %c0_63 = arith.constant 0 : index
    %104 = vector.load %arg11[%c0_61, %c0_62, %c0_63] : memref<1x1x4xf32, #tpu.memory_space<vmem>>, vector<1x1x4xf32>
    %105 = vector.shape_cast %104 : vector<1x1x4xf32> to vector<1x4xf32>
    %106 = vector.shape_cast %103 : vector<1x4xf32> to vector<1x1x4xf32>
    tpu.vector_store %arg11[%c0_61, %c0_62, %c0_63], %106 {strides = array<i32>} : memref<1x1x4xf32, #tpu.memory_space<vmem>>, vector<1x1x4xf32>,
    return
  }
  func.func @transform_0(%arg0: i32) -> (i32, i32, i32) {
    %c0_i32 = arith.constant 0 : i32
    %c0_i32_0 = arith.constant 0 : i32
    %c0_i32_1 = arith.constant 0 : i32
    return %arg0, %c0_i32, %c0_i32_0 : i32, i32, i32
  }
  func.func @transform_1(%arg0: i32) -> (i32, i32, i32) {
    %c0_i32 = arith.constant 0 : i32
    %c0_i32_0 = arith.constant 0 : i32
    %c0_i32_1 = arith.constant 0 : i32
    %c0_i32_2 = arith.constant 0 : i32
    return %c0_i32, %c0_i32_0, %c0_i32_1 : i32, i32, i32
  }
  func.func @transform_2(%arg0: i32) -> (i32, i32) {
    %c0_i32 = arith.constant 0 : i32
    %c0_i32_0 = arith.constant 0 : i32
    %c0_i32_1 = arith.constant 0 : i32
    return %c0_i32, %c0_i32_0 : i32, i32
  }
  func.func @transform_3(%arg0: i32) -> (i32, i32, i32) {
    %c0_i32 = arith.constant 0 : i32
    %c0_i32_0 = arith.constant 0 : i32
    %c0_i32_1 = arith.constant 0 : i32
    %c0_i32_2 = arith.constant 0 : i32
    return %c0_i32, %c0_i32_0, %c0_i32_1 : i32, i32, i32
  }
  func.func @transform_4(%arg0: i32) -> (i32, i32) {
    %c0_i32 = arith.constant 0 : i32
    %c0_i32_0 = arith.constant 0 : i32
    %c0_i32_1 = arith.constant 0 : i32
    return %c0_i32, %c0_i32_0 : i32, i32
  }
  func.func @transform_5(%arg0: i32) -> (i32, i32) {
    %c0_i32 = arith.constant 0 : i32
    %c0_i32_0 = arith.constant 0 : i32
    %c0_i32_1 = arith.constant 0 : i32
    return %c0_i32, %c0_i32_0 : i32, i32
  }
  func.func @transform_6(%arg0: i32) -> (i32, i32) {
    %c0_i32 = arith.constant 0 : i32
    %c0_i32_0 = arith.constant 0 : i32
    %c0_i32_1 = arith.constant 0 : i32
    return %c0_i32, %c0_i32_0 : i32, i32
  }
  func.func @transform_7(%arg0: i32) -> (i32, i32) {
    %c0_i32 = arith.constant 0 : i32
    %c0_i32_0 = arith.constant 0 : i32
    %c0_i32_1 = arith.constant 0 : i32
    return %c0_i32, %c0_i32_0 : i32, i32
  }
  func.func @transform_8(%arg0: i32) -> (i32, i32) {
    %c0_i32 = arith.constant 0 : i32
    %c0_i32_0 = arith.constant 0 : i32
    %c0_i32_1 = arith.constant 0 : i32
    return %c0_i32, %c0_i32_0 : i32, i32
  }
  func.func @transform_9(%arg0: i32) -> (i32, i32) {
    %c0_i32 = arith.constant 0 : i32
    %c0_i32_0 = arith.constant 0 : i32
    %c0_i32_1 = arith.constant 0 : i32
    return %c0_i32, %c0_i32_0 : i32, i32
  }
  func.func @transform_10(%arg0: i32) -> (i32, i32, i32) {
    %c0_i32 = arith.constant 0 : i32
    %c0_i32_0 = arith.constant 0 : i32
    %c0_i32_1 = arith.constant 0 : i32
    return %arg0, %c0_i32, %c0_i32_0 : i32, i32, i32
  }
}

</mosaic_0001>

<bundles_post_ra>
// kernel: net_forward.1
= control target key start
LH: loop header
LB: loop body
LE: loop exit
PB: predicated region body
PF: predicated region fallthrough
CT: control target
= control target key end

     0   :  { %s10707_s0 = inlined_call_operand.vmem [shape: bf16[2,44,88], index: 0, kind: input, shape index: {}]   ;;  %s10708_s1 = inlined_call_operand.vmem [shape: bf16[2,88,172], index: 1, kind: input, shape index: {}]   ;;  %s10709_s2 = inlined_call_operand.hbm [shape: f32[1,172], index: 2, kind: input, shape index: {}]   ;;  %s10710_s3 = inlined_call_operand.vmem [shape: bf16[2,172,336], index: 3, kind: input, shape index: {}]   ;;  %s10711_s4 = inlined_call_operand.hbm [shape: f32[1,336], index: 4, kind: input, shape index: {}]   ;;  %s10712_s5 = inlined_call_operand.hbm [shape: bf16[21,41], index: 5, kind: input, shape index: {}]   ;;  %s10713_s6 = inlined_call_operand.hbm [shape: bf16[328,2688], index: 6, kind: input, shape index: {}]   ;;  %s10714_s7 = inlined_call_operand.hbm [shape: f32[1,128], index: 7, kind: input, shape index: {}]   ;;  %s10715_s8 = inlined_call_operand.vmem [shape: f32[128,4], index: 8, kind: input, shape index: {}]   ;;  %s10716_s9 = inlined_call_operand.hbm [shape: f32[1,4], index: 9, kind: input, shape index: {}]   ;;  %s10717_s10 = inlined_call_operand.hbm [shape: f32[2,1,4], index: 10, kind: output, shape index: {}]  }
   0x1   :  { %10721 = sst [smem:[#allocation25_spill]] %s10711_s4 }
   0x2   :  { %10722 = sst [smem:[#allocation26_spill]] %s10713_s6 }
   0x3   :  { %15 = vsyncpa [#allocation6], 0 }
   0x4   :  { %16 = vsyncpa [#allocation9], 0 }
   0x5   :  { %17 = vsyncpa [#allocation12], 0 }
   0x6   :  { %18 = vsyncpa [#allocation15], 0 }
   0x7   :  { %19 = vsyncpa [#allocation7], 0 }
   0x8   :  { %21 = vsyncpa [#allocation7 + $0x1], 0  ;;  %s9340_s13 = smov 0   ;;  %s9342_s14 = smov 0  }
   0x9   :  { %s9344_s15 = smov 0   ;;  %s9346_s16 = smov 0  }
   0xa LB: > { %10723 = sst [smem:[#allocation22_spill]] %s9267_s15  ;;  %s9361_s17 = sadd.s32 4294967295, %s9271_s16   ;;  %s9271_s16 = sphi %s9346_s16, %s10738_s16   ;;  %s9267_s15 = sphi %s9344_s15, %s10740_s15   ;;  %s9263_s14 = sphi %s9342_s14, %s10742_s14   ;;  %s9259_s13 = sphi %s9340_s13, %s10741_s13  }
   0xb   : > { %s6127_s18 = sadd.s32 4294967294, %s9271_s16   ;;  %s9365_s19 = sadd.s32 1, %s9271_s16  }
   0xc   : > { %10724 = sst [smem:[#allocation23_spill]] %s9365_s19  ;;  %s249_s20 = sadd.s32 1, %s9267_s15 }
   0xd   : > { %s246_s21 = ssub.s32 %s9271_s16, %s9365_s19  ;;  %p259_p0 = scmp.ne.s32.totalorder %s9267_s15, %s9263_s14 }
   0xe   : > { %p247_p1 = scmp.eq.s32.totalorder %s246_s21, 0  ;;  %p260_p2 = scmp.eq.s32.totalorder %s9361_s17, 1 }
   0xf   : > { %p265_p3 = scmp.ne.s32.totalorder %s9263_s14, %s9259_s13  ;;  %p266_p4 = scmp.eq.s32.totalorder %s6127_s18, 1 }
  0x10   : > { %s9376_s22 = scalar_select %p247_p1, %s9267_s15, %s249_s20  }
  0x11   : > { %p9378_p5 = por %p260_p2, %p259_p0  ;;  %p9382_p6 = por %p266_p4, %p265_p3 }
  0x12   : > { %10725 = sst [smem:[#allocation24_spill]] %s9376_s22  ;;  %p6128_p7 = scmp.ge.s32.totalorder %s9271_s16, 1 }
  0x13   : > { %p273_p8 = scmp.lt.s32.totalorder %s9271_s16, 3  ;;  %p8907_p9 = scmp.eq.s32.totalorder %s9361_s17, 0 }
  0x14   : > { %s10729_s4 = sld [smem:[#allocation25_spill]]  ;;  %s9273_s29 = smov [#allocation8]  }
  0x15   : > { %p9389_p10 = pnand %p6128_p7, %p273_p8  ;;  %s305_s30 = sshll.u32 %s9273_s29, 4  ;;  %s306_s30 = int_to_ptr.vmem [resolvable:$true] %s305_s30 }
  0x16   : > { %s10730_s6 = sld [smem:[#allocation26_spill]]  ;;  %s9274_s21 = smov [#allocation11]  }
  0x17   : > { %p8884_p11 = pneg %p9389_p10  ;;  %s330_s26 = sshll.u32 %s9274_s21, 4  ;;  %s331_s26 = int_to_ptr.vmem [resolvable:$true] %s330_s26 }
  0x18   : > { %s9275_s27 = smov 1344   ;;  %s9276_s29 = smov 84  }
  0x19   : > { %p9403_p12 = pnand %p8907_p9, %p8884_p11  ;;  %s314_s21 = sshll.u32 %s10712_s5, 4  ;;  %s315_s21 = int_to_ptr.hbm [resolvable:$true] %s314_s21 }
  0x1a   : > { %s303_s28 = sshll.u32 %s10729_s4, 4  ;;  %s288_s4 = sshll.u32 %s10709_s2, 4  ;;  %s304_s28 = int_to_ptr.hbm [resolvable:$true] %s303_s28  ;;  %s289_s4 = int_to_ptr.hbm [resolvable:$true] %s288_s4 }
  0x1b   : > { %8890 = dma.hbm_to_vmem [thread:$0]  (!%p9403_p12), %s304_s28, 48, %s306_s30, [#allocation9]  }
  0x1c   : > { %s328_s18 = sshll.u32 %s10730_s6, 4  ;;  %s9277_s6 = smov [#allocation5]   ;;  %s329_s18 = int_to_ptr.hbm [resolvable:$true] %s328_s18 }
  0x1d   : > { %8896 = dma.hbm_to_vmem [thread:$0]  (!%p9403_p12), %s329_s18, 55104, %s331_s26, [#allocation12], %s9275_s27, %s9275_s27, %s9276_s29  }
  0x1e   : > { %s290_s22 = sshll.u32 %s9277_s6, 4  ;;  %s9278_s28 = smov [#allocation10]   ;;  %s291_s22 = int_to_ptr.vmem [resolvable:$true] %s290_s22 }
  0x1f   : > { %8887 = dma.hbm_to_vmem [thread:$0]  (!%p9403_p12), %s289_s4, 32, %s291_s22, [#allocation6]  }
  0x20   : > { %s316_s30 = sshll.u32 %s9278_s28, 4  ;;  %s9279_s18 = smov 64   ;;  %s317_s30 = int_to_ptr.vmem [resolvable:$true] %s316_s30 }
  0x21   : > { %s9280_s26 = smov 4   ;;  %s343_s6 = sshll.u32 %s10714_s7, 4  ;;  %s344_s6 = int_to_ptr.hbm [resolvable:$true] %s343_s6 }
  0x22   : > { %8893 = dma.hbm_to_vmem [thread:$0]  (!%p9403_p12), %s315_s21, 192, %s317_s30, [#allocation9], %s9279_s18, %s9279_s18, %s9280_s26  }
  0x23   : > { %s9281_s11 = smov [#allocation13]   ;;  %s358_s4 = sshll.u32 %s10716_s9, 4  ;;  %s359_s4 = int_to_ptr.hbm [resolvable:$true] %s358_s4 }
  0x24   : > { %s345_s15 = sshll.u32 %s9281_s11, 4  ;;  %s9282_s22 = smov [#allocation14]   ;;  %s346_s15 = int_to_ptr.vmem [resolvable:$true] %s345_s15 }
  0x25   : > { %8899 = dma.hbm_to_vmem [thread:$0]  (!%p9403_p12), %s344_s6, 16, %s346_s15, [#allocation12]  }
  0x26   : > { %s360_s28 = sshll.u32 %s9282_s22, 4  ;;  %381 = sbr.rel (%p9389_p10) target bundleno = 1892 (0x764), region = 60  ;;  %s361_s28 = int_to_ptr.vmem [resolvable:$true] %s360_s28 }
  0x27   : > { %8902 = dma.hbm_to_vmem [thread:$0]  (!%p9403_p12), %s359_s4, 16, %s361_s28, [#allocation15]  }
  0x2b   : > { %9238 = dma.done.wait (%p8907_p9), [#allocation6], 32  }
  0x2c   : > { %9240 = vsyncadd (%p8907_p9), [#allocation6], 4294967264 }
  0x2d   : > { %9242 = dma.done.wait (%p8907_p9), [#allocation9], 240  }
  0x2e   : > { %9244 = vsyncadd (%p8907_p9), [#allocation9], 4294967056 }
  0x2f   : > { %9246 = dma.done.wait (%p8907_p9), [#allocation12], 55120  }
  0x30   : > { %9248 = vsyncadd (%p8907_p9), [#allocation12], 4294912176 }
  0x31   : > { %9250 = dma.done.wait (%p8907_p9), [#allocation15], 16  }
  0x32   : > { %9252 = vsyncadd (%p8907_p9), [#allocation15], 4294967280  ;;  %p444_p13 = scmp.lt.s32.totalorder %s9361_s17, 1  ;;  %v6154_v0 = vld [vmem:[%s10708_s1 + $0xa8] sm:$0xff]  ;;  %v466_v1 = vld [vmem:[%s10708_s1 + $0x50] sm:$0xff]  ;;  %vm583_vm0 = vcmask 1043456   ;;  %s6008_s11 = scalar_lea.hbm %s10717_s10, %s9361_s17 }
  0x33   : > { %v549_v2 = vunpack.c.l.b16 %v6154_v0  ;;  %v550_v3 = vunpack.c.h.b16 %v6154_v0  ;;  %v669_v4 = vunpack.c.l.b16 %v466_v1  ;;  %v670_v5 = vunpack.c.h.b16 %v466_v1  ;;  %v6201_v6 = vld [vmem:[%s10708_s1 + $0x98] sm:$0xf]  ;;  %v8357_v7 = vld [vmem:[%s10708_s1 + $0x9c] sm:$0xf0]  ;;  %v8356_v12 = vld [vmem:[%s10708_s1 + $0x9c] sm:$0xf] }
  0x34   : > { %s9463_s6 = scalar_select %p444_p13, %s9361_s17, 1  ;;  %v6203_v13 = vld [vmem:[%s10708_s1 + $0xa0] sm:$0xf0]  ;;  %v6247_v14 = vld [vmem:[%s10708_s1 + $0x40] sm:$0xf]  ;;  %v6202_v22 = vor.u32 %v8357_v7, %v6201_v6  ;;  %vm573_vm2 = vcmask 719872  }
  0x35   : > { %v561_v8 = vpack.c.b16 %v549_v2, %v549_v2  ;;  %v562_v9 = vpack.c.b16 %v550_v3, %v550_v3  ;;  %v681_v10 = vpack.c.b16 %v669_v4, %v669_v4  ;;  %v682_v11 = vpack.c.b16 %v670_v5, %v670_v5  ;;  %v8347_v15 = vld [vmem:[%s10708_s1 + $0x44] sm:$0xf0]  ;;  %v8346_v16 = vld [vmem:[%s10708_s1 + $0x44] sm:$0xf]  ;;  %v6249_v17 = vld [vmem:[%s10708_s1 + $0x48] sm:$0xf0] }
  0x36   : > { %v6206_v23 = vor.u32 %v8356_v12, %v6203_v13  ;;  %v6193_v24 = vld [vmem:[%s10708_s1 + $0x88] sm:$0xf]  ;;  %v8355_v25 = vld [vmem:[%s10708_s1 + $0x8c] sm:$0xf0]  ;;  %s8857_s15 = smul.u32 24, %s9463_s6  ;;  %v6248_v26 = vor.u32 %v8347_v15, %v6247_v14  ;;  %v6252_v27 = vor.u32 %v8346_v16, %v6249_v17  ;;  %vm789_vm3 = vcmask 359428  }
  0x37   : > { %v585_v18 = vsel %vm583_vm0, %v561_v8, 0  ;;  %v588_v19 = vsel %vm583_vm0, %v562_v9, 0  ;;  %v700_v20 = vsel %vm583_vm0, %v681_v10, 0  ;;  %v703_v21 = vsel %vm583_vm0, %v682_v11, 0  ;;  %v8354_v28 = vld [vmem:[%s10708_s1 + $0x8c] sm:$0xf]  ;;  %vm9694_vm5 = vmor %vm789_vm3, %vm583_vm0 }
  0x38   : > { %592 = vmatpush.bf16.msra.mxu0 %v585_v18  ;;  %616 = vmatpush.bf16.msra.mxu1 %v588_v19  ;;  %v6195_v29 = vld [vmem:[%s10708_s1 + $0x90] sm:$0xf0]  ;;  %v6239_v30 = vld [vmem:[%s10708_s1 + $0x30] sm:$0xf]  ;;  %v8345_v31 = vld [vmem:[%s10708_s1 + $0x34] sm:$0xf0]  ;;  %v6194_v34 = vor.u32 %v8355_v25, %v6193_v24  ;;  %s9530_s30 = scalar_lea.vmem %s10707_s0, %s8857_s15 }
  0x39   : > { %707 = vmatpush.bf16.msra.mxu2 %v700_v20  ;;  %731 = vmatpush.bf16.msra.mxu3 %v703_v21  ;;  %v8344_v32 = vld [vmem:[%s10708_s1 + $0x34] sm:$0xf]  ;;  %v6241_v33 = vld [vmem:[%s10708_s1 + $0x38] sm:$0xf0]  ;;  %v6198_v35 = vor.u32 %v8354_v28, %v6195_v29  ;;  %v6185_v36 = vld [vmem:[%s10708_s1 + $0x78] sm:$0xf]  ;;  %v6240_v38 = vor.u32 %v8345_v31, %v6239_v30 }
  0x3a   : > { %v8353_v37 = vld [vmem:[%s10708_s1 + $0x7c] sm:$0xf0]  ;;  %v6244_v39 = vor.u32 %v8344_v32, %v6241_v33  ;;  %v8352_v40 = vld [vmem:[%s10708_s1 + $0x7c] sm:$0xf]  ;;  %v6187_v41 = vld [vmem:[%s10708_s1 + $0x80] sm:$0xf0] }
  0x3b   : > { %v6231_v42 = vld [vmem:[%s10708_s1 + $0x20] sm:$0xf]  ;;  %v8343_v43 = vld [vmem:[%s10708_s1 + $0x24] sm:$0xf0]  ;;  %v8342_v44 = vld [vmem:[%s10708_s1 + $0x24] sm:$0xf]  ;;  %v6186_v48 = vor.u32 %v8353_v37, %v6185_v36  ;;  %v6190_v49 = vor.u32 %v8352_v40, %v6187_v41 }
  0x3c   : > { %593 = vmatpush.bf16.msra.mxu0 %v6202_v22  ;;  %617 = vmatpush.bf16.msra.mxu1 %v6206_v23  ;;  %v6233_v45 = vld [vmem:[%s10708_s1 + $0x28] sm:$0xf0]  ;;  %v6177_v46 = vld [vmem:[%s10708_s1 + $0x68] sm:$0xf]  ;;  %v8351_v47 = vld [vmem:[%s10708_s1 + $0x6c] sm:$0xf0]  ;;  %v6232_v53 = vor.u32 %v8343_v43, %v6231_v42 }
  0x3d   : > { %708 = vmatpush.bf16.msra.mxu2 %v6248_v26  ;;  %732 = vmatpush.bf16.msra.mxu3 %v6252_v27  ;;  %v8350_v50 = vld [vmem:[%s10708_s1 + $0x6c] sm:$0xf]  ;;  %v6179_v51 = vld [vmem:[%s10708_s1 + $0x70] sm:$0xf0]  ;;  %v8335_v52 = vld [vmem:[%s9530_s30] sm:$0xff]  ;;  %v6236_v54 = vor.u32 %v8342_v44, %v6233_v45  ;;  %v6178_v61 = vor.u32 %v8351_v47, %v6177_v46  ;;  %vm1158_vm4 = vcmask 1045504  }
  0x3e   : > { %v6223_v55 = vld [vmem:[%s10708_s1 + $0x10] sm:$0xf]  ;;  %v8341_v56 = vld [vmem:[%s10708_s1 + $0x14] sm:$0xf0]  ;;  %v8336_v57 = vld [vmem:[%s9530_s30 + $0x8] sm:$0xff]  ;;  %v498_v60 = vshll.u32 %v8335_v52, 16  ;;  %v6182_v63 = vor.u32 %v8350_v50, %v6179_v51 }
  0x3f   : > { %v8340_v58 = vld [vmem:[%s10708_s1 + $0x14] sm:$0xf]  ;;  %v6225_v59 = vld [vmem:[%s10708_s1 + $0x18] sm:$0xf0]  ;;  %v6169_v62 = vld [vmem:[%s10708_s1 + $0x58] sm:$0xf]  ;;  %v6224_v4 = vor.u32 %v8341_v56, %v6223_v55 }
  0x40   : > { %594 = vmatpush.bf16.msra.mxu0 %v6194_v34  ;;  %618 = vmatpush.bf16.msra.mxu1 %v6198_v35  ;;  %v8349_v0 = vld [vmem:[%s10708_s1 + $0x5c] sm:$0xf0]  ;;  %v496_v1 = vshrl.u32 %v8335_v52, 16  ;;  %v500_v2 = vrot.slane %v498_v60, 1  ;;  %v503_v3 = vshll.u32 %v8336_v57, 16  ;;  %v6228_v5 = vor.u32 %v8340_v58, %v6225_v59  ;;  %s9283_s18 = smov 120  }
  0x41   : > { %709 = vmatpush.bf16.msra.mxu2 %v6240_v38  ;;  %733 = vmatpush.bf16.msra.mxu3 %v6244_v39  ;;  %v8348_v6 = vld [vmem:[%s10708_s1 + $0x5c] sm:$0xf]  ;;  %v6171_v7 = vld [vmem:[%s10708_s1 + $0x60] sm:$0xf0]  ;;  %v6215_v8 = vld [vmem:[%s10708_s1] sm:$0xf]  ;;  %v6170_v12 = vor.u32 %v8349_v0, %v6169_v62 }
  0x42   : > { %v8339_v9 = vld [vmem:[%s10708_s1 + $0x4] sm:$0xf0]  ;;  %v8338_v10 = vld [vmem:[%s10708_s1 + $0x4] sm:$0xf]  ;;  %v6217_v11 = vld [vmem:[%s10708_s1 + $0x8] sm:$0xf0]  ;;  %v6174_v13 = vor.u32 %v8348_v6, %v6171_v7  ;;  %v501_v14 = vor.u32 %v500_v2, %v496_v1 }
  0x43   : > { %v505_v15 = vrot.slane %v503_v3, 1  ;;  %v6216_v16 = vor.u32 %v8339_v9, %v6215_v8  ;;  %v6220_v17 = vor.u32 %v8338_v10, %v6217_v11  ;;  %vm494_vm1 = vsmask.f32 7424  ;;  %v6165_v19 = vld [vmem:[%s9530_s30 + $0x10] sm:$0xf]  ;;  %s442_s26 = sand.u32 1, %s9263_s14  }
  0x44   : > { %595 = vmatpush.bf16.msra.mxu0 %v6186_v48  ;;  %619 = vmatpush.bf16.msra.mxu1 %v6190_v49  ;;  %v8337_v20 = vld [vmem:[%s9530_s30 + $0x10] sm:$0x30]  ;;  %v507_v22 = vshrl.u32 %v8336_v57, 16  ;;  %v6405_v29 = vld [vmem:[%s10710_s3 + $0x1b0] sm:$0xf]  ;;  %vm796_vm6 = vcmask 1041408  }
  0x45   : > { %710 = vmatpush.bf16.msra.mxu2 %v6232_v53  ;;  %734 = vmatpush.bf16.msra.mxu3 %v6236_v54  ;;  %v506_v18 = vsel %vm494_vm1, %v501_v14, %v505_v15  ;;  %v6166_v21 = vor.u32 %v8337_v20, %v6165_v19  ;;  %v8417_v30 = vld [vmem:[%s10710_s3 + $0x1b8] sm:$0xf0]  ;;  %v8416_v31 = vld [vmem:[%s10710_s3 + $0x1b4] sm:$0xf]  ;;  %v6407_v33 = vld [vmem:[%s10710_s3 + $0x1bc] sm:$0xf0] }
  0x46   : > { %v509_v24 = vor.u32 %v507_v22, %v505_v15  ;;  %v6406_v32 = vor.u32 %v8417_v30, %v6405_v29  ;;  %v6410_v34 = vor.u32 %v8416_v31, %v6407_v33  ;;  %v6393_v35 = vld [vmem:[%s10710_s3 + $0x198] sm:$0xf]  ;;  %v8414_v36 = vld [vmem:[%s10710_s3 + $0x1a0] sm:$0xf0]  ;;  %v8413_v37 = vld [vmem:[%s10710_s3 + $0x19c] sm:$0xf] }
  0x47   : > { %v511_v23 = vshll.u32 %v6166_v21, 16  ;;  %v515_v27 = vshrl.u32 %v6166_v21, 16  ;;  %v6394_v38 = vor.u32 %v8414_v36, %v6393_v35  ;;  %v6395_v39 = vld [vmem:[%s10710_s3 + $0x1a4] sm:$0xf0]  ;;  %v6381_v41 = vld [vmem:[%s10710_s3 + $0x180] sm:$0xf] }
  0x48   : > { %596 = vmatpush.bf16.msra.mxu0 %v6178_v61  ;;  %620 = vmatpush.bf16.msra.mxu1 %v6182_v63  ;;  %v6398_v40 = vor.u32 %v8413_v37, %v6395_v39  ;;  %v8411_v42 = vld [vmem:[%s10710_s3 + $0x188] sm:$0xf0]  ;;  %v8410_v43 = vld [vmem:[%s10710_s3 + $0x184] sm:$0xf]  ;;  %v6383_v45 = vld [vmem:[%s10710_s3 + $0x18c] sm:$0xf0] }
  0x49   : > { %711 = vmatpush.bf16.msra.mxu2 %v6224_v4  ;;  %735 = vmatpush.bf16.msra.mxu3 %v6228_v5  ;;  %v513_v25 = vrot.slane %v511_v23, 1  ;;  %v6382_v44 = vor.u32 %v8411_v42, %v6381_v41  ;;  %v6386_v46 = vor.u32 %v8410_v43, %v6383_v45  ;;  %v6369_v49 = vld [vmem:[%s10710_s3 + $0x168] sm:$0xf]  ;;  %v8408_v50 = vld [vmem:[%s10710_s3 + $0x170] sm:$0xf0]  ;;  %vm799_vm8 = vcmask 357380  }
  0x4a   : > { %v8407_v51 = vld [vmem:[%s10710_s3 + $0x16c] sm:$0xf]  ;;  %v6371_v53 = vld [vmem:[%s10710_s3 + $0x174] sm:$0xf0]  ;;  %v6357_v56 = vld [vmem:[%s10710_s3 + $0x150] sm:$0xf] }
  0x4b   : > { %v514_v26 = vsel %vm494_vm1, %v509_v24, %v513_v25  ;;  %v517_v28 = vor.u32 %v515_v27, %v513_v25  ;;  %v753_v54 = vld [vmem:[#allocation5] sm:$0x3]  ;;  %v6374_v55 = vor.u32 %v8407_v51, %v6371_v53  ;;  %v8404_v58 = vld [vmem:[%s10710_s3 + $0x154] sm:$0xf]  ;;  %v6359_v62 = vld [vmem:[%s10710_s3 + $0x15c] sm:$0xf0] }
  0x4c   : > { %597 = vmatpush.bf16.msra.mxu0 %v6170_v12  ;;  %621 = vmatpush.bf16.msra.mxu1 %v6174_v13  ;;  %v9664_v59 = vperm.slane %v753_v54, 0  ;;  %v9666_v60 = vperm.slane %v753_v54, 1  ;;  %v6362_v1 = vor.u32 %v8404_v58, %v6359_v62  ;;  %v6441_v6 = vld [vmem:[%s10710_s3 + $0x1f8] sm:$0xf]  ;;  %v8426_v7 = vld [vmem:[%s10710_s3 + $0x200] sm:$0x30] }
  0x4d   : > { %712 = vmatpush.bf16.msra.mxu2 %v6216_v16  ;;  %736 = vmatpush.bf16.msra.mxu3 %v6220_v17  ;;  %v6345_v8 = vld [vmem:[%s10710_s3 + $0x138] sm:$0xf]  ;;  %v8402_v9 = vld [vmem:[%s10710_s3 + $0x140] sm:$0xf0]  ;;  %v6442_v10 = vor.u32 %v8426_v7, %v6441_v6  ;;  %v8401_v11 = vld [vmem:[%s10710_s3 + $0x13c] sm:$0xf] }
  0x4e   : > { %v6346_v14 = vor.u32 %v8402_v9, %v6345_v8  ;;  %v6347_v15 = vld [vmem:[%s10710_s3 + $0x144] sm:$0xf0]  ;;  %v8399_v22 = vld [vmem:[%s10710_s3 + $0x128] sm:$0xf0]  ;;  %v6429_v23 = vld [vmem:[%s10710_s3 + $0x1e0] sm:$0xf] }
  0x4f   : > { %6207 = vmatmul.msk.bf16.vlgmr.msra.gmra.mxu0 %vm573_vm2, %v506_v18  ;;  %6210 = vmatmul.msk.bf16.vlgmr.msra.gmra.mxu1 %vm573_vm2, %v506_v18  ;;  %v1160_v16 = vsel %vm1158_vm4, %v6442_v10, 0  ;;  %v6350_v17 = vor.u32 %v8401_v11, %v6347_v15  ;;  %v8398_v27 = vld [vmem:[%s10710_s3 + $0x124] sm:$0xf]  ;;  %v6321_v37 = vld [vmem:[%s10710_s3 + $0x108] sm:$0xf]  ;;  %vm1148_vm12 = vcmask 359424  }
  0x50   : > { %6253 = vmatmul.msk.bf16.vlgmr.msra.gmra.mxu2 %vm573_vm2, %v8335_v52  ;;  %6256 = vmatmul.msk.bf16.vlgmr.msra.gmra.mxu3 %vm573_vm2, %v8335_v52  ;;  %v6370_v52 = vor.u32 %v8408_v50, %v6369_v49  ;;  %v6417_v39 = vld [vmem:[%s10710_s3 + $0x1c8] sm:$0xf]  ;;  %v8420_v43 = vld [vmem:[%s10710_s3 + $0x1d0] sm:$0xf0]  ;;  %v6323_v45 = vld [vmem:[%s10710_s3 + $0x114] sm:$0xf0] }
  0x51   : > { %1168 = vmatpush.bf16.msrb.mxu0 %v6406_v32  ;;  %8849 = vmatpush.bf16.msrb.mxu3 %v6406_v32  ;;  %v6389_v6 = vld [vmem:[%s10710_s3 + $0x188] sm:$0xf]  ;;  %v8412_v7 = vld [vmem:[%s10710_s3 + $0x190] sm:$0xf0]  ;;  %vm797_vm7 = vsmask.f32 1280 }
  0x52   : > { %1216 = vmatpush.bf16.msrb.mxu2 %v6410_v34  ;;  %1197 = vmatpush.bf16.msrb.mxu1 %v1160_v16  ;;  %vm800_vm9 = vsmask.f32 5376  ;;  %vm9838_vm10 = vmand %vm796_vm6, %vm797_vm7  ;;  %vm1741_vm14 = vcmask 1046528   ;;  %vm1681_vm15 = vcmask 654336   ;;  %vm1941_vm3 = vcmask 1044480   ;;  %s443_s19 = scalar_lea.vmem [#allocation16], %s442_s26 }
  0x53   : > { %vm9853_vm11 = vmand %vm799_vm8, %vm800_vm9  ;;  %s6010_s12 = sshll.u32 %s443_s19, 4  ;;  %s6012_s4 = sshll.u32 %s6008_s11, 4  ;;  %s6011_s12 = int_to_ptr.vmem [resolvable:$true] %s6010_s12  ;;  %s6013_s4 = int_to_ptr.hbm [resolvable:$true] %s6012_s4 }
  0x54   : > { %vm802_vm13 = vmor %vm9853_vm11, %vm9838_vm10  ;;  %s6000_s30 = scalar_lea.sflag [#allocation7], %s442_s26  ;;  %s9207_s15 = sshra.s32 %s6013_s4, 4  ;;  %s9208_s15 = int_to_ptr.hbm [resolvable:$true] %s9207_s15 }
  0x55   : > { %1169 = vmatpush.bf16.msrb.mxu0 %v6394_v38  ;;  %8850 = vmatpush.bf16.msrb.mxu3 %v6394_v38  ;;  %v8396_v38 = vld [vmem:[%s10710_s3 + $0x110] sm:$0xf0]  ;;  %s9209_s22 = scalar_lea.hbm %s9208_s15, 1  ;;  %s9213_s25 = scalar_lea.hbm %s10717_s10, 2 }
  0x56   : > { %1217 = vmatpush.bf16.msrb.mxu2 %v6398_v40  ;;  %v6322_v42 = vor.u32 %v8396_v38, %v6321_v37  ;;  %p9210_p0 = scmp.ne.s32.totalorder %s9208_s15, %s9209_s22  ;;  %p9214_p3 = scmp.lt.s32.totalorder %s9208_s15, %s10717_s10 }
  0x57   : > { %p9215_p4 = scmp.lt.s32.totalorder %s9213_s25, %s9209_s22 }
  0x58   : > { %p9211_p1 = pnand %p9210_p0, %p9378_p5 }
  0x59   : > { %1170 = vmatpush.bf16.msrb.mxu0 %v6382_v44  ;;  %8851 = vmatpush.bf16.msrb.mxu3 %v6382_v44  ;;  %v8395_v44 = vld [vmem:[%s10710_s3 + $0x10c] sm:$0xf]  ;;  %p9216_p7 = por %p9215_p4, %p9214_p3 }
  0x5a   : > { %1218 = vmatpush.bf16.msrb.mxu2 %v6386_v46  ;;  %v6418_v46 = vor.u32 %v8420_v43, %v6417_v39  ;;  %v6365_v39 = vld [vmem:[%s10710_s3 + $0x158] sm:$0xf]  ;;  %p9212_p2 = pneg %p9211_p1 }
  0x5c   : > { %p9217_p8 = pnand %p9216_p7, %p9212_p2 }
  0x5d   : > { %1171 = vmatpush.bf16.msrb.mxu0 %v6370_v52  ;;  %8852 = vmatpush.bf16.msrb.mxu3 %v6370_v52 }
  0x5e   : > { %1219 = vmatpush.bf16.msrb.mxu2 %v6374_v55  ;;  %v6413_v55 = vld [vmem:[%s10710_s3 + $0x1b8] sm:$0xf] }
  0x5f   : > { %6208 = vmatmul.msk.bf16.gmra.mxu0 %vm573_vm2, %v514_v26  ;;  %6211 = vmatmul.msk.bf16.gmra.mxu1 %vm573_vm2, %v514_v26  ;;  %v8423_v26 = vld [vmem:[%s10710_s3 + $0x1e8] sm:$0xf0] }
  0x60   : > { %6254 = vmatmul.msk.bf16.gmra.mxu2 %vm573_vm2, %v8336_v57  ;;  %6257 = vmatmul.msk.bf16.gmra.mxu3 %vm573_vm2, %v8336_v57  ;;  %v8405_v57 = vld [vmem:[%s10710_s3 + $0x158] sm:$0xf0]  ;;  %v6430_v31 = vor.u32 %v8423_v26, %v6429_v23 }
  0x61   : > { %v6358_v61 = vor.u32 %v8405_v57, %v6357_v56  ;;  %v8418_v56 = vld [vmem:[%s10710_s3 + $0x1c0] sm:$0xf0]  ;;  %v8409_v23 = vld [vmem:[%s10710_s3 + $0x178] sm:$0xf0] }
  0x62   : > { %1220 = vmatpush.bf16.msrb.mxu2 %v6362_v1  ;;  %1198 = vmatpush.bf16.msrb.mxu1 %v6430_v31  ;;  %v8415_v1 = vld [vmem:[%s10710_s3 + $0x1a8] sm:$0xf0] }
  0x63   : > { %1172 = vmatpush.bf16.msrb.mxu0 %v6358_v61  ;;  %8853 = vmatpush.bf16.msrb.mxu3 %v6358_v61 }
  0x66   : > { %1221 = vmatpush.bf16.msrb.mxu2 %v6350_v17  ;;  %1199 = vmatpush.bf16.msrb.mxu1 %v6418_v46  ;;  %v6390_v17 = vor.u32 %v8412_v7, %v6389_v6  ;;  %v8384_v46 = vld [vmem:[%s10710_s3 + $0xb0] sm:$0xf0]  ;;  %v8422_v6 = vld [vmem:[%s10710_s3 + $0x1e4] sm:$0xf] }
  0x67   : > { %1173 = vmatpush.bf16.msrb.mxu0 %v6346_v14  ;;  %8854 = vmatpush.bf16.msrb.mxu3 %v6346_v14 }
  0x6f   : > { %6209 = vmatmul.msk.bf16.gmra.mxu0 %vm573_vm2, %v517_v28  ;;  %6212 = vmatmul.msk.bf16.gmra.mxu1 %vm573_vm2, %v517_v28  ;;  %v6335_v28 = vld [vmem:[%s10710_s3 + $0x12c] sm:$0xf0] }
  0x70   : > { %6255 = vmatmul.msk.bf16.gmra.mxu2 %vm573_vm2, %v6166_v21  ;;  %6258 = vmatmul.msk.bf16.gmra.mxu3 %vm573_vm2, %v6166_v21  ;;  %v6333_v21 = vld [vmem:[%s10710_s3 + $0x120] sm:$0xf]  ;;  %v6338_v32 = vor.u32 %v8398_v27, %v6335_v28  ;;  %vm1865_vm2 = vcmask 982016  }
  0x71   : > { %v6334_v25 = vor.u32 %v8399_v22, %v6333_v21  ;;  %v6377_v22 = vld [vmem:[%s10710_s3 + $0x170] sm:$0xf] }
  0x72   : > { %1222 = vmatpush.bf16.msrb.mxu2 %v6338_v32 }
  0x73   : > { %1174 = vmatpush.bf16.msrb.mxu0 %v6334_v25  ;;  %8855 = vmatpush.bf16.msrb.mxu3 %v6334_v25 }
  0x77   : > { %1175 = vmatpush.bf16.msrb.mxu0 %v6322_v42  ;;  %8856 = vmatpush.bf16.msrb.mxu3 %v6322_v42 }
  0xcc   : > { %v599_v47 = vpop.f32.mrf.mxu0  ;;  %v623_v48 = vpop.f32.mrf.mxu1 }
  0xd3   : > { %v714_v63 = vpop.f32.mrf.mxu2  ;;  %v738_v0 = vpop.f32.mrf.mxu3 }
  0xd4   : > { %v715_v2 = vadd.f32 %v714_v63, %v599_v47  ;;  %v739_v3 = vadd.f32 %v738_v0, %v623_v48  ;;  %v601_v4 = vpop.f32.mrf.mxu0  ;;  %v625_v5 = vpop.f32.mrf.mxu1  ;;  %v6326_v47 = vor.u32 %v8395_v44, %v6323_v45  ;;  %v6414_v63 = vor.u32 %v8418_v56, %v6413_v55  ;;  %v6401_v0 = vld [vmem:[%s10710_s3 + $0x1a0] sm:$0xf] }
  0xd6   : > { %v759_v12 = vadd.f32 %v9664_v59, %v715_v2  ;;  %v760_v13 = vadd.f32 %v9666_v60, %v739_v3  ;;  %1223 = vmatpush.bf16.msrb.mxu2 %v6326_v47  ;;  %1264 = vmatpush.bf16.msra.mxu0 %v6414_v63  ;;  %v8400_v63 = vld [vmem:[%s10710_s3 + $0x130] sm:$0xf0] }
  0xd8   : > { %v771_v18 = vmax.f32 %v759_v12, 0.0  ;;  %v772_v19 = vmax.f32 %v760_v13, 0.0 }
  0xda   : > { %v783_v24 = vpack.c.bf16 %v772_v19, %v771_v18 }
  0xdb   : > { %v716_v29 = vpop.f32.mrf.mxu2  ;;  %v740_v30 = vpop.f32.mrf.mxu3 }
  0xdc   : > { %791 = vst.msk [vmem:[#allocation2] sm:$0xff] %vm9694_vm5, %v783_v24  ;;  %v717_v33 = vadd.f32 %v716_v29, %v601_v4  ;;  %v741_v34 = vadd.f32 %v740_v30, %v625_v5  ;;  %v604_v35 = vpop.f32.mrf.mxu0  ;;  %v628_v36 = vpop.f32.mrf.mxu1  ;;  %v6402_v4 = vor.u32 %v8415_v1, %v6401_v0  ;;  %v6378_v29 = vor.u32 %v8409_v23, %v6377_v22  ;;  %v6329_v23 = vld [vmem:[%s10710_s3 + $0x110] sm:$0xf] }
  0xde   : > { %v761_v40 = vadd.f32 %v9664_v59, %v717_v33  ;;  %v762_v41 = vadd.f32 %v9666_v60, %v741_v34  ;;  %1265 = vmatpush.bf16.msra.mxu0 %v6402_v4  ;;  %v6522_v4 = vld [vmem:[%s10710_s3 + $0x78] sm:$0xf] }
  0xe0   : > { %v773_v48 = vmax.f32 %v761_v40, 0.0  ;;  %v774_v49 = vmax.f32 %v762_v41, 0.0  ;;  %v8406_v40 = vld [vmem:[%s10710_s3 + $0x160] sm:$0xf0]  ;;  %v6546_v41 = vld [vmem:[%s10710_s3 + $0xa8] sm:$0xf] }
  0xe1   : > { %v6366_v45 = vor.u32 %v8406_v40, %v6365_v39  ;;  %v6547_v47 = vor.u32 %v8384_v46, %v6546_v41  ;;  %v6498_v46 = vld [vmem:[%s10710_s3 + $0x48] sm:$0xf] }
  0xe2   : > { %v784_v50 = vpack.c.bf16 %v774_v49, %v773_v48  ;;  %1266 = vmatpush.bf16.msra.mxu0 %v6390_v17  ;;  %v6353_v48 = vld [vmem:[%s10710_s3 + $0x140] sm:$0xf]  ;;  %v8403_v49 = vld [vmem:[%s10710_s3 + $0x148] sm:$0xf0] }
  0xe3   : > { %v719_v51 = vpop.f32.mrf.mxu2  ;;  %v743_v52 = vpop.f32.mrf.mxu3  ;;  %v6305_v10 = vld [vmem:[#allocation2] sm:$0xf]  ;;  %v8358_v16 = vld [vmem:[#allocation2 + $0x4] sm:$0xf]  ;;  %1509 = vmatpush.bf16.msra.mxu2 %v6547_v47  ;;  %v8372_v47 = vld [vmem:[%s10710_s3 + $0x50] sm:$0xf0] }
  0xe4   : > { %792 = vst.msk [vmem:[#allocation2 + $0x8] sm:$0xff] %vm9694_vm5, %v784_v50  ;;  %v720_v53 = vadd.f32 %v719_v51, %v604_v35  ;;  %v744_v54 = vadd.f32 %v743_v52, %v628_v36  ;;  %v606_v61 = vpop.f32.mrf.mxu0  ;;  %v630_v62 = vpop.f32.mrf.mxu1  ;;  %v6534_v50 = vld [vmem:[%s10710_s3 + $0x90] sm:$0xf] }
  0xe6   : > { %v763_v57 = vadd.f32 %v9664_v59, %v720_v53  ;;  %v764_v58 = vadd.f32 %v9666_v60, %v744_v54  ;;  %1267 = vmatpush.bf16.msra.mxu0 %v6378_v29  ;;  %v8381_v53 = vld [vmem:[%s10710_s3 + $0x98] sm:$0xf0] }
  0xe7   : > { %v8425_v54 = vld [vmem:[%s10710_s3 + $0x1fc] sm:$0xf] }
  0xe8   : > { %v775_v2 = vmax.f32 %v763_v57, 0.0  ;;  %v776_v3 = vmax.f32 %v764_v58, 0.0  ;;  %v6354_v57 = vor.u32 %v8403_v49, %v6353_v48  ;;  %v6535_v58 = vor.u32 %v8381_v53, %v6534_v50  ;;  %v6449_v49 = vld [vmem:[%s10710_s3 + $0x200] sm:$0xf]  ;;  %v8427_v50 = vld [vmem:[%s10710_s3 + $0x208] sm:$0x30] }
  0xe9   : > { %v6499_v48 = vor.u32 %v8372_v47, %v6498_v46  ;;  %v8369_v53 = vld [vmem:[%s10710_s3 + $0x38] sm:$0xf0]  ;;  %v6554_v46 = vld [vmem:[%s10710_s3 + $0xb0] sm:$0xf] }
  0xea   : > { %v785_v5 = vpack.c.bf16 %v776_v3, %v775_v2  ;;  %1268 = vmatpush.bf16.msra.mxu0 %v6366_v45  ;;  %1510 = vmatpush.bf16.msra.mxu2 %v6535_v58 }
  0xeb   : > { %v721_v8 = vpop.f32.mrf.mxu2  ;;  %v745_v9 = vpop.f32.mrf.mxu3  ;;  %v8359_v11 = vld [vmem:[#allocation2 + $0x4] sm:$0xf0]  ;;  %v6307_v12 = vld [vmem:[#allocation2 + $0x8] sm:$0xf0] }
  0xec   : > { %793 = vst.msk [vmem:[#allocation2 + $0x10] sm:$0xff] %vm9694_vm5, %v785_v5  ;;  %v722_v13 = vadd.f32 %v721_v8, %v606_v61  ;;  %v746_v14 = vadd.f32 %v745_v9, %v630_v62  ;;  %v9762_v15 = vor.u32 %v8359_v11, %v6305_v10  ;;  %v9766_v21 = vor.u32 %v8358_v16, %v6307_v12  ;;  %v609_v26 = vpop.f32.mrf.mxu0  ;;  %v633_v27 = vpop.f32.mrf.mxu1  ;;  %v6443_v61 = vld [vmem:[%s10710_s3 + $0x204] sm:$0x30]  ;;  %v8378_v5 = vld [vmem:[%s10710_s3 + $0x80] sm:$0xf0] }
  0xed   : > { %v6341_v62 = vld [vmem:[%s10710_s3 + $0x128] sm:$0xf]  ;;  %v6446_v3 = vor.u32 %v8425_v54, %v6443_v61  ;;  %v6431_v11 = vld [vmem:[%s10710_s3 + $0x1ec] sm:$0xf0]  ;;  %v6523_v22 = vor.u32 %v8378_v5, %v6522_v4  ;;  %v6474_v61 = vld [vmem:[%s10710_s3 + $0x18] sm:$0xf] }
  0xee   : > { %v765_v18 = vadd.f32 %v9664_v59, %v722_v13  ;;  %v766_v19 = vadd.f32 %v9666_v60, %v746_v14  ;;  %v929_v28 = vshll.u32 %v9762_v15, 16  ;;  %v941_v31 = vshll.u32 %v9766_v21, 16  ;;  %1269 = vmatpush.bf16.msra.mxu0 %v6354_v57  ;;  %v6437_v54 = vld [vmem:[%s10710_s3 + $0x1e8] sm:$0xf] }
  0xef   : > { %v927_v34 = vshrl.u32 %v9762_v15, 16  ;;  %v939_v38 = vshrl.u32 %v9766_v21, 16  ;;  %v6434_v20 = vor.u32 %v8422_v6, %v6431_v11  ;;  %1511 = vmatpush.bf16.msra.mxu2 %v6523_v22 }
  0xf0   : > { %v777_v24 = vmax.f32 %v765_v18, 0.0  ;;  %v778_v25 = vmax.f32 %v766_v19, 0.0  ;;  %v931_v37 = vrot.slane %v929_v28, 1  ;;  %v943_v44 = vrot.slane %v941_v31, 1 }
  0xf1   : > { %v1163_v18 = vsel %vm1158_vm4, %v6446_v3, 0  ;;  %v6342_v19 = vor.u32 %v8400_v63, %v6341_v62  ;;  %v8366_v62 = vld [vmem:[%s10710_s3 + $0x20] sm:$0xf0]  ;;  %v8421_v3 = vld [vmem:[%s10710_s3 + $0x1d8] sm:$0xf0] }
  0xf2   : > { %v786_v30 = vpack.c.bf16 %v778_v25, %v777_v24  ;;  %v8397_v24 = vld [vmem:[%s10710_s3 + $0x118] sm:$0xf0]  ;;  %1245 = vmatpush.bf16.msra.mxu3 %v1163_v18  ;;  %v944_v31 = vor.u32 %v943_v44, %v939_v38 }
  0xf3   : > { %v724_v32 = vpop.f32.mrf.mxu2  ;;  %v748_v33 = vpop.f32.mrf.mxu3  ;;  %v6313_v55 = vld [vmem:[#allocation2 + $0x10] sm:$0xf]  ;;  %v8360_v56 = vld [vmem:[#allocation2 + $0x14] sm:$0xf]  ;;  %1270 = vmatpush.bf16.msra.mxu0 %v6342_v19 }
  0xf4   : > { %794 = vst.msk [vmem:[#allocation2 + $0x18] sm:$0xff] %vm9694_vm5, %v786_v30  ;;  %v725_v35 = vadd.f32 %v724_v32, %v609_v26  ;;  %v749_v36 = vadd.f32 %v748_v33, %v633_v27  ;;  %v611_v1 = vpop.f32.mrf.mxu0  ;;  %v635_v2 = vpop.f32.mrf.mxu1  ;;  %v6510_v30 = vld [vmem:[%s10710_s3 + $0x60] sm:$0xf]  ;;  %v8419_v32 = vld [vmem:[%s10710_s3 + $0x1cc] sm:$0xf] }
  0xf5   : > { %v6419_v33 = vld [vmem:[%s10710_s3 + $0x1d4] sm:$0xf0] }
  0xf6   : > { %v767_v42 = vadd.f32 %v9664_v59, %v725_v35  ;;  %v768_v43 = vadd.f32 %v9666_v60, %v749_v36  ;;  %1246 = vmatpush.bf16.msra.mxu3 %v6434_v20  ;;  %v6422_v44 = vor.u32 %v8419_v32, %v6419_v33  ;;  %v6536_v32 = vld [vmem:[%s10710_s3 + $0x9c] sm:$0xf0] }
  0xf8   : > { %v779_v51 = vmax.f32 %v767_v42, 0.0  ;;  %v780_v52 = vmax.f32 %v768_v43, 0.0 }
  0xfa   : > { %v787_v0 = vpack.c.bf16 %v780_v52, %v779_v51  ;;  %1247 = vmatpush.bf16.msra.mxu3 %v6422_v44  ;;  %v6486_v51 = vld [vmem:[%s10710_s3 + $0x30] sm:$0xf]  ;;  %v6450_v52 = vor.u32 %v8427_v50, %v6449_v49  ;;  %v8371_v44 = vld [vmem:[%s10710_s3 + $0x4c] sm:$0xf] }
  0xfb   : > { %v726_v7 = vpop.f32.mrf.mxu2  ;;  %v750_v8 = vpop.f32.mrf.mxu3  ;;  %v8361_v9 = vld [vmem:[#allocation2 + $0x14] sm:$0xf0]  ;;  %v6315_v10 = vld [vmem:[#allocation2 + $0x18] sm:$0xf0]  ;;  %v6487_v57 = vor.u32 %v8369_v53, %v6486_v51  ;;  %v6582_v50 = vld [vmem:[%s10710_s3 + $0xf0] sm:$0xf] }
  0xfc   : > { %795 = vst.msk [vmem:[#allocation2 + $0x20] sm:$0xff] %vm9694_vm5, %v787_v0  ;;  %v727_v12 = vadd.f32 %v726_v7, %v611_v1  ;;  %v751_v13 = vadd.f32 %v750_v8, %v635_v2  ;;  %v9832_v14 = vor.u32 %v8361_v9, %v6313_v55  ;;  %v9834_v16 = vor.u32 %v8360_v56, %v6315_v10  ;;  %v8424_v55 = vld [vmem:[%s10710_s3 + $0x1f0] sm:$0xf0]  ;;  %v6425_v2 = vld [vmem:[%s10710_s3 + $0x1d0] sm:$0xf] }
  0xfd   : > { %v1166_v58 = vsel %vm1158_vm4, %v6450_v52, 0  ;;  %v6438_v63 = vor.u32 %v8424_v55, %v6437_v54  ;;  %v6475_v7 = vor.u32 %v8366_v62, %v6474_v61  ;;  %v6462_v8 = vld [vmem:[%s10710_s3] sm:$0xf]  ;;  %v8363_v9 = vld [vmem:[%s10710_s3 + $0x8] sm:$0xf0]  ;;  %vm4637_vm5 = vcmask 588800  }
  0xfe   : > { %v769_v25 = vadd.f32 %v9664_v59, %v727_v12  ;;  %v770_v26 = vadd.f32 %v9666_v60, %v751_v13  ;;  %v934_v28 = vshll.u32 %v9832_v14, 16  ;;  %v946_v29 = vshll.u32 %v9834_v16, 16  ;;  %v8375_v59 = vld [vmem:[%s10710_s3 + $0x68] sm:$0xf0]  ;;  %1293 = vmatpush.bf16.msra.mxu1 %v1166_v58  ;;  %v8393_v51 = vld [vmem:[%s10710_s3 + $0xf8] sm:$0x30] }
  0xff   : > { %v932_v60 = vor.u32 %v931_v37, %v927_v34  ;;  %v803_v34 = vld [vmem:[#allocation2 + $0x28] sm:$0x33]  ;;  %v6330_v37 = vor.u32 %v8397_v24, %v6329_v23  ;;  %v6511_v38 = vor.u32 %v8375_v59, %v6510_v30  ;;  %v6426_v12 = vor.u32 %v8421_v3, %v6425_v2  ;;  %v6548_v59 = vld [vmem:[%s10710_s3 + $0xb4] sm:$0xf0]  ;;  %v6488_v53 = vld [vmem:[%s10710_s3 + $0x3c] sm:$0xf0] }
 0x100   : > { %v781_v35 = vmax.f32 %v769_v25, 0.0  ;;  %v782_v36 = vmax.f32 %v770_v26, 0.0  ;;  %v936_v39 = vrot.slane %v934_v28, 1  ;;  %v948_v40 = vrot.slane %v946_v29, 1  ;;  %v8383_v30 = vld [vmem:[%s10710_s3 + $0xac] sm:$0xf] }
 0x101   : > { %1271 = vmatpush.bf16.msra.mxu0 %v6330_v37  ;;  %1512 = vmatpush.bf16.msra.mxu2 %v6511_v38  ;;  %v950_v13 = vshrl.u32 %v9832_v14, 16  ;;  %v958_v18 = vshrl.u32 %v9834_v16, 16  ;;  %v6463_v22 = vor.u32 %v8363_v9, %v6462_v8  ;;  %v6583_v52 = vor.u32 %v8393_v51, %v6582_v50  ;;  %v6542_v54 = vld [vmem:[%s10710_s3 + $0x98] sm:$0xf]  ;;  %v8382_v55 = vld [vmem:[%s10710_s3 + $0xa0] sm:$0xf0] }
 0x102   : > { %v788_v41 = vpack.c.bf16 %v782_v36, %v781_v35  ;;  %v9878_v42 = vsel %vm494_vm1, %v932_v60, %v936_v39  ;;  %v9881_v43 = vsel %vm494_vm1, %v944_v31, %v948_v40  ;;  %1294 = vmatpush.bf16.msra.mxu1 %v6438_v63  ;;  %v6551_v60 = vor.u32 %v8383_v30, %v6548_v59  ;;  %v8380_v31 = vld [vmem:[%s10710_s3 + $0x94] sm:$0xf]  ;;  %v8377_v35 = vld [vmem:[%s10710_s3 + $0x7c] sm:$0xf]  ;;  %v6524_v36 = vld [vmem:[%s10710_s3 + $0x84] sm:$0xf0] }
 0x103   : > { %1176 = vmatmul.bf16.vlgmr.msrb.gmra.mxu0 %v9878_v42  ;;  %6451 = vmatmul.msk.bf16.vlgmr.msrb.gmra.mxu1 %vm1148_vm12, %v9881_v43  ;;  %v9911_v56 = vld [vmem:[#allocation2 + $0x20] sm:$0xff]  ;;  %v952_v20 = vor.u32 %v950_v13, %v936_v39  ;;  %v960_v24 = vor.u32 %v958_v18, %v948_v40  ;;  %v6539_v33 = vor.u32 %v8380_v31, %v6536_v32  ;;  %v8365_v61 = vld [vmem:[%s10710_s3 + $0x1c] sm:$0xf]  ;;  %v6476_v62 = vld [vmem:[%s10710_s3 + $0x24] sm:$0xf0] }
 0x104   : > { %v804_v45 = vsel %vm802_vm13, %v788_v41, %v803_v34  ;;  %1224 = vmatmul.bf16.vlgmr.msrb.gmra.mxu2 %v9878_v42  ;;  %v916_v1 = vunpack.c.l.b16 %v9911_v56  ;;  %v917_v5 = vunpack.c.h.b16 %v9911_v56  ;;  %v6527_v39 = vor.u32 %v8377_v35, %v6524_v36  ;;  %v8374_v40 = vld [vmem:[%s10710_s3 + $0x64] sm:$0xf]  ;;  %v6512_v34 = vld [vmem:[%s10710_s3 + $0x6c] sm:$0xf0]  ;;  %v6530_v63 = vld [vmem:[%s10710_s3 + $0x80] sm:$0xf] }
 0x105   : > { %805 = vst [vmem:[#allocation2 + $0x28] sm:$0x33] %v804_v45  ;;  %1513 = vmatpush.bf16.msra.mxu2 %v6499_v48  ;;  %1557 = vmatpush.bf16.msrb.mxu0 %v6551_v60  ;;  %v6515_v37 = vor.u32 %v8374_v40, %v6512_v34  ;;  %v6500_v45 = vld [vmem:[%s10710_s3 + $0x54] sm:$0xf0]  ;;  %v8385_v48 = vld [vmem:[%s10710_s3 + $0xb8] sm:$0xf0]  ;;  %v6543_v58 = vor.u32 %v8382_v55, %v6542_v54 }
 0x106   : > { %1295 = vmatpush.bf16.msra.mxu1 %v6426_v12  ;;  %v6503_v47 = vor.u32 %v8371_v44, %v6500_v45  ;;  %v6555_v49 = vor.u32 %v8385_v48, %v6554_v46  ;;  %v8379_v2 = vld [vmem:[%s10710_s3 + $0x88] sm:$0xf0]  ;;  %v6570_v3 = vld [vmem:[%s10710_s3 + $0xd8] sm:$0xf]  ;;  %v6558_v8 = vld [vmem:[%s10710_s3 + $0xc0] sm:$0xf] }
 0x107   : > { %v6531_v9 = vor.u32 %v8379_v2, %v6530_v63  ;;  %v8387_v12 = vld [vmem:[%s10710_s3 + $0xc8] sm:$0xf0]  ;;  %v6518_v13 = vld [vmem:[%s10710_s3 + $0x68] sm:$0xf]  ;;  %v8389_v59 = vld [vmem:[%s10710_s3 + $0xdc] sm:$0xf] }
 0x108   : > { %v6559_v18 = vor.u32 %v8387_v12, %v6558_v8  ;;  %v6572_v60 = vld [vmem:[%s10710_s3 + $0xe4] sm:$0xf0]  ;;  %v8367_v35 = vld [vmem:[%s10710_s3 + $0x28] sm:$0xf0]  ;;  %v6560_v40 = vld [vmem:[%s10710_s3 + $0xcc] sm:$0xf0] }
 0x109   : > { %1514 = vmatpush.bf16.msra.mxu2 %v6487_v57  ;;  %1558 = vmatpush.bf16.msrb.mxu0 %v6539_v33  ;;  %v6482_v33 = vld [vmem:[%s10710_s3 + $0x20] sm:$0xf]  ;;  %v6575_v36 = vor.u32 %v8389_v59, %v6572_v60  ;;  %v8391_v50 = vld [vmem:[%s10710_s3 + $0xe8] sm:$0xf0] }
 0x10a   : > { %v6483_v34 = vor.u32 %v8367_v35, %v6482_v33 }
 0x10c   : > { %v856_v0 = vld [vmem:[#allocation2 + $0x28] sm:$0x33] }
 0x10d   : > { %v918_v4 = vunpack.c.l.b16 %v856_v0  ;;  %v919_v6 = vunpack.c.h.b16 %v856_v0  ;;  %1515 = vmatpush.bf16.msra.mxu2 %v6475_v7  ;;  %1559 = vmatpush.bf16.msrb.mxu0 %v6527_v39  ;;  %v1501_v0 = vsel %vm1158_vm4, %v6583_v52, 0  ;;  %v8386_v39 = vld [vmem:[%s10710_s3 + $0xc4] sm:$0xf]  ;;  %v811_v46 = vld [vmem:[#allocation2 + $0x28] sm:$0x11] }
 0x10e   : > { %v6563_v44 = vor.u32 %v8386_v39, %v6560_v40  ;;  %v8388_v52 = vld [vmem:[%s10710_s3 + $0xd0] sm:$0xf0]  ;;  %v1314_v54 = vunpack.c.h.b16 %v811_v46 }
 0x10f   : > { %v924_v10 = vpack.c.b16 %v918_v4, %v916_v1  ;;  %v925_v11 = vpack.c.b16 %v919_v6, %v917_v5  ;;  %v8390_v4 = vld [vmem:[%s10710_s3 + $0xe0] sm:$0xf0]  ;;  %v6479_v6 = vor.u32 %v8365_v61, %v6476_v62 }
 0x110   : > { %v6571_v7 = vor.u32 %v8390_v4, %v6570_v3  ;;  %v1316_v55 = vpack.c.b16 %v1314_v54, %v917_v5 }
 0x111   : > { %v954_v17 = vshll.u32 %v924_v10, 16  ;;  %v962_v19 = vshll.u32 %v925_v11, 16  ;;  %v966_v26 = vshrl.u32 %v924_v10, 16  ;;  %1516 = vmatpush.bf16.msra.mxu2 %v6463_v22  ;;  %v969_v38 = vshrl.u32 %v925_v11, 16  ;;  %1560 = vmatpush.bf16.msrb.mxu0 %v6515_v37  ;;  %v8362_v10 = vld [vmem:[%s10710_s3 + $0x4] sm:$0xf] }
 0x112   : > { %v6464_v11 = vld [vmem:[%s10710_s3 + $0xc] sm:$0xf0]  ;;  %v6470_v37 = vld [vmem:[%s10710_s3 + $0x8] sm:$0xf] }
 0x113   : > { %v956_v23 = vrot.slane %v954_v17, 1  ;;  %v964_v25 = vrot.slane %v962_v19, 1  ;;  %v8376_v17 = vld [vmem:[%s10710_s3 + $0x70] sm:$0xf0]  ;;  %v6467_v19 = vor.u32 %v8362_v10, %v6464_v11 }
 0x114   : > { %v6519_v22 = vor.u32 %v8376_v17, %v6518_v13 }
 0x115   : > { %v9941_v27 = vsel %vm494_vm1, %v952_v20, %v956_v23  ;;  %v9944_v28 = vsel %vm494_vm1, %v960_v24, %v964_v25  ;;  %v9946_v29 = vor.u32 %v966_v26, %v956_v23  ;;  %v9977_v41 = vor.u32 %v969_v38, %v964_v25  ;;  %1561 = vmatpush.bf16.msrb.mxu0 %v6503_v47  ;;  %v6506_v20 = vld [vmem:[%s10710_s3 + $0x50] sm:$0xf]  ;;  %v8373_v23 = vld [vmem:[%s10710_s3 + $0x58] sm:$0xf0]  ;;  %v8392_v25 = vld [vmem:[%s10710_s3 + $0xf4] sm:$0xf] }
 0x116   : > { %1181 = vmatmul.bf16.gmra.mxu0 %v9941_v27  ;;  %6452 = vmatmul.msk.bf16.gmra.mxu1 %vm1148_vm12, %v9944_v28  ;;  %v6507_v24 = vor.u32 %v8373_v23, %v6506_v20  ;;  %v6584_v26 = vld [vmem:[%s10710_s3 + $0xfc] sm:$0x30]  ;;  %v8364_v38 = vld [vmem:[%s10710_s3 + $0x10] sm:$0xf0]  ;;  %v1313_v47 = vunpack.c.l.b16 %v811_v46  ;;  %vm1697_vm1 = vcmask 648192  }
 0x117   : > { %1229 = vmatmul.bf16.gmra.mxu2 %v9941_v27  ;;  %1186 = vmatmul.bf16.vlgmr.msrb.gmra.mxu3 %v9946_v29  ;;  %v6587_v30 = vor.u32 %v8392_v25, %v6584_v26  ;;  %v6471_v45 = vor.u32 %v8364_v38, %v6470_v37  ;;  %v10195_v37 = vld [vmem:[#allocation8] sm:$0x7] }
 0x118   : > { %1605 = vmatpush.bf16.msrb.mxu2 %v6555_v49  ;;  %1538 = vmatpush.bf16.msrb.mxu3 %v1501_v0  ;;  %v1315_v48 = vpack.c.b16 %v1313_v47, %v916_v1 }
 0x119   : > { %v1504_v32 = vsel %vm1158_vm4, %v6587_v30, 0 }
 0x11a   : > { %1586 = vmatpush.bf16.msrb.mxu1 %v1504_v32 }
 0x11c   : > { %1606 = vmatpush.bf16.msrb.mxu2 %v6543_v58  ;;  %1539 = vmatpush.bf16.msrb.mxu3 %v6571_v7 }
 0x11e   : > { %1587 = vmatpush.bf16.msrb.mxu1 %v6575_v36 }
 0x120   : > { %1607 = vmatpush.bf16.msrb.mxu2 %v6531_v9  ;;  %1540 = vmatpush.bf16.msrb.mxu3 %v6559_v18 }
 0x122   : > { %1588 = vmatpush.bf16.msrb.mxu1 %v6563_v44  ;;  %v10198_v44 = vperm.slane %v10195_v37, 0 }
 0x124   : > { %1608 = vmatpush.bf16.msrb.mxu2 %v6519_v22 }
 0x126   : > { %6453 = vmatmul.msk.bf16.gmra.mxu1 %vm1148_vm12, %v9977_v41  ;;  %1272 = vmatmul.bf16.vlgmr.msra.gmra.mxu0 %v9878_v42  ;;  %v8368_v42 = vld [vmem:[%s10710_s3 + $0x34] sm:$0xf] }
 0x127   : > { %1234 = vmatmul.bf16.gmra.mxu2 %v9946_v29  ;;  %6454 = vmatmul.msk.bf16.vlgmr.msra.gmra.mxu3 %vm1148_vm12, %v9881_v43  ;;  %v6491_v57 = vor.u32 %v8368_v42, %v6488_v53  ;;  %v6566_v42 = vld [vmem:[%s10710_s3 + $0xc8] sm:$0xf] }
 0x128   : > { %1609 = vmatpush.bf16.msrb.mxu2 %v6507_v24  ;;  %v6567_v53 = vor.u32 %v8388_v52, %v6566_v42  ;;  %v10204_v42 = vperm.slane %v10195_v37, 1 }
 0x129   : > { %1562 = vmatpush.bf16.msrb.mxu0 %v6491_v57 }
 0x12d   : > { %1563 = vmatpush.bf16.msrb.mxu0 %v6479_v6 }
 0x131   : > { %1564 = vmatpush.bf16.msrb.mxu0 %v6467_v19 }
 0x136   : > { %1277 = vmatmul.bf16.gmra.mxu0 %v9941_v27  ;;  %6457 = vmatmul.msk.bf16.vlgmr.msra.gmra.mxu1 %vm1148_vm12, %v9881_v43  ;;  %v6494_v27 = vld [vmem:[%s10710_s3 + $0x38] sm:$0xf]  ;;  %v8370_v43 = vld [vmem:[%s10710_s3 + $0x40] sm:$0xf0] }
 0x137   : > { %1517 = vmatmul.bf16.vlgmr.msra.gmra.mxu2 %v9762_v15  ;;  %6455 = vmatmul.msk.bf16.gmra.mxu3 %vm1148_vm12, %v9944_v28  ;;  %v6495_v31 = vor.u32 %v8370_v43, %v6494_v27 }
 0x139   : > { %1610 = vmatpush.bf16.msrb.mxu2 %v6495_v31 }
 0x13d   : > { %1611 = vmatpush.bf16.msrb.mxu2 %v6483_v34 }
 0x141   : > { %1612 = vmatpush.bf16.msrb.mxu2 %v6471_v45 }
 0x146   : > { %1282 = vmatmul.bf16.gmra.mxu0 %v9946_v29  ;;  %6458 = vmatmul.msk.bf16.gmra.mxu1 %vm1148_vm12, %v9944_v28  ;;  %v6590_v28 = vld [vmem:[%s10710_s3 + $0xf8] sm:$0xf]  ;;  %v8394_v29 = vld [vmem:[%s10710_s3 + $0x100] sm:$0x30] }
 0x147   : > { %1522 = vmatmul.bf16.gmra.mxu2 %v9832_v14  ;;  %6456 = vmatmul.msk.bf16.gmra.mxu3 %vm1148_vm12, %v9977_v41  ;;  %v6591_v49 = vor.u32 %v8394_v29, %v6590_v28 }
 0x149   : > { %v1507_v1 = vsel %vm1158_vm4, %v6591_v49, 0  ;;  %vm1934_vm4 = vcmask 334848  }
 0x14a   : > { %1634 = vmatpush.bf16.msra.mxu3 %v1507_v1 }
 0x156   : > { %6459 = vmatmul.msk.bf16.gmra.mxu1 %vm1148_vm12, %v9977_v41  ;;  %1565 = vmatmul.bf16.vlgmr.msrb.gmra.mxu0 %v9762_v15  ;;  %v6578_v41 = vld [vmem:[%s10710_s3 + $0xe0] sm:$0xf] }
 0x157   : > { %1527 = vmatmul.bf16.gmra.mxu2 %v1315_v48  ;;  %6592 = vmatmul.msk.bf16.vlgmr.msrb.gmra.mxu3 %vm1148_vm12, %v9766_v21  ;;  %v6579_v51 = vor.u32 %v8391_v50, %v6578_v41 }
 0x159   : > { %1635 = vmatpush.bf16.msra.mxu3 %v6579_v51 }
 0x15d   : > { %1636 = vmatpush.bf16.msra.mxu3 %v6567_v53 }
 0x166   : > { %1570 = vmatmul.bf16.gmra.mxu0 %v9832_v14  ;;  %6595 = vmatmul.msk.bf16.vlgmr.msrb.gmra.mxu1 %vm1148_vm12, %v9766_v21 }
 0x167   : > { %1613 = vmatmul.bf16.vlgmr.msrb.gmra.mxu2 %v9762_v15  ;;  %6593 = vmatmul.msk.bf16.gmra.mxu3 %vm1148_vm12, %v9834_v16 }
 0x176   : > { %1575 = vmatmul.bf16.gmra.mxu0 %v1315_v48  ;;  %6596 = vmatmul.msk.bf16.gmra.mxu1 %vm1148_vm12, %v9834_v16 }
 0x177   : > { %1618 = vmatmul.bf16.gmra.mxu2 %v9832_v14  ;;  %6594 = vmatmul.msk.bf16.gmra.mxu3 %vm1148_vm12, %v1316_v55 }
 0x180   : > { %v1177_v57 = vpop.f32.mrf.mxu0  ;;  %v1201_v58 = vpop.f32.mrf.mxu1 }
 0x181   : > { %v1202_v61 = vadd.f32 %v1201_v58, %v1177_v57 }
 0x186   : > { %6597 = vmatmul.msk.bf16.gmra.mxu1 %vm1148_vm12, %v1316_v55 }
 0x187   : > { %1623 = vmatmul.bf16.gmra.mxu2 %v1315_v48  ;;  %6598 = vmatmul.msk.bf16.vlgmr.msra.gmra.mxu3 %vm1148_vm12, %v9766_v21  ;;  %v1225_v15 = vpop.f32.mrf.mxu2 }
 0x188   : > { %v1179_v56 = vpop.f32.mrf.mxu0  ;;  %v1203_v5 = vpop.f32.mrf.mxu1 }
 0x189   : > { %v1204_v29 = vadd.f32 %v1203_v5, %v1179_v56 }
 0x18f   : > { %v10148_v62 = vpop.f32.mrf.mxu2 }
 0x193   : > { %v1182_v63 = vpop.f32.mrf.mxu0  ;;  %v1206_v0 = vpop.f32.mrf.mxu1 }
 0x194   : > { %v10150_v2 = vadd.f32 %v1206_v0, %v1182_v63 }
 0x197   : > { %6599 = vmatmul.msk.bf16.gmra.mxu3 %vm1148_vm12, %v9834_v16 }
 0x19a   : > { %v10154_v14 = vpop.f32.mrf.mxu2  ;;  %v1187_v3 = vpop.f32.mrf.mxu3 }
 0x19b   : > { %v10156_v4 = vpop.f32.mrf.mxu0  ;;  %v10158_v6 = vpop.f32.mrf.mxu1 }
 0x1a2   : > { %v10160_v21 = vpop.f32.mrf.mxu2  ;;  %v10162_v7 = vpop.f32.mrf.mxu3 }
 0x1a3   : > { %v1211_v8 = vpop.f32.mrf.mxu1  ;;  %v1273_v9 = vpop.f32.mrf.mxu0 }
 0x1a4   : > { %v10164_v10 = vadd.f32 %v1211_v8, %v1187_v3 }
 0x1a7   : > { %6600 = vmatmul.msk.bf16.gmra.mxu3 %vm1148_vm12, %v1316_v55 }
 0x1aa   : > { %v1249_v11 = vpop.f32.mrf.mxu3  ;;  %v10171_v13 = vpop.f32.mrf.mxu2 }
 0x1ab   : > { %v10167_v12 = vpop.f32.mrf.mxu1  ;;  %v10169_v16 = vpop.f32.mrf.mxu0  ;;  %v1250_v1 = vadd.f32 %v1249_v11, %v1225_v15 }
 0x1b2   : > { %v1251_v17 = vpop.f32.mrf.mxu3  ;;  %v10175_v20 = vpop.f32.mrf.mxu2 }
 0x1b3   : > { %v1278_v18 = vpop.f32.mrf.mxu0  ;;  %v1297_v19 = vpop.f32.mrf.mxu1  ;;  %v1252_v15 = vadd.f32 %v1251_v17, %v10148_v62  ;;  %v1209_v62 = vadd.f32 %v10158_v6, %v10156_v4 }
 0x1b4   : > { %v10173_v22 = vadd.f32 %v1297_v19, %v1273_v9 }
 0x1ba   : > { %v1254_v23 = vpop.f32.mrf.mxu3  ;;  %v1518_v26 = vpop.f32.mrf.mxu2 }
 0x1bb   : > { %v10177_v24 = vpop.f32.mrf.mxu0  ;;  %v10179_v25 = vpop.f32.mrf.mxu1  ;;  %v1519_v38 = vadd.f32 %v1518_v26, %v1202_v61 }
 0x1c2   : > { %v10181_v27 = vpop.f32.mrf.mxu3  ;;  %v1520_v60 = vpop.f32.mrf.mxu2 }
 0x1c3   : > { %v1283_v30 = vpop.f32.mrf.mxu0  ;;  %v1302_v43 = vpop.f32.mrf.mxu1  ;;  %v1521_v41 = vadd.f32 %v1520_v60, %v1204_v29  ;;  %v1257_v4 = vadd.f32 %v10181_v27, %v10160_v21 }
 0x1c4   : > { %v10183_v59 = vadd.f32 %v1302_v43, %v1278_v18 }
 0x1ca   : > { %v10185_v31 = vpop.f32.mrf.mxu3  ;;  %v1523_v39 = vpop.f32.mrf.mxu2 }
 0x1cb   : > { %v10187_v32 = vpop.f32.mrf.mxu0  ;;  %v10189_v33 = vpop.f32.mrf.mxu1  ;;  %v1524_v63 = vadd.f32 %v1523_v39, %v10150_v2  ;;  %v1255_v2 = vadd.f32 %v1254_v23, %v10154_v14 }
 0x1d2   : > { %v10191_v35 = vpop.f32.mrf.mxu3  ;;  %v1525_v28 = vpop.f32.mrf.mxu2 }
 0x1d3   : > { %v1307_v36 = vpop.f32.mrf.mxu1  ;;  %v1566_v34 = vpop.f32.mrf.mxu0  ;;  %v1526_v60 = vadd.f32 %v1525_v28, %v1209_v62 }
 0x1d4   : > { %v10193_v40 = vadd.f32 %v1307_v36, %v1283_v30  ;;  %v1567_v50 = vadd.f32 %v1566_v34, %v1250_v1 }
 0x1da   : > { %v1542_v45 = vpop.f32.mrf.mxu3  ;;  %v1528_v5 = vpop.f32.mrf.mxu2 }
 0x1db   : > { %v1543_v46 = vadd.f32 %v1542_v45, %v1519_v38  ;;  %v10200_v47 = vpop.f32.mrf.mxu1  ;;  %v1568_v49 = vpop.f32.mrf.mxu0  ;;  %v1529_v23 = vadd.f32 %v1528_v5, %v10164_v10  ;;  %v1214_v10 = vadd.f32 %v10167_v12, %v10162_v7 }
 0x1dc   : > { %v1569_v8 = vadd.f32 %v1568_v49, %v1252_v15  ;;  %v1260_v15 = vadd.f32 %v10185_v31, %v10171_v13 }
 0x1dd   : > { %v1661_v48 = vadd.f32 %v10198_v44, %v1543_v46 }
 0x1df   : > { %1679 = vst [vmem:[#allocation3] sm:$0xff] %v1661_v48 }
 0x1e2   : > { %v1544_v51 = vpop.f32.mrf.mxu3  ;;  %v1530_v39 = vpop.f32.mrf.mxu2 }
 0x1e3   : > { %v1545_v52 = vadd.f32 %v1544_v51, %v1521_v41  ;;  %v1590_v53 = vpop.f32.mrf.mxu1  ;;  %v1571_v0 = vpop.f32.mrf.mxu0 }
 0x1e4   : > { %v1591_v54 = vadd.f32 %v1590_v53, %v1567_v50  ;;  %v1572_v34 = vadd.f32 %v1571_v0, %v1255_v2  ;;  %v1531_v0 = vadd.f32 %v1530_v39, %v1214_v10 }
 0x1e5   : > { %v1664_v55 = vadd.f32 %v10198_v44, %v1545_v52 }
 0x1e6   : > { %v10208_v57 = vadd.f32 %v10204_v42, %v1591_v54  ;;  %v1717_v58 = vld [vmem:[#allocation3] sm:$0xfe] }
 0x1e7   : > { %v1742_v61 = vrot.slane %v1717_v58, 1  ;;  %v1743_v56 = vrot.slane %v1664_v55, 1 }
 0x1e8   : > { %1680 = vst [vmem:[#allocation3 + $0x8] sm:$0xff] %v10208_v57 }
 0x1e9   : > { %v1744_v3 = vsel %vm1741_vm14, %v1742_v61, %v1743_v56 }
 0x1ea   : > { %v1547_v9 = vpop.f32.mrf.mxu3  ;;  %v10214_v11 = vmax.f32 %v1661_v48, %v1744_v3 }
 0x1eb   : > { %v1548_v18 = vadd.f32 %v1547_v9, %v1524_v63  ;;  %v1592_v19 = vpop.f32.mrf.mxu1  ;;  %v1573_v46 = vpop.f32.mrf.mxu0 }
 0x1ec   : > { %v1593_v26 = vadd.f32 %v1592_v19, %v1569_v8  ;;  %v1574_v28 = vadd.f32 %v1573_v46, %v1257_v4 }
 0x1ed   : > { %v1667_v30 = vadd.f32 %v10198_v44, %v1548_v18 }
 0x1ee   : > { %v10218_v43 = vadd.f32 %v10204_v42, %v1593_v26 }
 0x1ef   : > { %v1751_v17 = vrot.slane %v1667_v30, 1 }
 0x1f0   : > { %v1746_v6 = vrot.slane %v10218_v43, 1 }
 0x1f1   : > { %v1752_v36 = vsel %vm1741_vm14, %v1743_v56, %v1751_v17 }
 0x1f2   : > { %v1549_v38 = vpop.f32.mrf.mxu3  ;;  %v10224_v45 = vmax.f32 %v1664_v55, %v1752_v36  ;;  %v1614_v55 = vpop.f32.mrf.mxu2 }
 0x1f3   : > { %v1550_v48 = vadd.f32 %v1549_v38, %v1526_v60  ;;  %v1595_v29 = vpop.f32.mrf.mxu1  ;;  %v1576_v21 = vpop.f32.mrf.mxu0 }
 0x1f4   : > { %v1596_v49 = vadd.f32 %v1595_v29, %v1572_v34  ;;  %v1577_v3 = vadd.f32 %v1576_v21, %v1260_v15  ;;  %v1615_v34 = vadd.f32 %v1614_v55, %v10173_v22 }
 0x1f5   : > { %v1670_v1 = vadd.f32 %v10198_v44, %v1550_v48 }
 0x1f6   : > { %v1668_v41 = vadd.f32 %v10204_v42, %v1596_v49 }
 0x1f7   : > { %v1757_v61 = vrot.slane %v1670_v1, 1 }
 0x1f8   : > { %v1753_v14 = vrot.slane %v1668_v41, 1 }
 0x1f9   : > { %v1758_v5 = vsel %vm1741_vm14, %v1751_v17, %v1757_v61 }
 0x1fa   : > { %v1552_v50 = vpop.f32.mrf.mxu3  ;;  %v1754_v51 = vsel %vm1741_vm14, %v1746_v6, %v1753_v14  ;;  %v10246_v26 = vmax.f32 %v1667_v30, %v1758_v5  ;;  %v1616_v13 = vpop.f32.mrf.mxu2  ;;  %v1262_v30 = vadd.f32 %v10191_v35, %v10175_v20 }
 0x1fb   : > { %v1553_v52 = vadd.f32 %v1552_v50, %v1529_v23  ;;  %v1597_v53 = vpop.f32.mrf.mxu1  ;;  %v10236_v54 = vmax.f32 %v10218_v43, %v1754_v51  ;;  %v1578_v17 = vpop.f32.mrf.mxu0  ;;  %v1310_v43 = vadd.f32 %v10200_v47, %v10187_v32 }
 0x1fc   : > { %v1598_v58 = vadd.f32 %v1597_v53, %v1574_v28  ;;  %v1579_v38 = vadd.f32 %v1578_v17, %v1262_v30 }
 0x1fd   : > { %v1673_v27 = vadd.f32 %v10198_v44, %v1553_v52 }
 0x1fe   : > { %v1671_v56 = vadd.f32 %v10204_v42, %v1598_v58 }
 0x1ff   : > { %v1763_v60 = vrot.slane %v1673_v27, 1 }
 0x200   : > { %v1759_v63 = vrot.slane %v1671_v56, 1 }
 0x201   : > { %v1764_v36 = vsel %vm1741_vm14, %v1757_v61, %v1763_v60 }
 0x202   : > { %v1554_v8 = vpop.f32.mrf.mxu3  ;;  %v1760_v9 = vsel %vm1741_vm14, %v1753_v14, %v1759_v63  ;;  %v1300_v14 = vadd.f32 %v10179_v25, %v10169_v16 }
 0x203   : > { %v1555_v18 = vadd.f32 %v1554_v8, %v1531_v0  ;;  %v1600_v19 = vpop.f32.mrf.mxu1  ;;  %v10248_v62 = vmax.f32 %v1668_v41, %v1760_v9  ;;  %v10263_v41 = vmax.f32 %v1670_v1, %v1764_v36  ;;  %v1619_v1 = vpop.f32.mrf.mxu2  ;;  %v1305_v0 = vadd.f32 %v10189_v33, %v10177_v24 }
 0x204   : > { %v1601_v2 = vadd.f32 %v1600_v19, %v1577_v3  ;;  %v1617_v23 = vadd.f32 %v1616_v13, %v1300_v14  ;;  %v1620_v16 = vadd.f32 %v1619_v1, %v10183_v59  ;;  %v1718_v59 = vld [vmem:[#allocation3 + $0x8] sm:$0xfe] }
 0x205   : > { %v1676_v7 = vadd.f32 %v10198_v44, %v1555_v18  ;;  %v8974_v12 = vpack.i.bf16 %v10248_v62, %v10246_v26  ;;  %v10260_v44 = vperm.slane %v10195_v37, 2  ;;  %v1745_v19 = vrot.slane %v1718_v59, 1 }
 0x206   : > { %v1674_v31 = vadd.f32 %v10204_v42, %v1601_v2 }
 0x207   : > { %1695 = vst [vmem:[#allocation3 + $0x78] sm:$0x3] %v1676_v7  ;;  %8975 = vrot.lane.b32.xlu1 %v8974_v12, %s9283_s18  ;;  %v1747_v33 = vsel %vm1741_vm14, %v1745_v19, %v1746_v6 }
 0x208   : > { %v1765_v39 = vrot.slane %v1674_v31, 1 }
 0x20a   : > { %v1638_v46 = vpop.f32.mrf.mxu3  ;;  %v1766_v48 = vsel %vm1741_vm14, %v1759_v63, %v1765_v39 }
 0x20b   : > { %v1639_v29 = vadd.f32 %v1638_v46, %v1615_v34  ;;  %v1602_v49 = vpop.f32.mrf.mxu1  ;;  %v10265_v4 = vmax.f32 %v1671_v56, %v1766_v48  ;;  %v1621_v25 = vpop.f32.mrf.mxu2 }
 0x20c   : > { %v1603_v20 = vadd.f32 %v1602_v49, %v1579_v38  ;;  %v1622_v8 = vadd.f32 %v1621_v25, %v1305_v0 }
 0x20d   : > { %v1663_v35 = vadd.f32 %v10260_v44, %v1639_v29  ;;  %v8979_v22 = vpack.i.bf16 %v10265_v4, %v10263_v41 }
 0x20e   : > { %v1677_v37 = vadd.f32 %v10204_v42, %v1603_v20  ;;  %v1720_v28 = vld [vmem:[#allocation3 + $0x78] sm:$0x3] }
 0x20f   : > { %1682 = vst.msk [vmem:[#allocation3 + $0x10] sm:$0xff] %vm1681_vm15, %v1663_v35  ;;  %8980 = vrot.lane.b32.xlu2 %v8979_v22, %s9283_s18  ;;  %v1769_v52 = vrot.slane %v1720_v28, 1  ;;  %v1714_v18 = vld [vmem:[#allocation3 + $0x78] sm:$0x1] }
 0x210   : > { %1696 = vst [vmem:[#allocation3 + $0x80] sm:$0x3] %v1677_v37 }
 0x211   : > { %v1770_v42 = vsel %vm1741_vm14, %v1763_v60, %v1769_v52  ;;  %v10293_v60 = vmax.f32 %v1714_v18, %v1769_v52 }
 0x212   : > { %v1640_v50 = vpop.f32.mrf.mxu3  ;;  %v10280_v10 = vmax.f32 %v1673_v27, %v1770_v42 }
 0x213   : > { %v1641_v51 = vadd.f32 %v1640_v50, %v1617_v23  ;;  %v1624_v7 = vpop.f32.mrf.mxu2 }
 0x214   : > { %v1625_v13 = vadd.f32 %v1624_v7, %v10193_v40 }
 0x215   : > { %v1666_v53 = vadd.f32 %v10260_v44, %v1641_v51 }
 0x216   : > { %v1719_v1 = vld [vmem:[#allocation3 + $0x10] sm:$0xfe] }
 0x217   : > { %1685 = vst.msk [vmem:[#allocation3 + $0x28] sm:$0xff] %vm1681_vm15, %v1666_v53  ;;  %v1721_v55 = vld [vmem:[#allocation3 + $0x80] sm:$0x3]  ;;  %v1748_v50 = vrot.slane %v1719_v1, 1  ;;  %v1701_v25 = vld [vmem:[#allocation3 + $0x10] sm:$0xff] }
 0x218   : > { %v1771_v58 = vrot.slane %v1721_v55, 1  ;;  %v1715_v3 = vld [vmem:[#allocation3 + $0x80] sm:$0x1] }
 0x21a   : > { %v1643_v61 = vpop.f32.mrf.mxu3  ;;  %v1772_v21 = vsel %vm1741_vm14, %v1765_v39, %v1771_v58  ;;  %v10291_v9 = vmax.f32 %v1715_v3, %v1771_v58 }
 0x21b   : > { %v1644_v56 = vadd.f32 %v1643_v61, %v1620_v16  ;;  %v10282_v15 = vmax.f32 %v1674_v31, %v1772_v21  ;;  %v10305_v31 = vmax.f32 %v10208_v57, %v1747_v33  ;;  %v1626_v34 = vpop.f32.mrf.mxu2  ;;  %v9284_v33 = vmov 65535  }
 0x21c   : > { %v8969_v24 = vpack.i.bf16 %v10291_v9, %v10293_v60  ;;  %v1627_v40 = vadd.f32 %v1626_v34, %v1310_v43 }
 0x21d   : > { %v1669_v5 = vadd.f32 %v10260_v44, %v1644_v56  ;;  %v8964_v63 = vpack.i.bf16 %v10282_v15, %v10280_v10  ;;  %v8984_v39 = vpack.i.bf16 %v10305_v31, %v10214_v11 }
 0x21e   : > { %v1704_v32 = vld [vmem:[#allocation3 + $0x28] sm:$0xff] }
 0x21f   : > { %1688 = vst.msk [vmem:[#allocation3 + $0x40] sm:$0xff] %vm1681_vm15, %v1669_v5  ;;  %8965 = vrot.lane.b32.xlu0 %v8964_v63, %s9283_s18  ;;  %v1749_v23 = vrot.slane %v1704_v32, 1  ;;  %v8999_v63 = vpack.i.bf16 %v10236_v54, %v10224_v45 }
 0x221   : > { %v1750_v53 = vsel %vm1741_vm14, %v1748_v50, %v1749_v23 }
 0x222   : > { %v1645_v27 = vpop.f32.mrf.mxu3  ;;  %v10329_v21 = vmax.f32 %v1701_v25, %v1750_v53 }
 0x223   : > { %v1646_v2 = vadd.f32 %v1645_v27, %v1622_v8 }
 0x225   : > { %v1672_v12 = vadd.f32 %v10260_v44, %v1646_v2 }
 0x226   : > { %v1707_v57 = vld [vmem:[#allocation3 + $0x40] sm:$0xff] }
 0x227   : > { %1691 = vst.msk [vmem:[#allocation3 + $0x58] sm:$0xff] %vm1681_vm15, %v1672_v12  ;;  %8970 = vrot.lane.b32.xlu0 %v8969_v24, %s9283_s18  ;;  %v1755_v49 = vrot.slane %v1707_v57, 1 }
 0x22a   : > { %v1648_v17 = vpop.f32.mrf.mxu3 }
 0x22b   : > { %v1649_v30 = vadd.f32 %v1648_v17, %v1625_v13  ;;  %v1942_v13 = vsel %vm583_vm0, 4294967295, %v9284_v33  ;;  %v7873_v33 = vld [vmem:[#allocation11 + $0x9d8] sm:$0xf] }
 0x22d   : > { %v1675_v36 = vadd.f32 %v10260_v44, %v1649_v30 }
 0x22e   : > { %v1710_v6 = vld [vmem:[#allocation3 + $0x58] sm:$0xff] }
 0x22f   : > { %1694 = vst.msk [vmem:[#allocation3 + $0x70] sm:$0xff] %vm1681_vm15, %v1675_v36  ;;  %8985 = vrot.lane.b32.xlu0 %v8984_v39, %s9283_s18  ;;  %v1761_v48 = vrot.slane %v1710_v6, 1 }
 0x231   : > { %v1762_v35 = vsel %vm1741_vm14, %v1755_v49, %v1761_v48 }
 0x232   : > { %v1650_v38 = vpop.f32.mrf.mxu3  ;;  %v10317_v37 = vmax.f32 %v1707_v57, %v1762_v35 }
 0x233   : > { %v1651_v46 = vadd.f32 %v1650_v38, %v1627_v40 }
 0x235   : > { %v1678_v29 = vadd.f32 %v10260_v44, %v1651_v46  ;;  %v1756_v44 = vsel %vm1741_vm14, %v1749_v23, %v1755_v49 }
 0x236   : > { %v1713_v20 = vld [vmem:[#allocation3 + $0x70] sm:$0xff]  ;;  %v10326_v42 = vmax.f32 %v1704_v32, %v1756_v44 }
 0x237   : > { %1698 = vst.msk [vmem:[#allocation3 + $0x88] sm:$0x3] %vm1697_vm1, %v1678_v29  ;;  %v1767_v22 = vrot.slane %v1713_v20, 1 }
 0x238   : > { %v9004_v5 = vpack.i.bf16 %v10326_v42, %v10329_v21 }
 0x239   : > { %v1768_v47 = vsel %vm1741_vm14, %v1761_v48, %v1767_v22 }
 0x23a   : > { %v10319_v14 = vmax.f32 %v1710_v6, %v1768_v47  ;;  %v1943_v6 = vsel %vm1941_vm3, %v1942_v13, 0  ;;  %v8754_v13 = vld [vmem:[#allocation11 + $0xa28] sm:$0xf0] }
 0x23c   : > { %v8989_v28 = vpack.i.bf16 %v10319_v14, %v10317_v37 }
 0x23e   : > { %8990 = vrot.lane.b32.xlu2 %v8989_v28, %s9283_s18  ;;  %v1722_v51 = vld [vmem:[#allocation3 + $0x88] sm:$0x3] }
 0x23f   : > { %v1773_v52 = vrot.slane %v1722_v51, 1  ;;  %v1716_v55 = vld [vmem:[#allocation3 + $0x88] sm:$0x1] }
 0x241   : > { %v1774_v58 = vsel %vm1741_vm14, %v1767_v22, %v1773_v52  ;;  %v1810_v16 = vmax.f32 %v1716_v55, %v1773_v52 }
 0x242   : > { %v1807_v61 = vmax.f32 %v1713_v20, %v1774_v58 }
 0x244   : > { %v8994_v56 = vpack.i.bf16 %v1810_v16, %v1807_v61 }
 0x246   : > { %8995 = vrot.lane.b32.xlu1 %v8994_v56, %s9283_s18  ;;  %9005 = vrot.lane.b32.xlu2 %v9004_v5, %s9283_s18  ;;  %v7201_v5 = vld [vmem:[#allocation11 + $0x498] sm:$0xf] }
 0x24e   : > { %9000 = vrot.lane.b32.xlu1 %v8999_v63, %s9283_s18 }
 0x269   : > { %v8981_v27 = vpop.permute.xlu2 %8980 }
 0x26a   : > { %v8983_v17 = vunpack.i.h.bf16 %v8981_v27  ;;  %v8982_v30 = vunpack.i.l.bf16 %v8981_v27 }
 0x26c   : > { %v1872_v38 = vsel %vm1865_vm2, %v8982_v30, %v8983_v17 }
 0x26d   : > { %v1905_v48 = vmax.f32 %v10263_v41, %v1872_v38 }
 0x279   : > { %v8976_v59 = vpop.permute.xlu1 %8975 }
 0x27a   : > { %v8978_v18 = vunpack.i.h.bf16 %v8976_v59  ;;  %v8977_v2 = vunpack.i.l.bf16 %v8976_v59 }
 0x27c   : > { %v1870_v43 = vsel %vm1865_vm2, %v8977_v2, %v8978_v18 }
 0x27d   : > { %v1902_v46 = vmax.f32 %v10246_v26, %v1870_v43  ;;  %v7203_v43 = vld [vmem:[#allocation11 + $0x4ec] sm:$0xf0] }
 0x27f   : > { %v1920_v29 = vpack.c.bf16 %v1905_v48, %v1902_v46  ;;  %v6949_v46 = vld [vmem:[#allocation11 + $0x2a0] sm:$0xf] }
 0x291   : > { %v8966_v0 = vpop.permute.xlu0 %8965 }
 0x292   : > { %v8968_v3 = vunpack.i.h.bf16 %v8966_v0  ;;  %v8967_v8 = vunpack.i.l.bf16 %v8966_v0 }
 0x294   : > { %v1874_v7 = vsel %vm1865_vm2, %v8967_v8, %v8968_v3  ;;  %v7117_v8 = vld [vmem:[#allocation11 + $0x3f0] sm:$0xf] }
 0x295   : > { %v1908_v39 = vmax.f32 %v10280_v10, %v1874_v7  ;;  %v8544_v7 = vld [vmem:[#allocation11 + $0x398] sm:$0xf0] }
 0x298   : > { %v8991_v49 = vpop.permute.xlu2 %8990 }
 0x299   : > { %v8971_v19 = vpop.permute.xlu0 %8970  ;;  %v8993_v20 = vunpack.i.h.bf16 %v8991_v49  ;;  %v8992_v35 = vunpack.i.l.bf16 %v8991_v49  ;;  %v8428_v49 = vld [vmem:[#allocation10] sm:$0xff] }
 0x29a   : > { %v8973_v12 = vunpack.i.h.bf16 %v8971_v19  ;;  %v8972_v24 = vunpack.i.l.bf16 %v8971_v19 }
 0x29b   : > { %v1871_v32 = vsel %vm1865_vm2, %v8978_v18, %v8992_v35  ;;  %v1873_v47 = vsel %vm1865_vm2, %v8983_v17, %v8993_v20  ;;  %v1907_v44 = vmax.f32 %v10319_v14, %v8993_v20  ;;  %v1904_v51 = vmax.f32 %v10317_v37, %v8992_v35  ;;  %v8565_v37 = vld [vmem:[#allocation11 + $0x440] sm:$0xf0]  ;;  %v7789_v35 = vld [vmem:[#allocation11 + $0x930] sm:$0xf] }
 0x29c   : > { %v1876_v36 = vsel %vm1865_vm2, %v8972_v24, %v8973_v12  ;;  %v1903_v56 = vmax.f32 %v10248_v62, %v1871_v32  ;;  %v1906_v59 = vmax.f32 %v10265_v4, %v1873_v47  ;;  %v7033_v62 = vld [vmem:[#allocation11 + $0x348] sm:$0xf] }
 0x29d   : > { %v1911_v34 = vmax.f32 %v10293_v60, %v1876_v36  ;;  %v1922_v4 = vpack.c.bf16 %v1907_v44, %v1904_v51  ;;  %v7034_v38 = vor.u32 %v8544_v7, %v7033_v62  ;;  %v8534_v44 = vld [vmem:[#allocation11 + $0x34c] sm:$0xf]  ;;  %v7035_v51 = vld [vmem:[#allocation11 + $0x39c] sm:$0xf0]  ;;  %v6783_v7 = vld [vmem:[#allocation11 + $0x1a4] sm:$0xf0] }
 0x29e   : > { %v1921_v24 = vpack.c.bf16 %v1906_v59, %v1903_v56  ;;  %v8691_v56 = vld [vmem:[#allocation11 + $0x830] sm:$0xf0] }
 0x29f   : > { %v1923_v40 = vpack.c.bf16 %v1911_v34, %v1908_v39  ;;  %v8576_v34 = vld [vmem:[#allocation11 + $0x49c] sm:$0xf] }
 0x2a0   : > { %v9006_v23 = vpop.permute.xlu2 %9005  ;;  %v7206_v20 = vor.u32 %v8576_v34, %v7203_v43  ;;  %v8450_v34 = vld [vmem:[#allocation11 + $0xac] sm:$0xf] }
 0x2a1   : > { %v1945_v57 = vand.u32 %v1943_v6, %v1923_v40  ;;  %v8986_v1 = vpop.permute.xlu0 %8985  ;;  %v9008_v63 = vunpack.i.h.bf16 %v9006_v23 }
 0x2a2   : > { %v8988_v55 = vunpack.i.h.bf16 %v8986_v1  ;;  %v8987_v58 = vunpack.i.l.bf16 %v8986_v1 }
 0x2a3   : > { %1958 = vmatpush.bf16.msra.mxu0 %v1945_v57  ;;  %v7874_v57 = vor.u32 %v8754_v13, %v7873_v33  ;;  %v8209_v13 = vld [vmem:[#allocation11 + $0xc78] sm:$0xf] }
 0x2a4   : > { %v1866_v18 = vsel %vm1865_vm2, %v8987_v58, %v8988_v55  ;;  %v7038_v58 = vor.u32 %v8534_v44, %v7035_v51  ;;  %v7957_v44 = vld [vmem:[#allocation11 + $0xa80] sm:$0xf]  ;;  %v8775_v51 = vld [vmem:[#allocation11 + $0xad0] sm:$0xf0] }
 0x2a7   : > { %1959 = vmatpush.bf16.msra.mxu0 %v1920_v29 }
 0x2b8   : > { %v8996_v10 = vpop.permute.xlu1 %8995 }
 0x2b9   : > { %v8998_v22 = vunpack.i.h.bf16 %v8996_v10  ;;  %v8997_v60 = vunpack.i.l.bf16 %v8996_v10  ;;  %v8733_v10 = vld [vmem:[#allocation11 + $0x980] sm:$0xf0] }
 0x2ba   : > { %v7790_v1 = vor.u32 %v8733_v10, %v7789_v35  ;;  %v6615_v10 = vld [vmem:[#allocation11 + $0x54] sm:$0xf0] }
 0x2bb   : > { %v1913_v28 = vmax.f32 %v1810_v16, %v8998_v22  ;;  %v1875_v26 = vsel %vm1865_vm2, %v8968_v3, %v8997_v60  ;;  %v1877_v50 = vsel %vm1865_vm2, %v8973_v12, %v8998_v22  ;;  %v1910_v41 = vmax.f32 %v1807_v61, %v8997_v60  ;;  %v8586_v16 = vld [vmem:[#allocation11 + $0x4e8] sm:$0xf0]  ;;  %v7119_v60 = vld [vmem:[#allocation11 + $0x444] sm:$0xf0] }
 0x2bc   : > { %v1909_v52 = vmax.f32 %v10282_v15, %v1875_v26  ;;  %v1912_v53 = vmax.f32 %v10291_v9, %v1877_v50  ;;  %v7202_v61 = vor.u32 %v8586_v16, %v7201_v5  ;;  %v9007_v3 = vunpack.i.l.bf16 %v9006_v23  ;;  %v8502_v23 = vld [vmem:[#allocation11 + $0x248] sm:$0xf0]  ;;  %v7705_v26 = vld [vmem:[#allocation11 + $0x888] sm:$0xf]  ;;  %v8712_v50 = vld [vmem:[#allocation11 + $0x8d8] sm:$0xf0] }
 0x2bd   : > { %v1925_v25 = vpack.c.bf16 %v1913_v28, %v1910_v41  ;;  %v7118_v9 = vor.u32 %v8565_v37, %v7117_v8  ;;  %v1901_v12 = vmax.f32 %v10326_v42, %v9008_v63  ;;  %v8513_v5 = vld [vmem:[#allocation11 + $0x2a4] sm:$0xf]  ;;  %v6951_v16 = vld [vmem:[#allocation11 + $0x2f4] sm:$0xf0]  ;;  %v8492_v8 = vld [vmem:[#allocation11 + $0x1fc] sm:$0xf] }
 0x2be   : > { %v1924_v0 = vpack.c.bf16 %v1912_v53, %v1909_v52  ;;  %4707 = vmatpush.bf16.msrb.mxu3 %v7202_v61  ;;  %v1898_v17 = vmax.f32 %v10329_v21, %v9007_v3  ;;  %v1867_v30 = vsel %vm1865_vm2, %v8988_v55, %v9007_v3  ;;  %v8523_v21 = vld [vmem:[#allocation11 + $0x2f0] sm:$0xf0]  ;;  %v7706_v55 = vor.u32 %v8712_v50, %v7705_v26  ;;  %v7537_v61 = vld [vmem:[#allocation11 + $0x738] sm:$0xf]  ;;  %v8670_v3 = vld [vmem:[#allocation11 + $0x788] sm:$0xf0] }
 0x2bf   : > { %v1951_v14 = vand.u32 %v1943_v6, %v1925_v25  ;;  %v1897_v29 = vmax.f32 %v10305_v31, %v1867_v30  ;;  %v6950_v32 = vor.u32 %v8523_v21, %v6949_v46  ;;  %v6865_v31 = vld [vmem:[#allocation11 + $0x1f8] sm:$0xf]  ;;  %v7621_v25 = vld [vmem:[#allocation11 + $0x7e0] sm:$0xf]  ;;  %v6954_v59 = vor.u32 %v8513_v5, %v6951_v16  ;;  %v6867_v37 = vld [vmem:[#allocation11 + $0x24c] sm:$0xf0] }
 0x2c0   : > { %v9001_v27 = vpop.permute.xlu1 %9000  ;;  %v1948_v15 = vand.u32 %v1943_v6, %v1924_v0  ;;  %v1896_v6 = vmax.f32 %v10214_v11, %v1866_v18  ;;  %v1919_v22 = vpack.c.bf16 %v1901_v12, %v1898_v17  ;;  %v8555_v11 = vld [vmem:[#allocation11 + $0x3f4] sm:$0xf]  ;;  %v6866_v52 = vor.u32 %v8502_v23, %v6865_v31  ;;  %v6781_v18 = vld [vmem:[#allocation11 + $0x150] sm:$0xf]  ;;  %v8838_v17 = vld [vmem:[#allocation11 + $0xcc8] sm:$0xf0] }
 0x2c1   : > { %v9003_v19 = vunpack.i.h.bf16 %v9001_v27  ;;  %v9002_v2 = vunpack.i.l.bf16 %v9001_v27  ;;  %1994 = vmatpush.bf16.msra.mxu2 %v1951_v14  ;;  %v7122_v28 = vor.u32 %v8555_v11, %v7119_v60  ;;  %v7622_v0 = vor.u32 %v8691_v56, %v7621_v25  ;;  %v8125_v46 = vld [vmem:[#allocation11 + $0xbd0] sm:$0xf]  ;;  %v8817_v21 = vld [vmem:[#allocation11 + $0xc20] sm:$0xf0]  ;;  %v7285_v11 = vld [vmem:[#allocation11 + $0x540] sm:$0xf] }
 0x2c2   : > { %1976 = vmatpush.bf16.msra.mxu1 %v1948_v15  ;;  %4708 = vmatpush.bf16.msrb.mxu3 %v7118_v9  ;;  %v7538_v27 = vor.u32 %v8670_v3, %v7537_v61  ;;  %v6870_v15 = vor.u32 %v8492_v8, %v6867_v37  ;;  %v8210_v30 = vor.u32 %v8838_v17, %v8209_v13  ;;  %v8607_v60 = vld [vmem:[#allocation11 + $0x590] sm:$0xf0]  ;;  %v8744_v31 = vld [vmem:[#allocation11 + $0x9dc] sm:$0xf]  ;;  %v7875_v23 = vld [vmem:[#allocation11 + $0xa2c] sm:$0xf0] }
 0x2c3   : > { %v1868_v36 = vsel %vm1865_vm2, %v9002_v2, %v9003_v19  ;;  %v1869_v39 = vsel %vm1865_vm2, %v9003_v19, %v9008_v63  ;;  %v1916_v63 = vld [vmem:[#allocation10 + $0x8] sm:$0x7]  ;;  %v8481_v19 = vld [vmem:[#allocation11 + $0x1a0] sm:$0xf0]  ;;  %v8471_v2 = vld [vmem:[#allocation11 + $0x154] sm:$0xf]  ;;  %v7878_v26 = vor.u32 %v8744_v31, %v7875_v23 }
 0x2c4   : > { %v1899_v40 = vmax.f32 %v10224_v45, %v1868_v36  ;;  %v1900_v42 = vmax.f32 %v10236_v54, %v1869_v39  ;;  %v10367_v45 = vld [vmem:[#allocation11 + $0xd20] sm:$0xff]  ;;  %v1931_v14 = vunpack.c.l.b16 %v1916_v63  ;;  %v6782_v62 = vor.u32 %v8481_v19, %v6781_v18  ;;  %v6697_v36 = vld [vmem:[#allocation11 + $0xa8] sm:$0xf]  ;;  %v8460_v39 = vld [vmem:[#allocation11 + $0xf8] sm:$0xf0] }
 0x2c5   : > { %1995 = vmatpush.bf16.msra.mxu2 %v1922_v4  ;;  %v3755_v47 = vunpack.c.l.b16 %v10367_v45  ;;  %v6786_v12 = vor.u32 %v8471_v2, %v6783_v7  ;;  %v7453_v4 = vld [vmem:[#allocation11 + $0x690] sm:$0xf]  ;;  %v6698_v43 = vor.u32 %v8460_v39, %v6697_v36  ;;  %v8755_v50 = vld [vmem:[#allocation11 + $0xa30] sm:$0xf0]  ;;  %v8734_v56 = vld [vmem:[#allocation11 + $0x988] sm:$0xf0] }
 0x2c6   : > { %1977 = vmatpush.bf16.msra.mxu1 %v1921_v24  ;;  %v1917_v48 = vpack.c.bf16 %v1899_v40, %v1896_v6  ;;  %v1918_v54 = vpack.c.bf16 %v1900_v42, %v1897_v29  ;;  %4709 = vmatpush.bf16.msrb.mxu3 %v7034_v38  ;;  %v1933_v9 = vpack.c.b16 %v1931_v14, %v1931_v14  ;;  %v8649_v24 = vld [vmem:[#allocation11 + $0x6e0] sm:$0xf0]  ;;  %v6699_v6 = vld [vmem:[#allocation11 + $0xfc] sm:$0xf0]  ;;  %v7369_v40 = vld [vmem:[#allocation11 + $0x5e8] sm:$0xf] }
 0x2c7   : > { %v4196_v41 = vpack.c.b16 %v3755_v47, %v3755_v47  ;;  %v7454_v33 = vor.u32 %v8649_v24, %v7453_v4  ;;  %v8628_v42 = vld [vmem:[#allocation11 + $0x638] sm:$0xf0]  ;;  %v6702_v38 = vor.u32 %v8450_v34, %v6699_v6  ;;  %v6613_v29 = vld [vmem:[#allocation11] sm:$0xf]  ;;  %v8587_v63 = vld [vmem:[#allocation11 + $0x4f0] sm:$0xf0] }
 0x2c8   : > { %1960 = vmatpush.bf16.msra.mxu0 %v1917_v48  ;;  %v8126_v48 = vor.u32 %v8817_v21, %v8125_v46  ;;  %v8796_v47 = vld [vmem:[#allocation11 + $0xb78] sm:$0xf0]  ;;  %v7209_v16 = vld [vmem:[#allocation11 + $0x4a0] sm:$0xf]  ;;  %v7713_v3 = vld [vmem:[#allocation11 + $0x890] sm:$0xf] }
 0x2c9   : > { %1996 = vmatpush.bf16.msra.mxu2 %v1919_v22  ;;  %v4645_v53 = vsel %vm583_vm0, %v4196_v41, 0  ;;  %v7707_v61 = vld [vmem:[#allocation11 + $0x8dc] sm:$0xf0]  ;;  %v8713_v8 = vld [vmem:[#allocation11 + $0x8e0] sm:$0xf0] }
 0x2ca   : > { %1978 = vmatpush.bf16.msra.mxu1 %v1918_v54  ;;  %4710 = vmatpush.bf16.msrb.mxu3 %v6950_v32  ;;  %v7286_v54 = vor.u32 %v8607_v60, %v7285_v11  ;;  %v8041_v32 = vld [vmem:[#allocation11 + $0xb28] sm:$0xf]  ;;  %v7125_v37 = vld [vmem:[#allocation11 + $0x3f8] sm:$0xf]  ;;  %v8681_v19 = vld [vmem:[#allocation11 + $0x7e4] sm:$0xf] }
 0x2cb   : > { %6605 = vmatmul.msk.bf16.vlgmr.msra.gmra.mxu0 %vm1934_vm4, %v8428_v49  ;;  %v7623_v2 = vld [vmem:[#allocation11 + $0x834] sm:$0xf0]  ;;  %v7041_v13 = vld [vmem:[#allocation11 + $0x350] sm:$0xf]  ;;  %v8545_v17 = vld [vmem:[#allocation11 + $0x3a0] sm:$0xf0] }
 0x2cc   : > { %4725 = vmatpush.bf16.msrb.mxu0 %v7874_v57  ;;  %6609 = vmatmul.msk.bf16.vlgmr.msra.gmra.mxu2 %vm1934_vm4, %v8428_v49  ;;  %v7370_v57 = vor.u32 %v8628_v42, %v7369_v40  ;;  %v7626_v7 = vor.u32 %v8681_v19, %v7623_v2  ;;  %v7539_v36 = vld [vmem:[#allocation11 + $0x78c] sm:$0xf0]  ;;  %v7545_v39 = vld [vmem:[#allocation11 + $0x740] sm:$0xf]  ;;  %v8828_v40 = vld [vmem:[#allocation11 + $0xc7c] sm:$0xf] }
 0x2cd   : > { %4761 = vmatpush.bf16.msrb.mxu2 %v7206_v20  ;;  %6607 = vmatmul.msk.bf16.vlgmr.msra.gmra.mxu1 %vm1934_vm4, %v8428_v49  ;;  %v8439_v49 = vld [vmem:[#allocation11 + $0x50] sm:$0xf0]  ;;  %v8429_v20 = vld [vmem:[#allocation11 + $0x4] sm:$0xf]  ;;  %v8211_v42 = vld [vmem:[#allocation11 + $0xccc] sm:$0xf0] }
 0x2ce   : > { %4746 = vmatpush.bf16.msrb.mxu1 %v4645_v53  ;;  %4711 = vmatpush.bf16.msrb.mxu3 %v6866_v52  ;;  %v6614_v35 = vor.u32 %v8439_v49, %v6613_v29  ;;  %v6618_v22 = vor.u32 %v8429_v20, %v6615_v10  ;;  %v7958_v52 = vor.u32 %v8775_v51, %v7957_v44  ;;  %v8723_v53 = vld [vmem:[#allocation11 + $0x934] sm:$0xf]  ;;  %v8524_v46 = vld [vmem:[#allocation11 + $0x2f8] sm:$0xf0]  ;;  %v7455_v29 = vld [vmem:[#allocation11 + $0x6e4] sm:$0xf0] }
 0x2cf   : > { %v8639_v21 = vld [vmem:[#allocation11 + $0x694] sm:$0xf]  ;;  %v7461_v49 = vld [vmem:[#allocation11 + $0x698] sm:$0xf]  ;;  %v8650_v20 = vld [vmem:[#allocation11 + $0x6e8] sm:$0xf0] }
 0x2d0   : > { %4726 = vmatpush.bf16.msrb.mxu0 %v7790_v1  ;;  %v8042_v1 = vor.u32 %v8796_v47, %v8041_v32  ;;  %v7462_v10 = vor.u32 %v8650_v20, %v7461_v49  ;;  %v8807_v11 = vld [vmem:[#allocation11 + $0xbd4] sm:$0xf]  ;;  %v8127_v60 = vld [vmem:[#allocation11 + $0xc24] sm:$0xf0]  ;;  %v6873_v32 = vld [vmem:[#allocation11 + $0x200] sm:$0xf] }
 0x2d1   : > { %4762 = vmatpush.bf16.msrb.mxu2 %v7122_v28  ;;  %v7881_v28 = vld [vmem:[#allocation11 + $0x9e0] sm:$0xf]  ;;  %v8503_v47 = vld [vmem:[#allocation11 + $0x250] sm:$0xf0]  ;;  %v8618_v23 = vld [vmem:[#allocation11 + $0x5ec] sm:$0xf] }
 0x2d2   : > { %4712 = vmatpush.bf16.msrb.mxu3 %v6782_v62  ;;  %4747 = vmatpush.bf16.msrb.mxu1 %v8210_v30  ;;  %v7882_v41 = vor.u32 %v8755_v50, %v7881_v28  ;;  %v7629_v62 = vld [vmem:[#allocation11 + $0x7e8] sm:$0xf]  ;;  %v8660_v30 = vld [vmem:[#allocation11 + $0x73c] sm:$0xf]  ;;  %v6874_v31 = vor.u32 %v8503_v47, %v6873_v32  ;;  %v7371_v28 = vld [vmem:[#allocation11 + $0x63c] sm:$0xf0] }
 0x2d3   : > { %v7542_v34 = vor.u32 %v8660_v30, %v7539_v36  ;;  %v7374_v50 = vor.u32 %v8618_v23, %v7371_v28  ;;  %v8786_v44 = vld [vmem:[#allocation11 + $0xb2c] sm:$0xf]  ;;  %v8043_v51 = vld [vmem:[#allocation11 + $0xb7c] sm:$0xf0]  ;;  %v8556_v30 = vld [vmem:[#allocation11 + $0x3fc] sm:$0xf] }
 0x2d4   : > { %4727 = vmatpush.bf16.msrb.mxu0 %v7706_v55  ;;  %v7791_v55 = vld [vmem:[#allocation11 + $0x984] sm:$0xf0]  ;;  %v7127_v36 = vld [vmem:[#allocation11 + $0x44c] sm:$0xf0]  ;;  %v8703_v28 = vld [vmem:[#allocation11 + $0x894] sm:$0xf] }
 0x2d5   : > { %4763 = vmatpush.bf16.msrb.mxu2 %v7038_v58  ;;  %v7797_v58 = vld [vmem:[#allocation11 + $0x938] sm:$0xf]  ;;  %v7794_v25 = vor.u32 %v8723_v53, %v7791_v55  ;;  %v8046_v53 = vor.u32 %v8786_v44, %v8043_v51  ;;  %v8839_v44 = vld [vmem:[#allocation11 + $0xcd0] sm:$0xf0]  ;;  %v8829_v51 = vld [vmem:[#allocation11 + $0xc84] sm:$0xf] }
 0x2d6   : > { %4713 = vmatpush.bf16.msrb.mxu3 %v6698_v43  ;;  %4748 = vmatpush.bf16.msrb.mxu1 %v8126_v48  ;;  %v7798_v5 = vor.u32 %v8734_v56, %v7797_v58  ;;  %v8671_v43 = vld [vmem:[#allocation11 + $0x790] sm:$0xf0]  ;;  %v6789_v55 = vld [vmem:[#allocation11 + $0x158] sm:$0xf]  ;;  %v8482_v58 = vld [vmem:[#allocation11 + $0x1a8] sm:$0xf0] }
 0x2d7   : > { %v7546_v6 = vor.u32 %v8671_v43, %v7545_v39  ;;  %v6790_v56 = vor.u32 %v8482_v58, %v6789_v55  ;;  %v7130_v39 = vor.u32 %v8556_v30, %v7127_v36  ;;  %v7883_v43 = vld [vmem:[#allocation11 + $0xa34] sm:$0xf0]  ;;  %v8051_v30 = vld [vmem:[#allocation11 + $0xb84] sm:$0xf0]  ;;  %v8451_v36 = vld [vmem:[#allocation11 + $0xb4] sm:$0xf] }
 0x2d8   : > { %4728 = vmatpush.bf16.msrb.mxu0 %v7622_v0  ;;  %v7210_v0 = vor.u32 %v8587_v63, %v7209_v16  ;;  %v7293_v16 = vld [vmem:[#allocation11 + $0x548] sm:$0xf]  ;;  %v8608_v63 = vld [vmem:[#allocation11 + $0x598] sm:$0xf0]  ;;  %v8219_v55 = vld [vmem:[#allocation11 + $0xcd4] sm:$0xf0] }
 0x2d9   : > { %4764 = vmatpush.bf16.msrb.mxu2 %v6954_v59  ;;  %v8702_v59 = vld [vmem:[#allocation11 + $0x88c] sm:$0xf]  ;;  %v8222_v58 = vor.u32 %v8829_v51, %v8219_v55  ;;  %v7295_v51 = vld [vmem:[#allocation11 + $0x59c] sm:$0xf0]  ;;  %v8567_v55 = vld [vmem:[#allocation11 + $0x450] sm:$0xf0] }
 0x2da   : > { %4714 = vmatpush.bf16.msrb.mxu3 %v6614_v35  ;;  %4749 = vmatpush.bf16.msrb.mxu1 %v8042_v1  ;;  %v7710_v14 = vor.u32 %v8702_v59, %v7707_v61  ;;  %v7458_v35 = vor.u32 %v8639_v21, %v7455_v29  ;;  %v7294_v59 = vor.u32 %v8608_v63, %v7293_v16  ;;  %v8765_v61 = vld [vmem:[#allocation11 + $0xa84] sm:$0xf]  ;;  %v7799_v21 = vld [vmem:[#allocation11 + $0x98c] sm:$0xf0]  ;;  %v8682_v16 = vld [vmem:[#allocation11 + $0x7ec] sm:$0xf] }
 0x2db   : > { %6606 = vmatmul.msk.bf16.gmra.mxu0 %vm1934_vm4, %v1933_v9  ;;  %v7631_v63 = vld [vmem:[#allocation11 + $0x83c] sm:$0xf0] }
 0x2dc   : > { %4729 = vmatpush.bf16.msrb.mxu0 %v7538_v27  ;;  %6610 = vmatmul.msk.bf16.gmra.mxu2 %vm1934_vm4, %v1933_v9  ;;  %v8566_v27 = vld [vmem:[#allocation11 + $0x448] sm:$0xf0] }
 0x2dd   : > { %4765 = vmatpush.bf16.msrb.mxu2 %v6870_v15  ;;  %6608 = vmatmul.msk.bf16.gmra.mxu1 %vm1934_vm4, %v1933_v9  ;;  %v3756_v15 = vunpack.c.h.b16 %v10367_v45  ;;  %v7714_v9 = vor.u32 %v8713_v8, %v7713_v3  ;;  %v7126_v18 = vor.u32 %v8566_v27, %v7125_v37  ;;  %v7042_v45 = vor.u32 %v8545_v17, %v7041_v13  ;;  %v7959_v3 = vld [vmem:[#allocation11 + $0xad4] sm:$0xf0] }
 0x2de   : > { %4779 = vmatpush.bf16.msra.mxu3 %v7878_v26  ;;  %4750 = vmatpush.bf16.msrb.mxu1 %v7958_v52  ;;  %v7377_v26 = vld [vmem:[#allocation11 + $0x5f0] sm:$0xf]  ;;  %v7962_v37 = vor.u32 %v8765_v61, %v7959_v3  ;;  %v7634_v61 = vor.u32 %v8682_v16, %v7631_v63  ;;  %v8818_v3 = vld [vmem:[#allocation11 + $0xc28] sm:$0xf0]  ;;  %v7805_v16 = vld [vmem:[#allocation11 + $0x940] sm:$0xf] }
 0x2df   : > { %v4197_v4 = vpack.c.b16 %v3756_v15, %v3756_v15  ;;  %v6705_v15 = vld [vmem:[#allocation11 + $0xb0] sm:$0xf]  ;;  %v8735_v63 = vld [vmem:[#allocation11 + $0x990] sm:$0xf0] }
 0x2e0   : > { %4730 = vmatpush.bf16.msrb.mxu0 %v7454_v33 }
 0x2e1   : > { %4766 = vmatpush.bf16.msrb.mxu2 %v6786_v12  ;;  %v8692_v12 = vld [vmem:[#allocation11 + $0x838] sm:$0xf0]  ;;  %v4648_v33 = vsel %vm583_vm0, %v4197_v4, 0  ;;  %v6621_v4 = vld [vmem:[#allocation11 + $0x8] sm:$0xf] }
 0x2e2   : > { %4780 = vmatpush.bf16.msra.mxu3 %v7794_v25  ;;  %4815 = vmatpush.bf16.msra.mxu1 %v7210_v0  ;;  %v7630_v24 = vor.u32 %v8692_v12, %v7629_v62  ;;  %v8597_v25 = vld [vmem:[#allocation11 + $0x544] sm:$0xf] }
 0x2e3   : > { %v8577_v62 = vld [vmem:[#allocation11 + $0x4a4] sm:$0xf] }
 0x2e4   : > { %4731 = vmatpush.bf16.msrb.mxu0 %v7370_v57  ;;  %v6957_v57 = vld [vmem:[#allocation11 + $0x2a8] sm:$0xf] }
 0x2e5   : > { %4767 = vmatpush.bf16.msrb.mxu2 %v6702_v38  ;;  %v8214_v38 = vor.u32 %v8828_v40, %v8211_v42  ;;  %v6958_v48 = vor.u32 %v8524_v46, %v6957_v57  ;;  %v8535_v42 = vld [vmem:[#allocation11 + $0x354] sm:$0xf]  ;;  %v8724_v57 = vld [vmem:[#allocation11 + $0x93c] sm:$0xf] }
 0x2e6   : > { %4781 = vmatpush.bf16.msra.mxu3 %v7710_v14  ;;  %4816 = vmatpush.bf16.msra.mxu1 %v7126_v18  ;;  %v7802_v29 = vor.u32 %v8724_v57, %v7799_v21  ;;  %v8776_v57 = vld [vmem:[#allocation11 + $0xad8] sm:$0xf0]  ;;  %v7967_v21 = vld [vmem:[#allocation11 + $0xadc] sm:$0xf0] }
 0x2e8   : > { %4732 = vmatpush.bf16.msrb.mxu0 %v7286_v54  ;;  %v8130_v54 = vor.u32 %v8807_v11, %v8127_v60 }
 0x2e9   : > { %4768 = vmatpush.bf16.msrb.mxu2 %v6618_v22 }
 0x2ea   : > { %4782 = vmatpush.bf16.msra.mxu3 %v7626_v7  ;;  %4817 = vmatpush.bf16.msra.mxu1 %v7042_v45  ;;  %v7211_v7 = vld [vmem:[#allocation11 + $0x4f4] sm:$0xf0] }
 0x2eb   : > { %v7214_v12 = vor.u32 %v8577_v62, %v7211_v7  ;;  %v8661_v7 = vld [vmem:[#allocation11 + $0x744] sm:$0xf] }
 0x2ec   : > { %4800 = vmatpush.bf16.msra.mxu0 %v4648_v33 }
 0x2ed   : > { %4833 = vmatpush.bf16.msra.mxu2 %v7882_v41  ;;  %v8629_v41 = vld [vmem:[#allocation11 + $0x640] sm:$0xf0] }
 0x2ee   : > { %4783 = vmatpush.bf16.msra.mxu3 %v7542_v34  ;;  %4818 = vmatpush.bf16.msra.mxu1 %v6958_v48  ;;  %v7378_v52 = vor.u32 %v8629_v41, %v7377_v26  ;;  %v8745_v34 = vld [vmem:[#allocation11 + $0x9e4] sm:$0xf]  ;;  %v2454_v48 = vld [vmem:[#allocation11 + $0xd28] sm:$0xff]  ;;  %v8217_v41 = vld [vmem:[#allocation11 + $0xc80] sm:$0xf] }
 0x2ef   : > { %v7886_v40 = vor.u32 %v8745_v34, %v7883_v43  ;;  %v3757_v49 = vunpack.c.l.b16 %v2454_v48  ;;  %v3758_v20 = vunpack.c.h.b16 %v2454_v48  ;;  %v7715_v26 = vld [vmem:[#allocation11 + $0x8e4] sm:$0xf0] }
 0x2f0   : > { %4801 = vmatpush.bf16.msra.mxu0 %v8214_v38  ;;  %v7043_v38 = vld [vmem:[#allocation11 + $0x3a4] sm:$0xf0] }
 0x2f1   : > { %4834 = vmatpush.bf16.msra.mxu2 %v7798_v5  ;;  %v7287_v5 = vld [vmem:[#allocation11 + $0x594] sm:$0xf0]  ;;  %v7046_v46 = vor.u32 %v8535_v42, %v7043_v38  ;;  %v4199_v11 = vpack.c.b16 %v3758_v20, %v3758_v20  ;;  %v7965_v42 = vld [vmem:[#allocation11 + $0xa88] sm:$0xf]  ;;  %v6623_v20 = vld [vmem:[#allocation11 + $0x5c] sm:$0xf0] }
 0x2f2   : > { %4784 = vmatpush.bf16.msra.mxu3 %v7458_v35  ;;  %4819 = vmatpush.bf16.msra.mxu1 %v6874_v31  ;;  %v7290_v0 = vor.u32 %v8597_v25, %v7287_v5  ;;  %v8514_v35 = vld [vmem:[#allocation11 + $0x2ac] sm:$0xf]  ;;  %v8493_v25 = vld [vmem:[#allocation11 + $0x204] sm:$0xf]  ;;  %v7966_v48 = vor.u32 %v8776_v57, %v7965_v42  ;;  %v8672_v57 = vld [vmem:[#allocation11 + $0x798] sm:$0xf0] }
 0x2f3   : > { %v4654_v47 = vsel %vm583_vm0, %v4199_v11, 0 }
 0x2f4   : > { %4802 = vmatpush.bf16.msra.mxu0 %v8130_v54 }
 0x2f5   : > { %4835 = vmatpush.bf16.msra.mxu2 %v7714_v9  ;;  %v8461_v9 = vld [vmem:[#allocation11 + $0x100] sm:$0xf0] }
 0x2f6   : > { %4785 = vmatpush.bf16.msra.mxu3 %v7374_v50  ;;  %4820 = vmatpush.bf16.msra.mxu1 %v6790_v56  ;;  %v6706_v19 = vor.u32 %v8461_v9, %v6705_v15  ;;  %v7718_v50 = vor.u32 %v8703_v28, %v7715_v26  ;;  %v6875_v56 = vld [vmem:[#allocation11 + $0x254] sm:$0xf0]  ;;  %v7889_v26 = vld [vmem:[#allocation11 + $0x9e8] sm:$0xf] }
 0x2f7   : > { %v6878_v5 = vor.u32 %v8493_v25, %v6875_v56  ;;  %v7135_v25 = vld [vmem:[#allocation11 + $0x454] sm:$0xf0] }
 0x2f8   : > { %4803 = vmatpush.bf16.msra.mxu0 %v8046_v53  ;;  %v8218_v53 = vor.u32 %v8839_v44, %v8217_v41  ;;  %v8598_v44 = vld [vmem:[#allocation11 + $0x54c] sm:$0xf] }
 0x2f9   : > { %4836 = vmatpush.bf16.msra.mxu2 %v7630_v24  ;;  %v8440_v24 = vld [vmem:[#allocation11 + $0x58] sm:$0xf0] }
 0x2fa   : > { %4786 = vmatpush.bf16.msra.mxu3 %v7290_v0  ;;  %4821 = vmatpush.bf16.msra.mxu1 %v6706_v19  ;;  %v6622_v33 = vor.u32 %v8440_v24, %v6621_v4  ;;  %v8133_v0 = vld [vmem:[#allocation11 + $0xbd8] sm:$0xf]  ;;  %v6791_v19 = vld [vmem:[#allocation11 + $0x1ac] sm:$0xf0] }
 0x2fb   : > { %v8049_v24 = vld [vmem:[#allocation11 + $0xb30] sm:$0xf] }
 0x2fc   : > { %4804 = vmatpush.bf16.msra.mxu0 %v7962_v37  ;;  %v8134_v37 = vor.u32 %v8818_v3, %v8133_v0  ;;  %v7806_v0 = vor.u32 %v8735_v63, %v7805_v16  ;;  %v8546_v3 = vld [vmem:[#allocation11 + $0x3a8] sm:$0xf0]  ;;  %v8441_v63 = vld [vmem:[#allocation11 + $0x60] sm:$0xf0] }
 0x2fd   : > { %4837 = vmatpush.bf16.msra.mxu2 %v7546_v6 }
 0x2fe   : > { %4822 = vmatpush.bf16.msra.mxu1 %v6622_v33  ;;  %v8797_v33 = vld [vmem:[#allocation11 + $0xb80] sm:$0xf0] }
 0x301   : > { %4838 = vmatpush.bf16.msra.mxu2 %v7462_v10  ;;  %v6959_v10 = vld [vmem:[#allocation11 + $0x2fc] sm:$0xf0] }
 0x305   : > { %4839 = vmatpush.bf16.msra.mxu2 %v7378_v52 }
 0x309   : > { %4840 = vmatpush.bf16.msra.mxu2 %v7294_v59 }
 0x348   : > { %v1962_v22 = vpop.f32.mrf.mxu0 }
 0x34a   : > { %v1980_v1 = vpop.f32.mrf.mxu1 }
 0x34f   : > { %v1998_v14 = vpop.f32.mrf.mxu2 }
 0x350   : > { %v1964_v8 = vpop.f32.mrf.mxu0 }
 0x351   : > { %v10379_v27 = vpack.c.bf16 %v1964_v8, %v1962_v22  ;;  %v4198_v22 = vpack.c.b16 %v3757_v49, %v3757_v49  ;;  %v8135_v8 = vld [vmem:[#allocation11 + $0xc2c] sm:$0xf0]  ;;  %v8430_v49 = vld [vmem:[#allocation11 + $0xc] sm:$0xf] }
 0x352   : > { %v1982_v18 = vpop.f32.mrf.mxu1 }
 0x353   : > { %v10381_v2 = vpack.c.bf16 %v1982_v18, %v1980_v1  ;;  %4715 = vmatmul.bf16.vlgmr.msrb.gmra.mxu3 %v10379_v27  ;;  %4769 = vmatmul.bf16.vlgmr.msrb.gmra.mxu2 %v10379_v27  ;;  %v4651_v32 = vsel %vm583_vm0, %v4198_v22, 0  ;;  %v6962_v1 = vor.u32 %v8514_v35, %v6959_v10  ;;  %v8472_v18 = vld [vmem:[#allocation11 + $0x15c] sm:$0xf]  ;;  %v6626_v35 = vor.u32 %v8430_v49, %v6623_v20  ;;  %v8619_v10 = vld [vmem:[#allocation11 + $0x5f4] sm:$0xf] }
 0x354   : > { %4854 = vmatpush.bf16.msrb.mxu3 %v4651_v32  ;;  %4908 = vmatpush.bf16.msrb.mxu2 %v4654_v47  ;;  %v6794_v62 = vor.u32 %v8472_v18, %v6791_v19  ;;  %v7379_v22 = vld [vmem:[#allocation11 + $0x644] sm:$0xf0]  ;;  %v8588_v32 = vld [vmem:[#allocation11 + $0x4f8] sm:$0xf0]  ;;  %v8578_v47 = vld [vmem:[#allocation11 + $0x4ac] sm:$0xf] }
 0x355   : > { %4733 = vmatmul.bf16.vlgmr.msrb.gmra.mxu0 %v10381_v2  ;;  %v7382_v11 = vor.u32 %v8619_v10, %v7379_v22  ;;  %v8473_v49 = vld [vmem:[#allocation11 + $0x164] sm:$0xf]  ;;  %v6799_v10 = vld [vmem:[#allocation11 + $0x1b4] sm:$0xf0] }
 0x356   : > { %4869 = vmatpush.bf16.msrb.mxu0 %v7214_v12  ;;  %v7547_v12 = vld [vmem:[#allocation11 + $0x794] sm:$0xf0]  ;;  %v6802_v22 = vor.u32 %v8473_v49, %v6799_v10  ;;  %v7141_v10 = vld [vmem:[#allocation11 + $0x408] sm:$0xf] }
 0x357   : > { %v2000_v13 = vpop.f32.mrf.mxu2  ;;  %v7550_v4 = vor.u32 %v8661_v7, %v7547_v12  ;;  %v8525_v7 = vld [vmem:[#allocation11 + $0x300] sm:$0xf0]  ;;  %v8515_v12 = vld [vmem:[#allocation11 + $0x2b4] sm:$0xf] }
 0x358   : > { %v10386_v17 = vpack.c.bf16 %v2000_v13, %v1998_v14  ;;  %v1967_v45 = vpop.f32.mrf.mxu0  ;;  %4855 = vmatpush.bf16.msrb.mxu3 %v8218_v53  ;;  %4909 = vmatpush.bf16.msrb.mxu2 %v8222_v58  ;;  %v8808_v14 = vld [vmem:[#allocation11 + $0xbdc] sm:$0xf]  ;;  %v8787_v13 = vld [vmem:[#allocation11 + $0xb34] sm:$0xf]  ;;  %v7298_v53 = vor.u32 %v8598_v44, %v7295_v51  ;;  %v8557_v58 = vld [vmem:[#allocation11 + $0x404] sm:$0xf] }
 0x359   : > { %v10390_v60 = vpack.c.bf16 %v1967_v45, %v1967_v45  ;;  %v8138_v15 = vor.u32 %v8808_v14, %v8135_v8  ;;  %v8050_v45 = vor.u32 %v8797_v33, %v8049_v24  ;;  %v8054_v34 = vor.u32 %v8787_v13, %v8051_v30  ;;  %v8536_v14 = vld [vmem:[#allocation11 + $0x35c] sm:$0xf]  ;;  %v6967_v24 = vld [vmem:[#allocation11 + $0x304] sm:$0xf0]  ;;  %v7637_v33 = vld [vmem:[#allocation11 + $0x7f0] sm:$0xf] }
 0x35a   : > { %8291 = vmatmul.msk.bf16.vlgmr.msrb.gmra.mxu1 %vm4637_vm5, %v10386_v17  ;;  %v1985_v6 = vpop.f32.mrf.mxu1  ;;  %4870 = vmatpush.bf16.msrb.mxu0 %v7130_v39  ;;  %v6707_v39 = vld [vmem:[#allocation11 + $0x104] sm:$0xf0]  ;;  %v8693_v13 = vld [vmem:[#allocation11 + $0x840] sm:$0xf0]  ;;  %v6715_v51 = vld [vmem:[#allocation11 + $0x10c] sm:$0xf0] }
 0x35b   : > { %4887 = vmatpush.bf16.msrb.mxu1 %v7886_v40  ;;  %v10394_v23 = vpack.c.bf16 %v1985_v6, %v1985_v6  ;;  %v6710_v43 = vor.u32 %v8451_v36, %v6707_v39  ;;  %v8640_v6 = vld [vmem:[#allocation11 + $0x69c] sm:$0xf]  ;;  %v7463_v40 = vld [vmem:[#allocation11 + $0x6ec] sm:$0xf0]  ;;  %v7638_v30 = vor.u32 %v8693_v13, %v7637_v33  ;;  %v6881_v36 = vld [vmem:[#allocation11 + $0x208] sm:$0xf] }
 0x35c   : > { %4856 = vmatpush.bf16.msrb.mxu3 %v8134_v37  ;;  %4910 = vmatpush.bf16.msrb.mxu2 %v8138_v15  ;;  %v7466_v38 = vor.u32 %v8640_v6, %v7463_v40  ;;  %v7051_v37 = vld [vmem:[#allocation11 + $0x3ac] sm:$0xf0]  ;;  %v7721_v15 = vld [vmem:[#allocation11 + $0x898] sm:$0xf]  ;;  %v8504_v39 = vld [vmem:[#allocation11 + $0x258] sm:$0xf0] }
 0x35d   : > { %v7054_v18 = vor.u32 %v8536_v14, %v7051_v37  ;;  %v6883_v6 = vld [vmem:[#allocation11 + $0x25c] sm:$0xf0]  ;;  %v10410_v40 = vld [vmem:[#allocation11 + $0xd30] sm:$0xff]  ;;  %v8609_v37 = vld [vmem:[#allocation11 + $0x5a0] sm:$0xf0] }
 0x35e   : > { %4871 = vmatpush.bf16.msrb.mxu0 %v7046_v46  ;;  %v8766_v46 = vld [vmem:[#allocation11 + $0xa8c] sm:$0xf]  ;;  %v7973_v13 = vld [vmem:[#allocation11 + $0xa90] sm:$0xf]  ;;  %v3760_v49 = vunpack.c.h.b16 %v10410_v40 }
 0x35f   : > { %v2003_v54 = vpop.f32.mrf.mxu2  ;;  %4888 = vmatpush.bf16.msrb.mxu1 %v7802_v29  ;;  %v7970_v29 = vor.u32 %v8766_v46, %v7967_v21  ;;  %v3759_v46 = vunpack.c.l.b16 %v10410_v40 }
 0x360   : > { %v1969_v31 = vpop.f32.mrf.mxu0  ;;  %v10399_v59 = vpack.c.bf16 %v2003_v54, %v2003_v54  ;;  %4857 = vmatpush.bf16.msrb.mxu3 %v8050_v45  ;;  %4911 = vmatpush.bf16.msrb.mxu2 %v8054_v34  ;;  %v7217_v54 = vld [vmem:[#allocation11 + $0x4a8] sm:$0xf]  ;;  %v6970_v45 = vor.u32 %v8515_v12, %v6967_v24  ;;  %v8494_v34 = vld [vmem:[#allocation11 + $0x20c] sm:$0xf]  ;;  %v7897_v12 = vld [vmem:[#allocation11 + $0x9f0] sm:$0xf] }
 0x361   : > { %v7219_v31 = vld [vmem:[#allocation11 + $0x4fc] sm:$0xf0]  ;;  %v6886_v42 = vor.u32 %v8494_v34, %v6883_v6  ;;  %v4200_v20 = vpack.c.b16 %v3759_v46, %v3759_v46  ;;  %v8757_v24 = vld [vmem:[#allocation11 + $0xa40] sm:$0xf0]  ;;  %v7813_v34 = vld [vmem:[#allocation11 + $0x948] sm:$0xf] }
 0x362   : > { %v1987_v52 = vpop.f32.mrf.mxu1  ;;  %4872 = vmatpush.bf16.msrb.mxu0 %v6962_v1  ;;  %v7218_v1 = vor.u32 %v8588_v32, %v7217_v54  ;;  %v7222_v28 = vor.u32 %v8578_v47, %v7219_v31  ;;  %v7469_v54 = vld [vmem:[#allocation11 + $0x6a0] sm:$0xf]  ;;  %v8651_v32 = vld [vmem:[#allocation11 + $0x6f0] sm:$0xf0]  ;;  %v8840_v31 = vld [vmem:[#allocation11 + $0xcd8] sm:$0xf0]  ;;  %v7898_v33 = vor.u32 %v8757_v24, %v7897_v12 }
 0x363   : > { %4720 = vmatmul.bf16.gmra.mxu3 %v10390_v60  ;;  %4774 = vmatmul.bf16.gmra.mxu2 %v10390_v60  ;;  %v7133_v52 = vld [vmem:[#allocation11 + $0x400] sm:$0xf]  ;;  %v7470_v47 = vor.u32 %v8651_v32, %v7469_v54  ;;  %v8683_v32 = vld [vmem:[#allocation11 + $0x7f4] sm:$0xf]  ;;  %v6889_v12 = vld [vmem:[#allocation11 + $0x210] sm:$0xf] }
 0x364   : > { %4889 = vmatpush.bf16.msrb.mxu1 %v7718_v50  ;;  %4858 = vmatpush.bf16.msrb.mxu3 %v7966_v48  ;;  %v8756_v50 = vld [vmem:[#allocation11 + $0xa38] sm:$0xf0]  ;;  %v7134_v56 = vor.u32 %v8567_v55, %v7133_v52  ;;  %v6797_v48 = vld [vmem:[#allocation11 + $0x160] sm:$0xf]  ;;  %v7385_v52 = vld [vmem:[#allocation11 + $0x5f8] sm:$0xf] }
 0x365   : > { %4738 = vmatmul.bf16.gmra.mxu0 %v10394_v23  ;;  %4912 = vmatpush.bf16.msrb.mxu2 %v7970_v29  ;;  %v7890_v41 = vor.u32 %v8756_v50, %v7889_v26  ;;  %v8483_v29 = vld [vmem:[#allocation11 + $0x1b0] sm:$0xf0]  ;;  %v6713_v26 = vld [vmem:[#allocation11 + $0xb8] sm:$0xf]  ;;  %v8462_v50 = vld [vmem:[#allocation11 + $0x108] sm:$0xf0] }
 0x366   : > { %4873 = vmatpush.bf16.msrb.mxu0 %v6878_v5  ;;  %v7138_v5 = vor.u32 %v8557_v58, %v7135_v25  ;;  %v6714_v44 = vor.u32 %v8462_v50, %v6713_v26  ;;  %v8141_v25 = vld [vmem:[#allocation11 + $0xbe0] sm:$0xf] }
 0x367   : > { %v2005_v9 = vpop.f32.mrf.mxu2 }
 0x368   : > { %4890 = vmatpush.bf16.msrb.mxu1 %v7634_v61  ;;  %v7049_v61 = vld [vmem:[#allocation11 + $0x358] sm:$0xf]  ;;  %v8714_v9 = vld [vmem:[#allocation11 + $0x8e8] sm:$0xf0] }
 0x369   : > { %v7050_v8 = vor.u32 %v8546_v3, %v7049_v61  ;;  %v7722_v19 = vor.u32 %v8714_v9, %v7721_v15  ;;  %v6631_v61 = vld [vmem:[#allocation11 + $0x64] sm:$0xf0]  ;;  %v8057_v9 = vld [vmem:[#allocation11 + $0xb38] sm:$0xf] }
 0x36a   : > { %8292 = vmatmul.msk.bf16.gmra.mxu1 %vm4637_vm5, %v10399_v59  ;;  %4874 = vmatpush.bf16.msrb.mxu0 %v6794_v62  ;;  %v6965_v62 = vld [vmem:[#allocation11 + $0x2b0] sm:$0xf] }
 0x36c   : > { %4891 = vmatpush.bf16.msrb.mxu1 %v7550_v4  ;;  %v6966_v4 = vor.u32 %v8525_v7, %v6965_v62  ;;  %v8746_v62 = vld [vmem:[#allocation11 + $0x9ec] sm:$0xf]  ;;  %v7891_v7 = vld [vmem:[#allocation11 + $0xa3c] sm:$0xf0] }
 0x36e   : > { %4875 = vmatpush.bf16.msrb.mxu0 %v6710_v43  ;;  %v6882_v43 = vor.u32 %v8504_v39, %v6881_v36  ;;  %v7807_v39 = vld [vmem:[#allocation11 + $0x994] sm:$0xf0] }
 0x370   : > { %4892 = vmatpush.bf16.msrb.mxu1 %v7466_v38  ;;  %v7553_v38 = vld [vmem:[#allocation11 + $0x748] sm:$0xf] }
 0x371   : > { %v7554_v21 = vor.u32 %v8672_v57, %v7553_v38  ;;  %v7225_v38 = vld [vmem:[#allocation11 + $0x4b0] sm:$0xf]  ;;  %v8589_v57 = vld [vmem:[#allocation11 + $0x500] sm:$0xf0] }
 0x372   : > { %4876 = vmatpush.bf16.msrb.mxu0 %v6626_v35  ;;  %v6798_v35 = vor.u32 %v8483_v29, %v6797_v48  ;;  %v7226_v46 = vor.u32 %v8589_v57, %v7225_v38  ;;  %v7723_v48 = vld [vmem:[#allocation11 + $0x8ec] sm:$0xf0]  ;;  %v7729_v29 = vld [vmem:[#allocation11 + $0x8a0] sm:$0xf]  ;;  %v8484_v38 = vld [vmem:[#allocation11 + $0x1b8] sm:$0xf0] }
 0x373   : > { %4787 = vmatmul.bf16.vlgmr.msra.gmra.mxu3 %v10381_v2  ;;  %4841 = vmatmul.bf16.vlgmr.msra.gmra.mxu2 %v10381_v2  ;;  %v8599_v57 = vld [vmem:[#allocation11 + $0x554] sm:$0xf] }
 0x374   : > { %4893 = vmatpush.bf16.msrb.mxu1 %v7382_v11  ;;  %4923 = vmatpush.bf16.msra.mxu3 %v7218_v1  ;;  %v4657_v11 = vsel %vm583_vm0, %v4200_v20, 0  ;;  %v8225_v1 = vld [vmem:[#allocation11 + $0xc88] sm:$0xf] }
 0x375   : > { %8293 = vmatmul.msk.bf16.vlgmr.msra.gmra.mxu0 %vm4637_vm5, %v10386_v17  ;;  %4977 = vmatpush.bf16.msra.mxu2 %v7222_v28  ;;  %v8226_v28 = vor.u32 %v8840_v31, %v8225_v1  ;;  %v4201_v1 = vpack.c.b16 %v3760_v49, %v3760_v49  ;;  %v7645_v31 = vld [vmem:[#allocation11 + $0x7f8] sm:$0xf] }
 0x376   : > { %4941 = vmatpush.bf16.msra.mxu0 %v7890_v41  ;;  %v8452_v41 = vld [vmem:[#allocation11 + $0xbc] sm:$0xf] }
 0x377   : > { %v6718_v55 = vor.u32 %v8452_v41, %v6715_v51  ;;  %v4660_v50 = vsel %vm583_vm0, %v4201_v1, 0  ;;  %v7057_v41 = vld [vmem:[#allocation11 + $0x360] sm:$0xf]  ;;  %v7227_v1 = vld [vmem:[#allocation11 + $0x504] sm:$0xf0] }
 0x378   : > { %4894 = vmatpush.bf16.msrb.mxu1 %v7298_v53  ;;  %4924 = vmatpush.bf16.msra.mxu3 %v7134_v56  ;;  %v8630_v53 = vld [vmem:[#allocation11 + $0x648] sm:$0xf0]  ;;  %v8819_v56 = vld [vmem:[#allocation11 + $0xc30] sm:$0xf0] }
 0x379   : > { %4978 = vmatpush.bf16.msra.mxu2 %v7138_v5  ;;  %v7386_v58 = vor.u32 %v8630_v53, %v7385_v52  ;;  %v6629_v5 = vld [vmem:[#allocation11 + $0x10] sm:$0xf]  ;;  %v8142_v16 = vor.u32 %v8819_v56, %v8141_v25  ;;  %v8662_v52 = vld [vmem:[#allocation11 + $0x74c] sm:$0xf]  ;;  %v7555_v53 = vld [vmem:[#allocation11 + $0x79c] sm:$0xf0] }
 0x37a   : > { %4823 = vmatmul.bf16.vlgmr.msra.gmra.mxu1 %v10379_v27  ;;  %4942 = vmatpush.bf16.msra.mxu0 %v7806_v0  ;;  %v8431_v0 = vld [vmem:[#allocation11 + $0x14] sm:$0xf]  ;;  %v6630_v3 = vor.u32 %v8441_v63, %v6629_v5  ;;  %v8673_v25 = vld [vmem:[#allocation11 + $0x7a0] sm:$0xf0]  ;;  %v8830_v5 = vld [vmem:[#allocation11 + $0xc8c] sm:$0xf] }
 0x37b   : > { %v6634_v14 = vor.u32 %v8431_v0, %v6631_v61  ;;  %v6973_v0 = vld [vmem:[#allocation11 + $0x2b8] sm:$0xf]  ;;  %v8526_v61 = vld [vmem:[#allocation11 + $0x308] sm:$0xf0] }
 0x37c   : > { %4925 = vmatpush.bf16.msra.mxu3 %v7050_v8  ;;  %4962 = vmatpush.bf16.msra.mxu1 %v4657_v11  ;;  %v7301_v8 = vld [vmem:[#allocation11 + $0x550] sm:$0xf] }
 0x37d   : > { %4979 = vmatpush.bf16.msra.mxu2 %v7054_v18  ;;  %v7302_v15 = vor.u32 %v8609_v37, %v7301_v8  ;;  %v8798_v18 = vld [vmem:[#allocation11 + $0xb88] sm:$0xf0]  ;;  %v7471_v8 = vld [vmem:[#allocation11 + $0x6f4] sm:$0xf0]  ;;  %v7477_v37 = vld [vmem:[#allocation11 + $0x6a8] sm:$0xf] }
 0x37e   : > { %4943 = vmatpush.bf16.msra.mxu0 %v7722_v19  ;;  %v8058_v19 = vor.u32 %v8798_v18, %v8057_v9 }
 0x380   : > { %4926 = vmatpush.bf16.msra.mxu3 %v6966_v4  ;;  %4963 = vmatpush.bf16.msra.mxu1 %v8226_v28  ;;  %v7894_v4 = vor.u32 %v8746_v62, %v7891_v7  ;;  %v8694_v28 = vld [vmem:[#allocation11 + $0x848] sm:$0xf0]  ;;  %v8143_v62 = vld [vmem:[#allocation11 + $0xc34] sm:$0xf0] }
 0x381   : > { %4980 = vmatpush.bf16.msra.mxu2 %v6970_v45  ;;  %v8777_v45 = vld [vmem:[#allocation11 + $0xae0] sm:$0xf0]  ;;  %v7646_v40 = vor.u32 %v8694_v28, %v7645_v31  ;;  %v6637_v28 = vld [vmem:[#allocation11 + $0x18] sm:$0xf] }
 0x382   : > { %4944 = vmatpush.bf16.msra.mxu0 %v7638_v30  ;;  %v8725_v30 = vld [vmem:[#allocation11 + $0x944] sm:$0xf]  ;;  %v7974_v36 = vor.u32 %v8777_v45, %v7973_v13  ;;  %v7387_v13 = vld [vmem:[#allocation11 + $0x64c] sm:$0xf0]  ;;  %v7393_v45 = vld [vmem:[#allocation11 + $0x600] sm:$0xf] }
 0x383   : > { %4792 = vmatmul.bf16.gmra.mxu3 %v10394_v23  ;;  %4846 = vmatmul.bf16.gmra.mxu2 %v10394_v23  ;;  %v7810_v6 = vor.u32 %v8725_v30, %v7807_v39  ;;  %v8788_v39 = vld [vmem:[#allocation11 + $0xb3c] sm:$0xf] }
 0x384   : > { %4927 = vmatpush.bf16.msra.mxu3 %v6882_v43  ;;  %4964 = vmatpush.bf16.msra.mxu1 %v8142_v16  ;;  %v8736_v43 = vld [vmem:[#allocation11 + $0x998] sm:$0xf0]  ;;  %v8227_v16 = vld [vmem:[#allocation11 + $0xcdc] sm:$0xf0] }
 0x385   : > { %8294 = vmatmul.msk.bf16.gmra.mxu0 %vm4637_vm5, %v10399_v59  ;;  %4981 = vmatpush.bf16.msra.mxu2 %v6886_v42  ;;  %v7814_v42 = vor.u32 %v8736_v43, %v7813_v34  ;;  %v8230_v63 = vor.u32 %v8830_v5, %v8227_v16  ;;  %v8059_v34 = vld [vmem:[#allocation11 + $0xb8c] sm:$0xf0] }
 0x386   : > { %4945 = vmatpush.bf16.msra.mxu0 %v7554_v21  ;;  %v8704_v21 = vld [vmem:[#allocation11 + $0x89c] sm:$0xf] }
 0x387   : > { %v7726_v20 = vor.u32 %v8704_v21, %v7723_v48  ;;  %v7303_v21 = vld [vmem:[#allocation11 + $0x5a4] sm:$0xf0]  ;;  %v7309_v48 = vld [vmem:[#allocation11 + $0x558] sm:$0xf] }
 0x388   : > { %4928 = vmatpush.bf16.msra.mxu3 %v6798_v35  ;;  %4965 = vmatpush.bf16.msra.mxu1 %v8058_v19  ;;  %v8715_v35 = vld [vmem:[#allocation11 + $0x8f0] sm:$0xf0]  ;;  %v8809_v19 = vld [vmem:[#allocation11 + $0xbe4] sm:$0xf]  ;;  %v7306_v49 = vor.u32 %v8599_v57, %v7303_v21  ;;  %v8810_v57 = vld [vmem:[#allocation11 + $0xbec] sm:$0xf] }
 0x389   : > { %4982 = vmatpush.bf16.msra.mxu2 %v6802_v22  ;;  %v8568_v22 = vld [vmem:[#allocation11 + $0x458] sm:$0xf0]  ;;  %v7730_v11 = vor.u32 %v8715_v35, %v7729_v29  ;;  %v8146_v7 = vor.u32 %v8809_v19, %v8143_v62  ;;  %v8610_v29 = vld [vmem:[#allocation11 + $0x5a8] sm:$0xf0]  ;;  %v8767_v35 = vld [vmem:[#allocation11 + $0xa94] sm:$0xf] }
 0x38a   : > { %4828 = vmatmul.bf16.gmra.mxu1 %v10390_v60  ;;  %4946 = vmatpush.bf16.msra.mxu0 %v7470_v47  ;;  %v7142_v54 = vor.u32 %v8568_v22, %v7141_v10  ;;  %v7639_v47 = vld [vmem:[#allocation11 + $0x844] sm:$0xf0]  ;;  %v8705_v19 = vld [vmem:[#allocation11 + $0x8a4] sm:$0xf]  ;;  %v7731_v62 = vld [vmem:[#allocation11 + $0x8f4] sm:$0xf0] }
 0x38b   : > { %v7642_v26 = vor.u32 %v8683_v32, %v7639_v47  ;;  %v7975_v10 = vld [vmem:[#allocation11 + $0xae4] sm:$0xf0]  ;;  %v8579_v47 = vld [vmem:[#allocation11 + $0x4b4] sm:$0xf]  ;;  %v8151_v21 = vld [vmem:[#allocation11 + $0xc3c] sm:$0xf0] }
 0x38c   : > { %4929 = vmatpush.bf16.msra.mxu3 %v6714_v44  ;;  %4966 = vmatpush.bf16.msra.mxu1 %v7974_v36  ;;  %v8547_v44 = vld [vmem:[#allocation11 + $0x3b0] sm:$0xf0]  ;;  %v7978_v22 = vor.u32 %v8767_v35, %v7975_v10  ;;  %v7230_v31 = vor.u32 %v8579_v47, %v7227_v1  ;;  %v7563_v10 = vld [vmem:[#allocation11 + $0x7a4] sm:$0xf0]  ;;  %v8067_v1 = vld [vmem:[#allocation11 + $0xb94] sm:$0xf0] }
 0x38d   : > { %4983 = vmatpush.bf16.msra.mxu2 %v6718_v55  ;;  %v7058_v51 = vor.u32 %v8547_v44, %v7057_v41  ;;  %v7561_v55 = vld [vmem:[#allocation11 + $0x750] sm:$0xf]  ;;  %v8631_v36 = vld [vmem:[#allocation11 + $0x650] sm:$0xf0]  ;;  %v7143_v41 = vld [vmem:[#allocation11 + $0x45c] sm:$0xf0] }
 0x38e   : > { %4947 = vmatpush.bf16.msra.mxu0 %v7386_v58  ;;  %v7558_v58 = vor.u32 %v8662_v52, %v7555_v53  ;;  %v7562_v56 = vor.u32 %v8673_v25, %v7561_v55  ;;  %v7394_v43 = vor.u32 %v8631_v36, %v7393_v45  ;;  %v7899_v52 = vld [vmem:[#allocation11 + $0xa44] sm:$0xf0]  ;;  %v2456_v55 = vld [vmem:[#allocation11 + $0xd38] sm:$0xff]  ;;  %v8663_v35 = vld [vmem:[#allocation11 + $0x754] sm:$0xf] }
 0x38f   : > { %v7059_v25 = vld [vmem:[#allocation11 + $0x3b4] sm:$0xf0]  ;;  %v3762_v5 = vunpack.c.h.b16 %v2456_v55  ;;  %v6891_v36 = vld [vmem:[#allocation11 + $0x264] sm:$0xf0] }
 0x390   : > { %4930 = vmatpush.bf16.msra.mxu3 %v6630_v3  ;;  %v8641_v3 = vld [vmem:[#allocation11 + $0x6a4] sm:$0xf] }
 0x391   : > { %4984 = vmatpush.bf16.msra.mxu2 %v6634_v14  ;;  %v6974_v14 = vor.u32 %v8526_v61, %v6973_v0  ;;  %v7474_v9 = vor.u32 %v8641_v3, %v7471_v8  ;;  %v7815_v0 = vld [vmem:[#allocation11 + $0x99c] sm:$0xf0] }
 0x392   : > { %4948 = vmatpush.bf16.msra.mxu0 %v7302_v15  ;;  %v8652_v15 = vld [vmem:[#allocation11 + $0x6f8] sm:$0xf0] }
 0x393   : > { %8295 = vmatmul.msk.bf16.vlgmr.msrb.gmra.mxu3 %vm4637_vm5, %v10386_v17  ;;  %8297 = vmatmul.msk.bf16.vlgmr.msrb.gmra.mxu2 %vm4637_vm5, %v10386_v17  ;;  %v7478_v18 = vor.u32 %v8652_v15, %v7477_v37  ;;  %v8516_v15 = vld [vmem:[#allocation11 + $0x2bc] sm:$0xf] }
 0x394   : > { %4995 = vmatpush.bf16.msrb.mxu3 %v7894_v4  ;;  %v8505_v4 = vld [vmem:[#allocation11 + $0x260] sm:$0xf0] }
 0x395   : > { %4877 = vmatmul.bf16.vlgmr.msrb.gmra.mxu0 %v10379_v27  ;;  %5049 = vmatpush.bf16.msrb.mxu2 %v7898_v33  ;;  %v6890_v24 = vor.u32 %v8505_v4, %v6889_v12  ;;  %v8620_v33 = vld [vmem:[#allocation11 + $0x5fc] sm:$0xf]  ;;  %v8233_v12 = vld [vmem:[#allocation11 + $0xc90] sm:$0xf]  ;;  %v8841_v4 = vld [vmem:[#allocation11 + $0xce0] sm:$0xf0] }
 0x396   : > { %5016 = vmatpush.bf16.msrb.mxu0 %v4660_v50  ;;  %v7390_v30 = vor.u32 %v8620_v33, %v7387_v13  ;;  %v8234_v33 = vor.u32 %v8841_v4, %v8233_v12  ;;  %v8235_v13 = vld [vmem:[#allocation11 + $0xce4] sm:$0xf0]  ;;  %v8600_v12 = vld [vmem:[#allocation11 + $0x55c] sm:$0xf]  ;;  %v7311_v4 = vld [vmem:[#allocation11 + $0x5ac] sm:$0xf0] }
 0x398   : > { %4996 = vmatpush.bf16.msrb.mxu3 %v7810_v6  ;;  %v8062_v6 = vor.u32 %v8788_v39, %v8059_v34  ;;  %v8684_v34 = vld [vmem:[#allocation11 + $0x7fc] sm:$0xf] }
 0x399   : > { %5050 = vmatpush.bf16.msrb.mxu2 %v7814_v42  ;;  %v6805_v42 = vld [vmem:[#allocation11 + $0x168] sm:$0xf] }
 0x39a   : > { %4895 = vmatmul.bf16.vlgmr.msrb.gmra.mxu1 %v10381_v2  ;;  %5017 = vmatpush.bf16.msrb.mxu0 %v8230_v63  ;;  %v8726_v63 = vld [vmem:[#allocation11 + $0x94c] sm:$0xf] }
 0x39b   : > { %5031 = vmatpush.bf16.msrb.mxu1 %v7226_v46  ;;  %v6806_v46 = vor.u32 %v8484_v38, %v6805_v42  ;;  %v7818_v61 = vor.u32 %v8726_v63, %v7815_v0  ;;  %v8149_v42 = vld [vmem:[#allocation11 + $0xbe8] sm:$0xf]  ;;  %v8820_v38 = vld [vmem:[#allocation11 + $0xc38] sm:$0xf0]  ;;  %v8621_v63 = vld [vmem:[#allocation11 + $0x604] sm:$0xf] }
 0x39c   : > { %4997 = vmatpush.bf16.msrb.mxu3 %v7726_v20  ;;  %v7310_v20 = vor.u32 %v8610_v29, %v7309_v48  ;;  %v8154_v48 = vor.u32 %v8810_v57, %v8151_v21  ;;  %v8474_v29 = vld [vmem:[#allocation11 + $0x16c] sm:$0xf]  ;;  %v7395_v0 = vld [vmem:[#allocation11 + $0x654] sm:$0xf0]  ;;  %v8737_v57 = vld [vmem:[#allocation11 + $0x9a0] sm:$0xf0] }
 0x39d   : > { %5051 = vmatpush.bf16.msrb.mxu2 %v7730_v11  ;;  %v6721_v11 = vld [vmem:[#allocation11 + $0xc0] sm:$0xf] }
 0x39e   : > { %5018 = vmatpush.bf16.msrb.mxu0 %v8146_v7  ;;  %v7734_v7 = vor.u32 %v8705_v19, %v7731_v62  ;;  %v7905_v19 = vld [vmem:[#allocation11 + $0x9f8] sm:$0xf]  ;;  %v8758_v62 = vld [vmem:[#allocation11 + $0xa48] sm:$0xf0] }
 0x39f   : > { %5032 = vmatpush.bf16.msrb.mxu1 %v7142_v54  ;;  %v8463_v54 = vld [vmem:[#allocation11 + $0x110] sm:$0xf0] }
 0x3a0   : > { %4998 = vmatpush.bf16.msrb.mxu3 %v7642_v26  ;;  %v6722_v32 = vor.u32 %v8463_v54, %v6721_v11  ;;  %v8442_v26 = vld [vmem:[#allocation11 + $0x68] sm:$0xf0]  ;;  %v8065_v11 = vld [vmem:[#allocation11 + $0xb40] sm:$0xf]  ;;  %v8799_v54 = vld [vmem:[#allocation11 + $0xb90] sm:$0xf0] }
 0x3a1   : > { %5052 = vmatpush.bf16.msrb.mxu2 %v7646_v40  ;;  %v6638_v50 = vor.u32 %v8442_v26, %v6637_v28  ;;  %v8558_v40 = vld [vmem:[#allocation11 + $0x40c] sm:$0xf]  ;;  %v8066_v47 = vor.u32 %v8799_v54, %v8065_v11  ;;  %v8453_v28 = vld [vmem:[#allocation11 + $0xc4] sm:$0xf]  ;;  %v6723_v26 = vld [vmem:[#allocation11 + $0x114] sm:$0xf0] }
 0x3a2   : > { %5019 = vmatpush.bf16.msrb.mxu0 %v8062_v6  ;;  %v7146_v44 = vor.u32 %v8558_v40, %v7143_v41  ;;  %v8642_v40 = vld [vmem:[#allocation11 + $0x6ac] sm:$0xf]  ;;  %v7479_v41 = vld [vmem:[#allocation11 + $0x6fc] sm:$0xf0]  ;;  %v7737_v11 = vld [vmem:[#allocation11 + $0x8a8] sm:$0xf] }
 0x3a3   : > { %8296 = vmatmul.msk.bf16.gmra.mxu3 %vm4637_vm5, %v10399_v59  ;;  %8298 = vmatmul.msk.bf16.gmra.mxu2 %vm4637_vm5, %v10399_v59  ;;  %v8716_v54 = vld [vmem:[#allocation11 + $0x8f8] sm:$0xf0] }
 0x3a4   : > { %5033 = vmatpush.bf16.msrb.mxu1 %v7058_v51  ;;  %4999 = vmatpush.bf16.msrb.mxu3 %v7558_v58  ;;  %v8747_v51 = vld [vmem:[#allocation11 + $0x9f4] sm:$0xf]  ;;  %v8537_v58 = vld [vmem:[#allocation11 + $0x364] sm:$0xf] }
 0x3a5   : > { %4882 = vmatmul.bf16.gmra.mxu0 %v10390_v60  ;;  %5053 = vmatpush.bf16.msrb.mxu2 %v7562_v56  ;;  %v7902_v53 = vor.u32 %v8747_v51, %v7899_v52  ;;  %v3761_v56 = vunpack.c.l.b16 %v2456_v55  ;;  %v7062_v16 = vor.u32 %v8537_v58, %v7059_v25  ;;  %v7981_v51 = vld [vmem:[#allocation11 + $0xa98] sm:$0xf]  ;;  %v8778_v52 = vld [vmem:[#allocation11 + $0xae8] sm:$0xf0]  ;;  %v7983_v58 = vld [vmem:[#allocation11 + $0xaec] sm:$0xf0] }
 0x3a6   : > { %5020 = vmatpush.bf16.msrb.mxu0 %v7978_v22  ;;  %v7566_v22 = vor.u32 %v8663_v35, %v7563_v10  ;;  %v7982_v55 = vor.u32 %v8778_v52, %v7981_v51  ;;  %v7067_v10 = vld [vmem:[#allocation11 + $0x3bc] sm:$0xf0]  ;;  %v8695_v52 = vld [vmem:[#allocation11 + $0x850] sm:$0xf0] }
 0x3a7   : > { %v4202_v3 = vpack.c.b16 %v3761_v56, %v3761_v56  ;;  %v8432_v56 = vld [vmem:[#allocation11 + $0x1c] sm:$0xf]  ;;  %v7653_v51 = vld [vmem:[#allocation11 + $0x800] sm:$0xf] }
 0x3a8   : > { %5034 = vmatpush.bf16.msrb.mxu1 %v6974_v14  ;;  %5000 = vmatpush.bf16.msrb.mxu3 %v7474_v9  ;;  %v4203_v14 = vpack.c.b16 %v3762_v5, %v3762_v5  ;;  %v6975_v9 = vld [vmem:[#allocation11 + $0x30c] sm:$0xf0] }
 0x3a9   : > { %5054 = vmatpush.bf16.msrb.mxu2 %v7478_v18  ;;  %v4663_v8 = vsel %vm583_vm0, %v4202_v3, 0  ;;  %v6978_v18 = vor.u32 %v8516_v15, %v6975_v9  ;;  %v6639_v5 = vld [vmem:[#allocation11 + $0x6c] sm:$0xf0]  ;;  %v7398_v3 = vor.u32 %v8621_v63, %v7395_v0  ;;  %v10452_v63 = vld [vmem:[#allocation11 + $0xd40] sm:$0xff] }
 0x3aa   : > { %4900 = vmatmul.bf16.gmra.mxu1 %v10394_v23  ;;  %v4666_v37 = vsel %vm583_vm0, %v4203_v14, 0  ;;  %v7233_v14 = vld [vmem:[#allocation11 + $0x4b8] sm:$0xf]  ;;  %v7235_v9 = vld [vmem:[#allocation11 + $0x50c] sm:$0xf0] }
 0x3ac   : > { %5035 = vmatpush.bf16.msrb.mxu1 %v6890_v24  ;;  %5001 = vmatpush.bf16.msrb.mxu3 %v7390_v30  ;;  %v8831_v24 = vld [vmem:[#allocation11 + $0xc94] sm:$0xf] }
 0x3ad   : > { %5055 = vmatpush.bf16.msrb.mxu2 %v7394_v43  ;;  %v8238_v45 = vor.u32 %v8831_v24, %v8235_v13  ;;  %v8495_v30 = vld [vmem:[#allocation11 + $0x214] sm:$0xf]  ;;  %v7647_v43 = vld [vmem:[#allocation11 + $0x84c] sm:$0xf0]  ;;  %v7314_v13 = vor.u32 %v8600_v12, %v7311_v4  ;;  %v6815_v4 = vld [vmem:[#allocation11 + $0x1c4] sm:$0xf0] }
 0x3ae   : > { %v6894_v39 = vor.u32 %v8495_v30, %v6891_v36  ;;  %v7650_v6 = vor.u32 %v8684_v34, %v7647_v43  ;;  %v8569_v30 = vld [vmem:[#allocation11 + $0x460] sm:$0xf0]  ;;  %v8559_v36 = vld [vmem:[#allocation11 + $0x414] sm:$0xf] }
 0x3b0   : > { %5036 = vmatpush.bf16.msrb.mxu1 %v6806_v46  ;;  %5002 = vmatpush.bf16.msrb.mxu3 %v7306_v49  ;;  %v8150_v46 = vor.u32 %v8820_v38, %v8149_v42  ;;  %v6807_v49 = vld [vmem:[#allocation11 + $0x1bc] sm:$0xf0]  ;;  %v7821_v38 = vld [vmem:[#allocation11 + $0x950] sm:$0xf] }
 0x3b1   : > { %5056 = vmatpush.bf16.msrb.mxu2 %v7310_v20  ;;  %v6810_v20 = vor.u32 %v8474_v29, %v6807_v49  ;;  %v7822_v21 = vor.u32 %v8737_v57, %v7821_v38  ;;  %v7065_v29 = vld [vmem:[#allocation11 + $0x368] sm:$0xf]  ;;  %v8548_v49 = vld [vmem:[#allocation11 + $0x3b8] sm:$0xf0]  ;;  %v8454_v57 = vld [vmem:[#allocation11 + $0xcc] sm:$0xf] }
 0x3b2   : > { %v7066_v35 = vor.u32 %v8548_v49, %v7065_v29  ;;  %v8464_v38 = vld [vmem:[#allocation11 + $0x118] sm:$0xf0]  ;;  %v7401_v29 = vld [vmem:[#allocation11 + $0x608] sm:$0xf] }
 0x3b3   : > { %4931 = vmatmul.bf16.vlgmr.msra.gmra.mxu3 %v10379_v27  ;;  %4985 = vmatmul.bf16.vlgmr.msra.gmra.mxu2 %v10379_v27  ;;  %v8632_v49 = vld [vmem:[#allocation11 + $0x658] sm:$0xf0] }
 0x3b4   : > { %5037 = vmatpush.bf16.msrb.mxu1 %v6722_v32  ;;  %5070 = vmatpush.bf16.msra.mxu3 %v4663_v8  ;;  %v8789_v32 = vld [vmem:[#allocation11 + $0xb44] sm:$0xf]  ;;  %v8590_v8 = vld [vmem:[#allocation11 + $0x508] sm:$0xf0] }
 0x3b5   : > { %4949 = vmatmul.bf16.vlgmr.msra.gmra.mxu0 %v10381_v2  ;;  %5124 = vmatpush.bf16.msra.mxu2 %v4666_v37  ;;  %v8580_v37 = vld [vmem:[#allocation11 + $0x4bc] sm:$0xf]  ;;  %v7234_v15 = vor.u32 %v8590_v8, %v7233_v14  ;;  %v3763_v14 = vunpack.c.l.b16 %v10452_v63 }
 0x3b6   : > { %5085 = vmatpush.bf16.msra.mxu0 %v7230_v31  ;;  %v8070_v31 = vor.u32 %v8789_v32, %v8067_v1  ;;  %v7738_v32 = vor.u32 %v8716_v54, %v7737_v11 }
 0x3b8   : > { %5038 = vmatpush.bf16.msrb.mxu1 %v6638_v50  ;;  %5071 = vmatpush.bf16.msra.mxu3 %v8234_v33  ;;  %v6726_v50 = vor.u32 %v8453_v28, %v6723_v26  ;;  %v8527_v28 = vld [vmem:[#allocation11 + $0x310] sm:$0xf0]  ;;  %v8517_v26 = vld [vmem:[#allocation11 + $0x2c4] sm:$0xf] }
 0x3b9   : > { %5125 = vmatpush.bf16.msra.mxu2 %v8238_v45  ;;  %v7149_v45 = vld [vmem:[#allocation11 + $0x410] sm:$0xf] }
 0x3ba   : > { %8299 = vmatmul.msk.bf16.vlgmr.msra.gmra.mxu1 %vm4637_vm5, %v10386_v17  ;;  %5086 = vmatpush.bf16.msra.mxu0 %v7146_v44  ;;  %v7482_v44 = vor.u32 %v8642_v40, %v7479_v41  ;;  %v7150_v43 = vor.u32 %v8569_v30, %v7149_v45  ;;  %v6983_v41 = vld [vmem:[#allocation11 + $0x314] sm:$0xf0]  ;;  %v7485_v45 = vld [vmem:[#allocation11 + $0x6b0] sm:$0xf]  ;;  %v8653_v30 = vld [vmem:[#allocation11 + $0x700] sm:$0xf0] }
 0x3bc   : > { %5103 = vmatpush.bf16.msra.mxu1 %v7902_v53  ;;  %5072 = vmatpush.bf16.msra.mxu3 %v8150_v46  ;;  %v8768_v53 = vld [vmem:[#allocation11 + $0xa9c] sm:$0xf] }
 0x3bd   : > { %5126 = vmatpush.bf16.msra.mxu2 %v8154_v48  ;;  %v7986_v25 = vor.u32 %v8768_v53, %v7983_v58  ;;  %v7654_v53 = vor.u32 %v8695_v52, %v7653_v51  ;;  %v6897_v58 = vld [vmem:[#allocation11 + $0x218] sm:$0xf]  ;;  %v8073_v51 = vld [vmem:[#allocation11 + $0xb48] sm:$0xf]  ;;  %v8800_v52 = vld [vmem:[#allocation11 + $0xb98] sm:$0xf0] }
 0x3be   : > { %5087 = vmatpush.bf16.msra.mxu0 %v7062_v16  ;;  %v6642_v16 = vor.u32 %v8432_v56, %v6639_v5  ;;  %v8496_v56 = vld [vmem:[#allocation11 + $0x21c] sm:$0xf] }
 0x3c0   : > { %5104 = vmatpush.bf16.msra.mxu1 %v7818_v61  ;;  %5073 = vmatpush.bf16.msra.mxu3 %v8066_v47 }
 0x3c1   : > { %5127 = vmatpush.bf16.msra.mxu2 %v8070_v31  ;;  %v6981_v31 = vld [vmem:[#allocation11 + $0x2c0] sm:$0xf] }
 0x3c2   : > { %5088 = vmatpush.bf16.msra.mxu0 %v6978_v18  ;;  %v7238_v18 = vor.u32 %v8580_v37, %v7235_v9  ;;  %v6982_v40 = vor.u32 %v8527_v28, %v6981_v31  ;;  %v4204_v9 = vpack.c.b16 %v3763_v14, %v3763_v14 }
 0x3c3   : > { %4936 = vmatmul.bf16.gmra.mxu3 %v10390_v60  ;;  %4990 = vmatmul.bf16.gmra.mxu2 %v10390_v60 }
 0x3c4   : > { %5105 = vmatpush.bf16.msra.mxu1 %v7734_v7  ;;  %5074 = vmatpush.bf16.msra.mxu3 %v7982_v55  ;;  %v7906_v7 = vor.u32 %v8758_v62, %v7905_v19  ;;  %v8485_v19 = vld [vmem:[#allocation11 + $0x1c0] sm:$0xf0]  ;;  %v8475_v62 = vld [vmem:[#allocation11 + $0x174] sm:$0xf] }
 0x3c5   : > { %4954 = vmatmul.bf16.gmra.mxu0 %v10394_v23  ;;  %5128 = vmatpush.bf16.msra.mxu2 %v7986_v25  ;;  %v8506_v25 = vld [vmem:[#allocation11 + $0x268] sm:$0xf0] }
 0x3c6   : > { %5089 = vmatpush.bf16.msra.mxu0 %v6894_v39  ;;  %v6898_v5 = vor.u32 %v8506_v25, %v6897_v58  ;;  %v8748_v58 = vld [vmem:[#allocation11 + $0x9fc] sm:$0xf]  ;;  %v7907_v25 = vld [vmem:[#allocation11 + $0xa4c] sm:$0xf0] }
 0x3c8   : > { %5106 = vmatpush.bf16.msra.mxu1 %v7650_v6  ;;  %v7151_v6 = vld [vmem:[#allocation11 + $0x464] sm:$0xf0] }
 0x3c9   : > { %v7154_v42 = vor.u32 %v8559_v36, %v7151_v6  ;;  %v7486_v36 = vor.u32 %v8653_v30, %v7485_v45  ;;  %v8591_v45 = vld [vmem:[#allocation11 + $0x510] sm:$0xf0] }
 0x3ca   : > { %8300 = vmatmul.msk.bf16.gmra.mxu1 %vm4637_vm5, %v10399_v59  ;;  %5090 = vmatpush.bf16.msra.mxu0 %v6810_v20  ;;  %v8538_v20 = vld [vmem:[#allocation11 + $0x36c] sm:$0xf] }
 0x3cc   : > { %5107 = vmatpush.bf16.msra.mxu1 %v7566_v22  ;;  %v7070_v22 = vor.u32 %v8538_v20, %v7067_v10  ;;  %v7402_v20 = vor.u32 %v8632_v49, %v7401_v29  ;;  %v8821_v10 = vld [vmem:[#allocation11 + $0xc40] sm:$0xf0]  ;;  %v7655_v49 = vld [vmem:[#allocation11 + $0x854] sm:$0xf0] }
 0x3cd   : > { %v8685_v29 = vld [vmem:[#allocation11 + $0x804] sm:$0xf] }
 0x3ce   : > { %5091 = vmatpush.bf16.msra.mxu0 %v6726_v50 }
 0x3d0   : > { %5108 = vmatpush.bf16.msra.mxu1 %v7482_v44  ;;  %v6986_v44 = vor.u32 %v8517_v26, %v6983_v41  ;;  %v6647_v26 = vld [vmem:[#allocation11 + $0x74] sm:$0xf0]  ;;  %v8611_v41 = vld [vmem:[#allocation11 + $0x5b0] sm:$0xf0] }
 0x3d2   : > { %v4734_v61 = vpop.f32.mrf.mxu0  ;;  %5092 = vmatpush.bf16.msra.mxu0 %v6642_v16  ;;  %v6899_v16 = vld [vmem:[#allocation11 + $0x26c] sm:$0xf0] }
 0x3d3   : > { %5003 = vmatmul.bf16.vlgmr.msrb.gmra.mxu3 %v10381_v2  ;;  %5057 = vmatmul.bf16.vlgmr.msrb.gmra.mxu2 %v10381_v2  ;;  %v6902_v0 = vor.u32 %v8496_v56, %v6899_v16  ;;  %v7913_v56 = vld [vmem:[#allocation11 + $0xa00] sm:$0xf]  ;;  %v8759_v16 = vld [vmem:[#allocation11 + $0xa50] sm:$0xf0] }
 0x3d4   : > { %5109 = vmatpush.bf16.msra.mxu1 %v7398_v3  ;;  %5139 = vmatpush.bf16.msrb.mxu3 %v7234_v15  ;;  %v8674_v3 = vld [vmem:[#allocation11 + $0x7a8] sm:$0xf0] }
 0x3d5   : > { %8301 = vmatmul.msk.bf16.vlgmr.msrb.gmra.mxu0 %vm4637_vm5, %v10386_v17  ;;  %5193 = vmatpush.bf16.msrb.mxu2 %v7238_v18  ;;  %v6813_v18 = vld [vmem:[#allocation11 + $0x170] sm:$0xf] }
 0x3d6   : > { %v4716_v24 = vpop.f32.mrf.mxu3  ;;  %v10447_v33 = vpop.f32.mrf.mxu2  ;;  %5157 = vmatpush.bf16.msrb.mxu0 %v7906_v7  ;;  %v6814_v12 = vor.u32 %v8485_v19, %v6813_v18  ;;  %v7829_v18 = vld [vmem:[#allocation11 + $0x958] sm:$0xf] }
 0x3d7   : > { %v4735_v39 = vadd.f32 %v4734_v61, %v4716_v24  ;;  %v4752_v34 = vpop.f32.mrf.mxu1  ;;  %v7569_v61 = vld [vmem:[#allocation11 + $0x758] sm:$0xf]  ;;  %v4669_v24 = vsel %vm583_vm0, %v4204_v9, 0  ;;  %v7823_v9 = vld [vmem:[#allocation11 + $0x9a4] sm:$0xf0] }
 0x3d8   : > { %5110 = vmatpush.bf16.msra.mxu1 %v7314_v13  ;;  %5140 = vmatpush.bf16.msrb.mxu3 %v7150_v43  ;;  %v7570_v8 = vor.u32 %v8674_v3, %v7569_v61  ;;  %v6818_v13 = vor.u32 %v8475_v62, %v6815_v4  ;;  %v7989_v61 = vld [vmem:[#allocation11 + $0xaa0] sm:$0xf]  ;;  %v8779_v3 = vld [vmem:[#allocation11 + $0xaf0] sm:$0xf0] }
 0x3d9   : > { %v4753_v46 = vadd.f32 %v4752_v34, %v4735_v39  ;;  %5194 = vmatpush.bf16.msrb.mxu2 %v7154_v42  ;;  %v8241_v39 = vld [vmem:[#allocation11 + $0xc98] sm:$0xf]  ;;  %v8842_v34 = vld [vmem:[#allocation11 + $0xce8] sm:$0xf0]  ;;  %v6729_v42 = vld [vmem:[#allocation11 + $0xc8] sm:$0xf] }
 0x3da   : > { %v4736_v48 = vpop.f32.mrf.mxu0  ;;  %5039 = vmatmul.bf16.vlgmr.msrb.gmra.mxu1 %v10379_v27  ;;  %5158 = vmatpush.bf16.msrb.mxu0 %v7822_v21  ;;  %v8242_v6 = vor.u32 %v8842_v34, %v8241_v39  ;;  %v6731_v21 = vld [vmem:[#allocation11 + $0x11c] sm:$0xf0]  ;;  %v8706_v39 = vld [vmem:[#allocation11 + $0x8ac] sm:$0xf] }
 0x3db   : > { %5841 = vst [vmem:[#allocation4] sm:$0xff] %v4753_v46  ;;  %v6730_v46 = vor.u32 %v8464_v38, %v6729_v42  ;;  %v6734_v48 = vor.u32 %v8454_v57, %v6731_v21  ;;  %v7739_v34 = vld [vmem:[#allocation11 + $0x8fc] sm:$0xf0]  ;;  %v7157_v38 = vld [vmem:[#allocation11 + $0x418] sm:$0xf] }
 0x3dc   : > { %5141 = vmatpush.bf16.msrb.mxu3 %v7066_v35  ;;  %5178 = vmatpush.bf16.msrb.mxu1 %v4669_v24  ;;  %v8157_v35 = vld [vmem:[#allocation11 + $0xbf0] sm:$0xf]  ;;  %v8570_v57 = vld [vmem:[#allocation11 + $0x468] sm:$0xf0] }
 0x3dd   : > { %5195 = vmatpush.bf16.msrb.mxu2 %v7070_v22  ;;  %v8158_v54 = vor.u32 %v8821_v10, %v8157_v35  ;;  %v3764_v35 = vunpack.c.h.b16 %v10452_v63 }
 0x3de   : > { %v4718_v47 = vpop.f32.mrf.mxu3  ;;  %v4772_v1 = vpop.f32.mrf.mxu2  ;;  %5159 = vmatpush.bf16.msrb.mxu0 %v7738_v32  ;;  %v6645_v32 = vld [vmem:[#allocation11 + $0x20] sm:$0xf] }
 0x3df   : > { %v4754_v50 = vpop.f32.mrf.mxu1  ;;  %v8443_v47 = vld [vmem:[#allocation11 + $0x70] sm:$0xf0]  ;;  %v8433_v1 = vld [vmem:[#allocation11 + $0x24] sm:$0xf] }
 0x3e0   : > { %5142 = vmatpush.bf16.msrb.mxu3 %v6982_v40  ;;  %5179 = vmatpush.bf16.msrb.mxu1 %v8242_v6  ;;  %v6646_v28 = vor.u32 %v8443_v47, %v6645_v32  ;;  %v6650_v50 = vor.u32 %v8433_v1, %v6647_v26  ;;  %v7317_v40 = vld [vmem:[#allocation11 + $0x560] sm:$0xf]  ;;  %v8717_v6 = vld [vmem:[#allocation11 + $0x900] sm:$0xf0]  ;;  %v4205_v32 = vpack.c.b16 %v3764_v35, %v3764_v35  ;;  %v7073_v47 = vld [vmem:[#allocation11 + $0x370] sm:$0xf] }
 0x3e1   : > { %5196 = vmatpush.bf16.msrb.mxu2 %v6986_v44  ;;  %v7318_v44 = vor.u32 %v8611_v41, %v7317_v40  ;;  %v8549_v1 = vld [vmem:[#allocation11 + $0x3c0] sm:$0xf0]  ;;  %v7571_v40 = vld [vmem:[#allocation11 + $0x7ac] sm:$0xf0]  ;;  %v7577_v41 = vld [vmem:[#allocation11 + $0x760] sm:$0xf] }
 0x3e2   : > { %v4739_v55 = vpop.f32.mrf.mxu0  ;;  %5160 = vmatpush.bf16.msrb.mxu0 %v7654_v53  ;;  %v7074_v26 = vor.u32 %v8549_v1, %v7073_v47  ;;  %v6737_v1 = vld [vmem:[#allocation11 + $0xd0] sm:$0xf] }
 0x3e3   : > { %5008 = vmatmul.bf16.gmra.mxu3 %v10394_v23  ;;  %5062 = vmatmul.bf16.gmra.mxu2 %v10394_v23  ;;  %v8074_v55 = vor.u32 %v8800_v52, %v8073_v51  ;;  %v8832_v52 = vld [vmem:[#allocation11 + $0xc9c] sm:$0xf] }
 0x3e4   : > { %5143 = vmatpush.bf16.msrb.mxu3 %v6898_v5  ;;  %5180 = vmatpush.bf16.msrb.mxu1 %v8158_v54  ;;  %v7910_v5 = vor.u32 %v8748_v58, %v7907_v25  ;;  %v6989_v58 = vld [vmem:[#allocation11 + $0x2c8] sm:$0xf]  ;;  %v8528_v25 = vld [vmem:[#allocation11 + $0x318] sm:$0xf0] }
 0x3e5   : > { %8302 = vmatmul.msk.bf16.gmra.mxu0 %vm4637_vm5, %v10399_v59  ;;  %5197 = vmatpush.bf16.msrb.mxu2 %v6902_v0  ;;  %v7914_v0 = vor.u32 %v8759_v16, %v7913_v56  ;;  %v6990_v16 = vor.u32 %v8528_v25, %v6989_v58 }
 0x3e6   : > { %v4721_v37 = vpop.f32.mrf.mxu3  ;;  %v4775_v15 = vpop.f32.mrf.mxu2  ;;  %5161 = vmatpush.bf16.msrb.mxu0 %v7570_v8 }
 0x3e7   : > { %v4757_v7 = vpop.f32.mrf.mxu1  ;;  %v7990_v37 = vor.u32 %v8779_v3, %v7989_v61  ;;  %v8727_v15 = vld [vmem:[#allocation11 + $0x954] sm:$0xf]  ;;  %v7487_v61 = vld [vmem:[#allocation11 + $0x704] sm:$0xf0]  ;;  %v7493_v3 = vld [vmem:[#allocation11 + $0x6b8] sm:$0xf] }
 0x3e8   : > { %5144 = vmatpush.bf16.msrb.mxu3 %v6814_v12  ;;  %5181 = vmatpush.bf16.msrb.mxu1 %v8074_v55  ;;  %v7826_v7 = vor.u32 %v8727_v15, %v7823_v9  ;;  %v8738_v12 = vld [vmem:[#allocation11 + $0x9a8] sm:$0xf0] }
 0x3e9   : > { %5198 = vmatpush.bf16.msrb.mxu2 %v6818_v13  ;;  %v7830_v4 = vor.u32 %v8738_v12, %v7829_v18  ;;  %v7241_v13 = vld [vmem:[#allocation11 + $0x4c0] sm:$0xf]  ;;  %v8654_v15 = vld [vmem:[#allocation11 + $0x708] sm:$0xf0]  ;;  %v8811_v18 = vld [vmem:[#allocation11 + $0xbf4] sm:$0xf] }
 0x3ea   : > { %v4741_v43 = vpop.f32.mrf.mxu0  ;;  %5044 = vmatmul.bf16.gmra.mxu1 %v10390_v60  ;;  %5162 = vmatpush.bf16.msrb.mxu0 %v7486_v36  ;;  %v7242_v36 = vor.u32 %v8591_v45, %v7241_v13  ;;  %v7494_v9 = vor.u32 %v8654_v15, %v7493_v3  ;;  %v6905_v12 = vld [vmem:[#allocation11 + $0x220] sm:$0xf]  ;;  %v8622_v45 = vld [vmem:[#allocation11 + $0x60c] sm:$0xf]  ;;  %v8539_v15 = vld [vmem:[#allocation11 + $0x374] sm:$0xf] }
 0x3eb   : > { %v7745_v43 = vld [vmem:[#allocation11 + $0x8b0] sm:$0xf] }
 0x3ec   : > { %5145 = vmatpush.bf16.msrb.mxu3 %v6730_v46  ;;  %5182 = vmatpush.bf16.msrb.mxu1 %v7990_v37  ;;  %v7746_v42 = vor.u32 %v8717_v6, %v7745_v43  ;;  %v8075_v6 = vld [vmem:[#allocation11 + $0xb9c] sm:$0xf0] }
 0x3ed   : > { %5199 = vmatpush.bf16.msrb.mxu2 %v6734_v48  ;;  %v7158_v48 = vor.u32 %v8570_v57, %v7157_v38  ;;  %v6821_v38 = vld [vmem:[#allocation11 + $0x178] sm:$0xf]  ;;  %v8486_v57 = vld [vmem:[#allocation11 + $0x1c8] sm:$0xf0] }
 0x3ee   : > { %v4723_v22 = vpop.f32.mrf.mxu3  ;;  %v4777_v11 = vpop.f32.mrf.mxu2  ;;  %5163 = vmatpush.bf16.msrb.mxu0 %v7402_v20  ;;  %v7661_v20 = vld [vmem:[#allocation11 + $0x808] sm:$0xf] }
 0x3ef   : > { %v4759_v31 = vpop.f32.mrf.mxu1  ;;  %v7658_v22 = vor.u32 %v8685_v29, %v7655_v49  ;;  %v8696_v11 = vld [vmem:[#allocation11 + $0x858] sm:$0xf0]  ;;  %v8601_v29 = vld [vmem:[#allocation11 + $0x564] sm:$0xf]  ;;  %v7319_v49 = vld [vmem:[#allocation11 + $0x5b4] sm:$0xf0] }
 0x3f0   : > { %5146 = vmatpush.bf16.msrb.mxu3 %v6646_v28  ;;  %v7662_v54 = vor.u32 %v8696_v11, %v7661_v20  ;;  %v4672_v28 = vsel %vm583_vm0, %v4205_v32, 0  ;;  %v7325_v20 = vld [vmem:[#allocation11 + $0x568] sm:$0xf]  ;;  %v7991_v32 = vld [vmem:[#allocation11 + $0xaf4] sm:$0xf0] }
 0x3f1   : > { %5200 = vmatpush.bf16.msrb.mxu2 %v6650_v50  ;;  %v8664_v50 = vld [vmem:[#allocation11 + $0x75c] sm:$0xf] }
 0x3f2   : > { %v4806_v53 = vpop.f32.mrf.mxu0  ;;  %5164 = vmatpush.bf16.msrb.mxu0 %v7318_v44  ;;  %v7574_v63 = vor.u32 %v8664_v50, %v7571_v40  ;;  %v8675_v44 = vld [vmem:[#allocation11 + $0x7b0] sm:$0xf0]  ;;  %v8581_v50 = vld [vmem:[#allocation11 + $0x4c4] sm:$0xf]  ;;  %v7243_v40 = vld [vmem:[#allocation11 + $0x514] sm:$0xf0] }
 0x3f3   : > { %8303 = vmatmul.msk.bf16.vlgmr.msra.gmra.mxu3 %vm4637_vm5, %v10386_v17  ;;  %8305 = vmatmul.msk.bf16.vlgmr.msra.gmra.mxu2 %vm4637_vm5, %v10386_v17  ;;  %v7578_v51 = vor.u32 %v8675_v44, %v7577_v41  ;;  %v7246_v41 = vor.u32 %v8581_v50, %v7243_v40  ;;  %v6653_v44 = vld [vmem:[#allocation11 + $0x28] sm:$0xf]  ;;  %v8822_v50 = vld [vmem:[#allocation11 + $0xc48] sm:$0xf0]  ;;  %v8812_v40 = vld [vmem:[#allocation11 + $0xbfc] sm:$0xf] }
 0x3f4   : > { %5211 = vmatpush.bf16.msra.mxu3 %v7910_v5 }
 0x3f5   : > { %5093 = vmatmul.bf16.vlgmr.msra.gmra.mxu0 %v10379_v27  ;;  %5265 = vmatpush.bf16.msra.mxu2 %v7914_v0  ;;  %v8643_v0 = vld [vmem:[#allocation11 + $0x6b4] sm:$0xf] }
 0x3f6   : > { %v4788_v14 = vpop.f32.mrf.mxu3  ;;  %v10464_v8 = vpop.f32.mrf.mxu2  ;;  %5232 = vmatpush.bf16.msra.mxu0 %v4672_v28  ;;  %v7490_v37 = vor.u32 %v8643_v0, %v7487_v61  ;;  %v8749_v61 = vld [vmem:[#allocation11 + $0xa04] sm:$0xf] }
 0x3f7   : > { %v4789_v19 = vadd.f32 %v4788_v14, %v10447_v33  ;;  %v10467_v62 = vpop.f32.mrf.mxu1  ;;  %v7742_v33 = vor.u32 %v8706_v39, %v7739_v34  ;;  %v8633_v34 = vld [vmem:[#allocation11 + $0x660] sm:$0xf0] }
 0x3f8   : > { %5212 = vmatpush.bf16.msra.mxu3 %v7826_v7 }
 0x3f9   : > { %v4807_v24 = vadd.f32 %v4806_v53, %v4789_v19  ;;  %5266 = vmatpush.bf16.msra.mxu2 %v7830_v4  ;;  %v8243_v53 = vld [vmem:[#allocation11 + $0xcec] sm:$0xf0]  ;;  %v8159_v19 = vld [vmem:[#allocation11 + $0xc44] sm:$0xf0]  ;;  %v8507_v4 = vld [vmem:[#allocation11 + $0x270] sm:$0xf0] }
 0x3fa   : > { %v4808_v30 = vpop.f32.mrf.mxu0  ;;  %5111 = vmatmul.bf16.vlgmr.msra.gmra.mxu1 %v10381_v2  ;;  %v8246_v55 = vor.u32 %v8832_v52, %v8243_v53  ;;  %v8162_v7 = vor.u32 %v8811_v18, %v8159_v19  ;;  %v6906_v13 = vor.u32 %v8507_v4, %v6905_v12  ;;  %v8728_v12 = vld [vmem:[#allocation11 + $0x95c] sm:$0xf]  ;;  %v7831_v4 = vld [vmem:[#allocation11 + $0x9ac] sm:$0xf0] }
 0x3fb   : > { %5842 = vst [vmem:[#allocation4 + $0x8] sm:$0xff] %v4807_v24  ;;  %5247 = vmatpush.bf16.msra.mxu1 %v7242_v36  ;;  %v7403_v30 = vld [vmem:[#allocation11 + $0x65c] sm:$0xf0]  ;;  %v7409_v36 = vld [vmem:[#allocation11 + $0x610] sm:$0xf] }
 0x3fc   : > { %5213 = vmatpush.bf16.msra.mxu3 %v7742_v33  ;;  %5233 = vmatpush.bf16.msra.mxu0 %v8246_v55  ;;  %v7406_v39 = vor.u32 %v8622_v45, %v7403_v30  ;;  %v7410_v43 = vor.u32 %v8633_v34, %v7409_v36  ;;  %v8790_v33 = vld [vmem:[#allocation11 + $0xb4c] sm:$0xf]  ;;  %v7834_v45 = vor.u32 %v8728_v12, %v7831_v4  ;;  %v7997_v4 = vld [vmem:[#allocation11 + $0xaa8] sm:$0xf] }
 0x3fd   : > { %5267 = vmatpush.bf16.msra.mxu2 %v7746_v42  ;;  %v8078_v42 = vor.u32 %v8790_v33, %v8075_v6  ;;  %v8518_v33 = vld [vmem:[#allocation11 + $0x2cc] sm:$0xf]  ;;  %v6991_v6 = vld [vmem:[#allocation11 + $0x31c] sm:$0xf0] }
 0x3fe   : > { %v4790_v46 = vpop.f32.mrf.mxu3  ;;  %v4844_v21 = vpop.f32.mrf.mxu2 }
 0x3ff   : > { %v4826_v10 = vpop.f32.mrf.mxu1  ;;  %5248 = vmatpush.bf16.msra.mxu1 %v7158_v48  ;;  %v6822_v48 = vor.u32 %v8486_v57, %v6821_v38  ;;  %v8707_v38 = vld [vmem:[#allocation11 + $0x8b4] sm:$0xf]  ;;  %v7747_v57 = vld [vmem:[#allocation11 + $0x904] sm:$0xf0] }
 0x400   : > { %5214 = vmatpush.bf16.msra.mxu3 %v7658_v22  ;;  %5234 = vmatpush.bf16.msra.mxu0 %v8162_v7  ;;  %v7322_v10 = vor.u32 %v8601_v29, %v7319_v49  ;;  %v8612_v22 = vld [vmem:[#allocation11 + $0x5b8] sm:$0xf0]  ;;  %v8843_v29 = vld [vmem:[#allocation11 + $0xcf0] sm:$0xf0]  ;;  %v8833_v49 = vld [vmem:[#allocation11 + $0xca4] sm:$0xf] }
 0x401   : > { %5268 = vmatpush.bf16.msra.mxu2 %v7662_v54  ;;  %v7326_v11 = vor.u32 %v8612_v22, %v7325_v20  ;;  %v8769_v54 = vld [vmem:[#allocation11 + $0xaa4] sm:$0xf] }
 0x402   : > { %v4811_v31 = vpop.f32.mrf.mxu0  ;;  %v7994_v47 = vor.u32 %v8769_v54, %v7991_v32  ;;  %v8497_v22 = vld [vmem:[#allocation11 + $0x224] sm:$0xf]  ;;  %v8686_v32 = vld [vmem:[#allocation11 + $0x80c] sm:$0xf] }
 0x403   : > { %8304 = vmatmul.msk.bf16.gmra.mxu3 %vm4637_vm5, %v10399_v59  ;;  %8306 = vmatmul.msk.bf16.gmra.mxu2 %vm4637_vm5, %v10399_v59  ;;  %v8465_v31 = vld [vmem:[#allocation11 + $0x120] sm:$0xf0] }
 0x404   : > { %5249 = vmatpush.bf16.msra.mxu1 %v7074_v26  ;;  %5215 = vmatpush.bf16.msra.mxu3 %v7574_v63  ;;  %v6738_v26 = vor.u32 %v8465_v31, %v6737_v1  ;;  %v4843_v63 = vadd.f32 %v10464_v8, %v10467_v62  ;;  %v7915_v8 = vld [vmem:[#allocation11 + $0xa54] sm:$0xf0] }
 0x405   : > { %5098 = vmatmul.bf16.gmra.mxu0 %v10390_v60  ;;  %5269 = vmatpush.bf16.msra.mxu2 %v7578_v51  ;;  %v8444_v51 = vld [vmem:[#allocation11 + $0x78] sm:$0xf0] }
 0x406   : > { %v4793_v56 = vpop.f32.mrf.mxu3  ;;  %v4847_v5 = vpop.f32.mrf.mxu2  ;;  %5235 = vmatpush.bf16.msra.mxu0 %v8078_v42  ;;  %v6654_v55 = vor.u32 %v8444_v51, %v6653_v44  ;;  %v6994_v42 = vor.u32 %v8518_v33, %v6991_v6  ;;  %v8167_v44 = vld [vmem:[#allocation11 + $0xc4c] sm:$0xf0]  ;;  %v8623_v6 = vld [vmem:[#allocation11 + $0x614] sm:$0xf] }
 0x407   : > { %v4829_v14 = vpop.f32.mrf.mxu1  ;;  %v8560_v5 = vld [vmem:[#allocation11 + $0x41c] sm:$0xf]  ;;  %v8170_v51 = vor.u32 %v8812_v40, %v8167_v44 }
 0x408   : > { %5250 = vmatpush.bf16.msra.mxu1 %v6990_v16  ;;  %5216 = vmatpush.bf16.msra.mxu3 %v7490_v37  ;;  %v7159_v16 = vld [vmem:[#allocation11 + $0x46c] sm:$0xf0]  ;;  %v7918_v14 = vor.u32 %v8749_v61, %v7915_v8  ;;  %v2458_v37 = vld [vmem:[#allocation11 + $0xd48] sm:$0xff]  ;;  %v8791_v61 = vld [vmem:[#allocation11 + $0xb54] sm:$0xf] }
 0x409   : > { %5270 = vmatpush.bf16.msra.mxu2 %v7494_v9  ;;  %v7162_v0 = vor.u32 %v8560_v5, %v7159_v16  ;;  %v7075_v9 = vld [vmem:[#allocation11 + $0x3c4] sm:$0xf0]  ;;  %v3765_v18 = vunpack.c.l.b16 %v2458_v37  ;;  %v3766_v19 = vunpack.c.h.b16 %v2458_v37  ;;  %v8081_v16 = vld [vmem:[#allocation11 + $0xb50] sm:$0xf] }
 0x40a   : > { %v4813_v24 = vpop.f32.mrf.mxu0  ;;  %5116 = vmatmul.bf16.gmra.mxu1 %v10394_v23  ;;  %5236 = vmatpush.bf16.msra.mxu0 %v7994_v47  ;;  %v7078_v7 = vor.u32 %v8539_v15, %v7075_v9  ;;  %v7663_v47 = vld [vmem:[#allocation11 + $0x85c] sm:$0xf0]  ;;  %v6739_v37 = vld [vmem:[#allocation11 + $0x124] sm:$0xf0]  ;;  %v8644_v9 = vld [vmem:[#allocation11 + $0x6bc] sm:$0xf] }
 0x40b   : > { %v4206_v30 = vpack.c.b16 %v3765_v18, %v3765_v18  ;;  %v4207_v36 = vpack.c.b16 %v3766_v19, %v3766_v19  ;;  %v7495_v18 = vld [vmem:[#allocation11 + $0x70c] sm:$0xf0] }
 0x40c   : > { %5251 = vmatpush.bf16.msra.mxu1 %v6906_v13  ;;  %5217 = vmatpush.bf16.msra.mxu3 %v7406_v39  ;;  %v7498_v12 = vor.u32 %v8644_v9, %v7495_v18  ;;  %v8529_v9 = vld [vmem:[#allocation11 + $0x320] sm:$0xf0]  ;;  %v8519_v18 = vld [vmem:[#allocation11 + $0x2d4] sm:$0xf] }
 0x40d   : > { %5271 = vmatpush.bf16.msra.mxu2 %v7410_v43  ;;  %v4675_v34 = vsel %vm583_vm0, %v4206_v30, 0  ;;  %v4678_v43 = vsel %vm583_vm0, %v4207_v36, 0  ;;  %v7999_v36 = vld [vmem:[#allocation11 + $0xafc] sm:$0xf0] }
 0x40e   : > { %v4795_v46 = vpop.f32.mrf.mxu3  ;;  %v4849_v21 = vpop.f32.mrf.mxu2 }
 0x40f   : > { %v4831_v35 = vpop.f32.mrf.mxu1  ;;  %v7750_v21 = vor.u32 %v8707_v38, %v7747_v57 }
 0x410   : > { %5252 = vmatpush.bf16.msra.mxu1 %v6822_v48  ;;  %5218 = vmatpush.bf16.msra.mxu3 %v7322_v10  ;;  %v8249_v48 = vld [vmem:[#allocation11 + $0xca0] sm:$0xf]  ;;  %v8251_v35 = vld [vmem:[#allocation11 + $0xcf4] sm:$0xf0] }
 0x411   : > { %5272 = vmatpush.bf16.msra.mxu2 %v7326_v11  ;;  %v8250_v20 = vor.u32 %v8843_v29, %v8249_v48  ;;  %v8254_v10 = vor.u32 %v8833_v49, %v8251_v35  ;;  %v6907_v11 = vld [vmem:[#allocation11 + $0x274] sm:$0xf0]  ;;  %v8582_v48 = vld [vmem:[#allocation11 + $0x4cc] sm:$0xf]  ;;  %v7251_v49 = vld [vmem:[#allocation11 + $0x51c] sm:$0xf0] }
 0x412   : > { %v4878_v28 = vpop.f32.mrf.mxu0  ;;  %v6910_v54 = vor.u32 %v8497_v22, %v6907_v11  ;;  %v7921_v35 = vld [vmem:[#allocation11 + $0xa08] sm:$0xf]  ;;  %v8602_v11 = vld [vmem:[#allocation11 + $0x56c] sm:$0xf] }
 0x413   : > { %5147 = vmatmul.bf16.vlgmr.msrb.gmra.mxu3 %v10379_v27  ;;  %5201 = vmatmul.bf16.vlgmr.msrb.gmra.mxu2 %v10379_v27 }
 0x414   : > { %5253 = vmatpush.bf16.msra.mxu1 %v6738_v26  ;;  %5286 = vmatpush.bf16.msrb.mxu3 %v4675_v34  ;;  %v8165_v26 = vld [vmem:[#allocation11 + $0xbf8] sm:$0xf]  ;;  %v8434_v34 = vld [vmem:[#allocation11 + $0x2c] sm:$0xf] }
 0x415   : > { %5165 = vmatmul.bf16.vlgmr.msrb.gmra.mxu0 %v10381_v2  ;;  %5340 = vmatpush.bf16.msrb.mxu2 %v4678_v43  ;;  %v6655_v43 = vld [vmem:[#allocation11 + $0x7c] sm:$0xf0] }
 0x416   : > { %v4860_v52 = vpop.f32.mrf.mxu3  ;;  %v4914_v53 = vpop.f32.mrf.mxu2  ;;  %5301 = vmatpush.bf16.msrb.mxu0 %v7246_v41  ;;  %v8166_v41 = vor.u32 %v8822_v50, %v8165_v26  ;;  %v6658_v33 = vor.u32 %v8434_v34, %v6655_v43  ;;  %v8561_v26 = vld [vmem:[#allocation11 + $0x424] sm:$0xf]  ;;  %v8498_v34 = vld [vmem:[#allocation11 + $0x22c] sm:$0xf] }
 0x417   : > { %v4861_v58 = vadd.f32 %v4860_v52, %v4843_v63  ;;  %v4896_v25 = vpop.f32.mrf.mxu1  ;;  %v8476_v52 = vld [vmem:[#allocation11 + $0x17c] sm:$0xf] }
 0x418   : > { %v4897_v56 = vadd.f32 %v4896_v25, %v4878_v28  ;;  %5254 = vmatpush.bf16.msra.mxu1 %v6654_v55  ;;  %5287 = vmatpush.bf16.msrb.mxu3 %v8250_v20  ;;  %v7666_v28 = vor.u32 %v8686_v32, %v7663_v47  ;;  %v7579_v25 = vld [vmem:[#allocation11 + $0x7b4] sm:$0xf0]  ;;  %v7254_v20 = vor.u32 %v8582_v48, %v7251_v49 }
 0x419   : > { %5843 = vst [vmem:[#allocation4 + $0x10] sm:$0xff] %v4861_v58  ;;  %5341 = vmatpush.bf16.msrb.mxu2 %v8254_v10  ;;  %v8665_v58 = vld [vmem:[#allocation11 + $0x764] sm:$0xf]  ;;  %v8760_v10 = vld [vmem:[#allocation11 + $0xa58] sm:$0xf0] }
 0x41a   : > { %v4915_v62 = vadd.f32 %v4914_v53, %v4897_v56  ;;  %v4880_v3 = vpop.f32.mrf.mxu0  ;;  %8307 = vmatmul.msk.bf16.vlgmr.msrb.gmra.mxu1 %vm4637_vm5, %v10386_v17  ;;  %5302 = vmatpush.bf16.msrb.mxu0 %v7162_v0  ;;  %v6823_v53 = vld [vmem:[#allocation11 + $0x1cc] sm:$0xf0]  ;;  %v7582_v5 = vor.u32 %v8665_v58, %v7579_v25  ;;  %v8801_v0 = vld [vmem:[#allocation11 + $0xba0] sm:$0xf0]  ;;  %v7922_v22 = vor.u32 %v8760_v10, %v7921_v35  ;;  %v7081_v25 = vld [vmem:[#allocation11 + $0x378] sm:$0xf] }
 0x41b   : > { %v6826_v55 = vor.u32 %v8476_v52, %v6823_v53  ;;  %v8082_v8 = vor.u32 %v8801_v0, %v8081_v16  ;;  %v8739_v52 = vld [vmem:[#allocation11 + $0x9b0] sm:$0xf0]  ;;  %v7083_v0 = vld [vmem:[#allocation11 + $0x3cc] sm:$0xf0]  ;;  %v8477_v10 = vld [vmem:[#allocation11 + $0x184] sm:$0xf] }
 0x41c   : > { %5844 = vst [vmem:[#allocation4 + $0x18] sm:$0xff] %v4915_v62  ;;  %5319 = vmatpush.bf16.msrb.mxu1 %v7918_v14  ;;  %5288 = vmatpush.bf16.msrb.mxu3 %v8166_v41  ;;  %v8083_v62 = vld [vmem:[#allocation11 + $0xba4] sm:$0xf0]  ;;  %v8455_v14 = vld [vmem:[#allocation11 + $0xd4] sm:$0xf] }
 0x41d   : > { %5342 = vmatpush.bf16.msrb.mxu2 %v8170_v51  ;;  %v8086_v3 = vor.u32 %v8791_v61, %v8083_v62  ;;  %v6742_v15 = vor.u32 %v8455_v14, %v6739_v37  ;;  %v7167_v41 = vld [vmem:[#allocation11 + $0x474] sm:$0xf0]  ;;  %v7837_v51 = vld [vmem:[#allocation11 + $0x960] sm:$0xf]  ;;  %v8718_v62 = vld [vmem:[#allocation11 + $0x908] sm:$0xf0] }
 0x41e   : > { %v4862_v24 = vpop.f32.mrf.mxu3  ;;  %v4916_v13 = vpop.f32.mrf.mxu2  ;;  %5303 = vmatpush.bf16.msrb.mxu0 %v7078_v7  ;;  %v7170_v44 = vor.u32 %v8561_v26, %v7167_v41  ;;  %v8487_v35 = vld [vmem:[#allocation11 + $0x1d0] sm:$0xf0] }
 0x41f   : > { %v4898_v39 = vpop.f32.mrf.mxu1  ;;  %v8780_v24 = vld [vmem:[#allocation11 + $0xaf8] sm:$0xf0]  ;;  %v8770_v13 = vld [vmem:[#allocation11 + $0xaac] sm:$0xf] }
 0x420   : > { %5320 = vmatpush.bf16.msrb.mxu1 %v7834_v45  ;;  %5289 = vmatpush.bf16.msrb.mxu3 %v8082_v8  ;;  %v7998_v30 = vor.u32 %v8780_v24, %v7997_v4  ;;  %v8002_v39 = vor.u32 %v8770_v13, %v7999_v36  ;;  %v7753_v8 = vld [vmem:[#allocation11 + $0x8b8] sm:$0xf]  ;;  %v7669_v24 = vld [vmem:[#allocation11 + $0x810] sm:$0xf]  ;;  %v8697_v13 = vld [vmem:[#allocation11 + $0x860] sm:$0xf0] }
 0x421   : > { %5343 = vmatpush.bf16.msrb.mxu2 %v8086_v3  ;;  %v7754_v3 = vor.u32 %v8718_v62, %v7753_v8  ;;  %v6913_v36 = vld [vmem:[#allocation11 + $0x228] sm:$0xf] }
 0x422   : > { %v4883_v46 = vpop.f32.mrf.mxu0  ;;  %5304 = vmatpush.bf16.msrb.mxu0 %v6994_v42  ;;  %v7411_v42 = vld [vmem:[#allocation11 + $0x664] sm:$0xf0] }
 0x423   : > { %5152 = vmatmul.bf16.gmra.mxu3 %v10390_v60  ;;  %5206 = vmatmul.bf16.gmra.mxu2 %v10390_v60  ;;  %v7414_v57 = vor.u32 %v8623_v6, %v7411_v42  ;;  %v7249_v46 = vld [vmem:[#allocation11 + $0x4c8] sm:$0xf]  ;;  %v10501_v6 = vld [vmem:[#allocation11 + $0xd50] sm:$0xff] }
 0x424   : > { %5321 = vmatpush.bf16.msrb.mxu1 %v7750_v21  ;;  %5290 = vmatpush.bf16.msrb.mxu3 %v7998_v30  ;;  %v8592_v21 = vld [vmem:[#allocation11 + $0x518] sm:$0xf0] }
 0x425   : > { %5170 = vmatmul.bf16.gmra.mxu0 %v10394_v23  ;;  %5344 = vmatpush.bf16.msrb.mxu2 %v8002_v39  ;;  %v7250_v29 = vor.u32 %v8592_v21, %v7249_v46  ;;  %v8508_v39 = vld [vmem:[#allocation11 + $0x278] sm:$0xf0]  ;;  %v3767_v46 = vunpack.c.l.b16 %v10501_v6 }
 0x426   : > { %v4865_v1 = vpop.f32.mrf.mxu3  ;;  %v4919_v31 = vpop.f32.mrf.mxu2  ;;  %5305 = vmatpush.bf16.msrb.mxu0 %v6910_v54  ;;  %v7327_v54 = vld [vmem:[#allocation11 + $0x5bc] sm:$0xf0]  ;;  %v6914_v43 = vor.u32 %v8508_v39, %v6913_v36  ;;  %v8750_v36 = vld [vmem:[#allocation11 + $0xa0c] sm:$0xf] }
 0x427   : > { %v4901_v63 = vpop.f32.mrf.mxu1  ;;  %v7330_v1 = vor.u32 %v8602_v11, %v7327_v54  ;;  %v7165_v31 = vld [vmem:[#allocation11 + $0x420] sm:$0xf]  ;;  %v4208_v49 = vpack.c.b16 %v3767_v46, %v3767_v46  ;;  %v6831_v54 = vld [vmem:[#allocation11 + $0x1d4] sm:$0xf0] }
 0x428   : > { %5322 = vmatpush.bf16.msrb.mxu1 %v7666_v28  ;;  %v8571_v28 = vld [vmem:[#allocation11 + $0x470] sm:$0xf0]  ;;  %v7923_v39 = vld [vmem:[#allocation11 + $0xa5c] sm:$0xf0] }
 0x429   : > { %v7166_v63 = vor.u32 %v8571_v28, %v7165_v31  ;;  %v7501_v31 = vld [vmem:[#allocation11 + $0x6c0] sm:$0xf]  ;;  %v8655_v28 = vld [vmem:[#allocation11 + $0x710] sm:$0xf0] }
 0x42a   : > { %v4885_v56 = vpop.f32.mrf.mxu0  ;;  %8308 = vmatmul.msk.bf16.gmra.mxu1 %vm4637_vm5, %v10399_v59  ;;  %5306 = vmatpush.bf16.msrb.mxu0 %v6826_v55  ;;  %v7838_v55 = vor.u32 %v8739_v52, %v7837_v51  ;;  %v7502_v26 = vor.u32 %v8655_v28, %v7501_v31  ;;  %v8466_v51 = vld [vmem:[#allocation11 + $0x128] sm:$0xf0]  ;;  %v8456_v52 = vld [vmem:[#allocation11 + $0xdc] sm:$0xf]  ;;  %v8593_v31 = vld [vmem:[#allocation11 + $0x520] sm:$0xf0] }
 0x42b   : > { %v8550_v56 = vld [vmem:[#allocation11 + $0x3c8] sm:$0xf0] }
 0x42c   : > { %5323 = vmatpush.bf16.msrb.mxu1 %v7582_v5  ;;  %v8540_v5 = vld [vmem:[#allocation11 + $0x37c] sm:$0xf]  ;;  %v7082_v16 = vor.u32 %v8550_v56, %v7081_v25  ;;  %v7417_v25 = vld [vmem:[#allocation11 + $0x618] sm:$0xf]  ;;  %v8634_v56 = vld [vmem:[#allocation11 + $0x668] sm:$0xf0] }
 0x42d   : > { %v7086_v61 = vor.u32 %v8540_v5, %v7083_v0  ;;  %v7418_v5 = vor.u32 %v8634_v56, %v7417_v25  ;;  %v8823_v0 = vld [vmem:[#allocation11 + $0xc50] sm:$0xf0]  ;;  %v7671_v56 = vld [vmem:[#allocation11 + $0x864] sm:$0xf0] }
 0x42e   : > { %v4867_v19 = vpop.f32.mrf.mxu3  ;;  %v4921_v7 = vpop.f32.mrf.mxu2  ;;  %5307 = vmatpush.bf16.msrb.mxu0 %v6742_v15  ;;  %v6997_v15 = vld [vmem:[#allocation11 + $0x2d0] sm:$0xf]  ;;  %v8687_v25 = vld [vmem:[#allocation11 + $0x814] sm:$0xf] }
 0x42f   : > { %v4903_v45 = vpop.f32.mrf.mxu1  ;;  %v6998_v7 = vor.u32 %v8529_v9, %v6997_v15 }
 0x430   : > { %5324 = vmatpush.bf16.msrb.mxu1 %v7498_v12  ;;  %v6999_v12 = vld [vmem:[#allocation11 + $0x324] sm:$0xf0]  ;;  %v7670_v45 = vor.u32 %v8697_v13, %v7669_v24  ;;  %v8089_v24 = vld [vmem:[#allocation11 + $0xb58] sm:$0xf]  ;;  %v8802_v13 = vld [vmem:[#allocation11 + $0xba8] sm:$0xf0] }
 0x431   : > { %v7002_v4 = vor.u32 %v8519_v18, %v6999_v12  ;;  %v6663_v18 = vld [vmem:[#allocation11 + $0x84] sm:$0xf0]  ;;  %v8613_v12 = vld [vmem:[#allocation11 + $0x5c0] sm:$0xf0] }
 0x432   : > { %v4950_v38 = vpop.f32.mrf.mxu0  ;;  %5308 = vmatpush.bf16.msrb.mxu0 %v6658_v33  ;;  %v6915_v33 = vld [vmem:[#allocation11 + $0x27c] sm:$0xf0] }
 0x433   : > { %5219 = vmatmul.bf16.vlgmr.msra.gmra.mxu3 %v10381_v2  ;;  %5273 = vmatmul.bf16.vlgmr.msra.gmra.mxu2 %v10381_v2  ;;  %v6918_v42 = vor.u32 %v8498_v34, %v6915_v33  ;;  %v7929_v34 = vld [vmem:[#allocation11 + $0xa10] sm:$0xf]  ;;  %v8761_v33 = vld [vmem:[#allocation11 + $0xa60] sm:$0xf0] }
 0x434   : > { %5325 = vmatpush.bf16.msrb.mxu1 %v7414_v57  ;;  %5355 = vmatpush.bf16.msra.mxu3 %v7250_v29  ;;  %v8676_v57 = vld [vmem:[#allocation11 + $0x7b8] sm:$0xf0] }
 0x435   : > { %8309 = vmatmul.msk.bf16.vlgmr.msra.gmra.mxu0 %vm4637_vm5, %v10386_v17  ;;  %5409 = vmatpush.bf16.msra.mxu2 %v7254_v20  ;;  %v6829_v20 = vld [vmem:[#allocation11 + $0x180] sm:$0xf] }
 0x436   : > { %v4932_v32 = vpop.f32.mrf.mxu3  ;;  %v10496_v47 = vpop.f32.mrf.mxu2  ;;  %5373 = vmatpush.bf16.msra.mxu0 %v7922_v22  ;;  %v6830_v11 = vor.u32 %v8487_v35, %v6829_v20  ;;  %v7845_v20 = vld [vmem:[#allocation11 + $0x968] sm:$0xf] }
 0x437   : > { %v4951_v50 = vadd.f32 %v4950_v38, %v4932_v32  ;;  %v4968_v40 = vpop.f32.mrf.mxu1  ;;  %v7585_v38 = vld [vmem:[#allocation11 + $0x768] sm:$0xf]  ;;  %v4681_v32 = vsel %vm583_vm0, %v4208_v49, 0  ;;  %v7839_v49 = vld [vmem:[#allocation11 + $0x9b4] sm:$0xf0] }
 0x438   : > { %5326 = vmatpush.bf16.msrb.mxu1 %v7330_v1  ;;  %5356 = vmatpush.bf16.msra.mxu3 %v7166_v63  ;;  %v7586_v21 = vor.u32 %v8676_v57, %v7585_v38  ;;  %v6834_v1 = vor.u32 %v8477_v10, %v6831_v54  ;;  %v8005_v38 = vld [vmem:[#allocation11 + $0xab0] sm:$0xf]  ;;  %v8781_v57 = vld [vmem:[#allocation11 + $0xb00] sm:$0xf0] }
 0x439   : > { %v4969_v53 = vadd.f32 %v4968_v40, %v4951_v50  ;;  %5410 = vmatpush.bf16.msra.mxu2 %v7170_v44  ;;  %v8257_v50 = vld [vmem:[#allocation11 + $0xca8] sm:$0xf]  ;;  %v8844_v40 = vld [vmem:[#allocation11 + $0xcf8] sm:$0xf0]  ;;  %v6745_v44 = vld [vmem:[#allocation11 + $0xd8] sm:$0xf] }
 0x43a   : > { %v4952_v58 = vpop.f32.mrf.mxu0  ;;  %5255 = vmatmul.bf16.vlgmr.msra.gmra.mxu1 %v10379_v27  ;;  %5374 = vmatpush.bf16.msra.mxu0 %v7838_v55  ;;  %v8258_v41 = vor.u32 %v8844_v40, %v8257_v50  ;;  %v6747_v55 = vld [vmem:[#allocation11 + $0x12c] sm:$0xf0]  ;;  %v8708_v50 = vld [vmem:[#allocation11 + $0x8bc] sm:$0xf] }
 0x43b   : > { %5845 = vst [vmem:[#allocation4 + $0x20] sm:$0xff] %v4969_v53  ;;  %v6746_v53 = vor.u32 %v8466_v51, %v6745_v44  ;;  %v6750_v58 = vor.u32 %v8456_v52, %v6747_v55  ;;  %v7755_v40 = vld [vmem:[#allocation11 + $0x90c] sm:$0xf0]  ;;  %v7173_v51 = vld [vmem:[#allocation11 + $0x428] sm:$0xf] }
 0x43c   : > { %5357 = vmatpush.bf16.msra.mxu3 %v7082_v16  ;;  %5394 = vmatpush.bf16.msra.mxu1 %v4681_v32  ;;  %v8173_v16 = vld [vmem:[#allocation11 + $0xc00] sm:$0xf]  ;;  %v8572_v52 = vld [vmem:[#allocation11 + $0x478] sm:$0xf0] }
 0x43d   : > { %5411 = vmatpush.bf16.msra.mxu2 %v7086_v61  ;;  %v8174_v62 = vor.u32 %v8823_v0, %v8173_v16  ;;  %v3768_v16 = vunpack.c.h.b16 %v10501_v6 }
 0x43e   : > { %v4934_v14 = vpop.f32.mrf.mxu3  ;;  %v4988_v37 = vpop.f32.mrf.mxu2  ;;  %5375 = vmatpush.bf16.msra.mxu0 %v7754_v3  ;;  %v6661_v3 = vld [vmem:[#allocation11 + $0x30] sm:$0xf] }
 0x43f   : > { %v4970_v19 = vpop.f32.mrf.mxu1  ;;  %v8445_v14 = vld [vmem:[#allocation11 + $0x80] sm:$0xf0]  ;;  %v8435_v37 = vld [vmem:[#allocation11 + $0x34] sm:$0xf] }
 0x440   : > { %5358 = vmatpush.bf16.msra.mxu3 %v6998_v7  ;;  %5395 = vmatpush.bf16.msra.mxu1 %v8258_v41  ;;  %v6662_v9 = vor.u32 %v8445_v14, %v6661_v3  ;;  %v6666_v19 = vor.u32 %v8435_v37, %v6663_v18  ;;  %v7333_v7 = vld [vmem:[#allocation11 + $0x570] sm:$0xf]  ;;  %v8719_v41 = vld [vmem:[#allocation11 + $0x910] sm:$0xf0]  ;;  %v4209_v3 = vpack.c.b16 %v3768_v16, %v3768_v16  ;;  %v7089_v14 = vld [vmem:[#allocation11 + $0x380] sm:$0xf] }
 0x441   : > { %5412 = vmatpush.bf16.msra.mxu2 %v7002_v4  ;;  %v7334_v4 = vor.u32 %v8613_v12, %v7333_v7  ;;  %v8551_v37 = vld [vmem:[#allocation11 + $0x3d0] sm:$0xf0]  ;;  %v7587_v7 = vld [vmem:[#allocation11 + $0x7bc] sm:$0xf0]  ;;  %v7593_v12 = vld [vmem:[#allocation11 + $0x770] sm:$0xf] }
 0x442   : > { %v4955_v30 = vpop.f32.mrf.mxu0  ;;  %5376 = vmatpush.bf16.msra.mxu0 %v7670_v45  ;;  %v7090_v18 = vor.u32 %v8551_v37, %v7089_v14  ;;  %v6753_v37 = vld [vmem:[#allocation11 + $0xe0] sm:$0xf] }
 0x443   : > { %5224 = vmatmul.bf16.gmra.mxu3 %v10394_v23  ;;  %5278 = vmatmul.bf16.gmra.mxu2 %v10394_v23  ;;  %v8090_v30 = vor.u32 %v8802_v13, %v8089_v24  ;;  %v8834_v13 = vld [vmem:[#allocation11 + $0xcac] sm:$0xf] }
 0x444   : > { %5359 = vmatpush.bf16.msra.mxu3 %v6914_v43  ;;  %5396 = vmatpush.bf16.msra.mxu1 %v8174_v62  ;;  %v7926_v43 = vor.u32 %v8750_v36, %v7923_v39  ;;  %v7005_v36 = vld [vmem:[#allocation11 + $0x2d8] sm:$0xf]  ;;  %v8530_v39 = vld [vmem:[#allocation11 + $0x328] sm:$0xf0] }
 0x445   : > { %8310 = vmatmul.msk.bf16.gmra.mxu0 %vm4637_vm5, %v10399_v59  ;;  %5413 = vmatpush.bf16.msra.mxu2 %v6918_v42  ;;  %v7930_v42 = vor.u32 %v8761_v33, %v7929_v34  ;;  %v7006_v33 = vor.u32 %v8530_v39, %v7005_v36 }
 0x446   : > { %v4937_v48 = vpop.f32.mrf.mxu3  ;;  %v4991_v29 = vpop.f32.mrf.mxu2  ;;  %5377 = vmatpush.bf16.msra.mxu0 %v7586_v21 }
 0x447   : > { %v4973_v22 = vpop.f32.mrf.mxu1  ;;  %v8006_v48 = vor.u32 %v8781_v57, %v8005_v38  ;;  %v8729_v29 = vld [vmem:[#allocation11 + $0x964] sm:$0xf]  ;;  %v7503_v38 = vld [vmem:[#allocation11 + $0x714] sm:$0xf0]  ;;  %v7509_v57 = vld [vmem:[#allocation11 + $0x6c8] sm:$0xf] }
 0x448   : > { %5360 = vmatpush.bf16.msra.mxu3 %v6830_v11  ;;  %5397 = vmatpush.bf16.msra.mxu1 %v8090_v30  ;;  %v7842_v22 = vor.u32 %v8729_v29, %v7839_v49  ;;  %v8740_v11 = vld [vmem:[#allocation11 + $0x9b8] sm:$0xf0] }
 0x449   : > { %5414 = vmatpush.bf16.msra.mxu2 %v6834_v1  ;;  %v7846_v54 = vor.u32 %v8740_v11, %v7845_v20  ;;  %v7257_v1 = vld [vmem:[#allocation11 + $0x4d0] sm:$0xf]  ;;  %v8656_v29 = vld [vmem:[#allocation11 + $0x718] sm:$0xf0]  ;;  %v8813_v20 = vld [vmem:[#allocation11 + $0xc04] sm:$0xf] }
 0x44a   : > { %v4957_v63 = vpop.f32.mrf.mxu0  ;;  %5260 = vmatmul.bf16.gmra.mxu1 %v10390_v60  ;;  %5378 = vmatpush.bf16.msra.mxu0 %v7502_v26  ;;  %v7258_v26 = vor.u32 %v8593_v31, %v7257_v1  ;;  %v7510_v49 = vor.u32 %v8656_v29, %v7509_v57  ;;  %v6921_v11 = vld [vmem:[#allocation11 + $0x230] sm:$0xf]  ;;  %v8624_v31 = vld [vmem:[#allocation11 + $0x61c] sm:$0xf]  ;;  %v8541_v29 = vld [vmem:[#allocation11 + $0x384] sm:$0xf] }
 0x44b   : > { %v7761_v63 = vld [vmem:[#allocation11 + $0x8c0] sm:$0xf] }
 0x44c   : > { %5361 = vmatpush.bf16.msra.mxu3 %v6746_v53  ;;  %5398 = vmatpush.bf16.msra.mxu1 %v8006_v48  ;;  %v7762_v44 = vor.u32 %v8719_v41, %v7761_v63  ;;  %v8091_v41 = vld [vmem:[#allocation11 + $0xbac] sm:$0xf0] }
 0x44d   : > { %5415 = vmatpush.bf16.msra.mxu2 %v6750_v58  ;;  %v7174_v58 = vor.u32 %v8572_v52, %v7173_v51  ;;  %v6837_v51 = vld [vmem:[#allocation11 + $0x188] sm:$0xf]  ;;  %v8488_v52 = vld [vmem:[#allocation11 + $0x1d8] sm:$0xf0] }
 0x44e   : > { %v4939_v61 = vpop.f32.mrf.mxu3  ;;  %v4993_v8 = vpop.f32.mrf.mxu2  ;;  %5379 = vmatpush.bf16.msra.mxu0 %v7418_v5  ;;  %v7677_v5 = vld [vmem:[#allocation11 + $0x818] sm:$0xf] }
 0x44f   : > { %v4975_v15 = vpop.f32.mrf.mxu1  ;;  %v7674_v61 = vor.u32 %v8687_v25, %v7671_v56  ;;  %v8698_v8 = vld [vmem:[#allocation11 + $0x868] sm:$0xf0]  ;;  %v8603_v25 = vld [vmem:[#allocation11 + $0x574] sm:$0xf]  ;;  %v7335_v56 = vld [vmem:[#allocation11 + $0x5c4] sm:$0xf0] }
 0x450   : > { %5362 = vmatpush.bf16.msra.mxu3 %v6662_v9  ;;  %v7678_v62 = vor.u32 %v8698_v8, %v7677_v5  ;;  %v4684_v9 = vsel %vm583_vm0, %v4209_v3, 0  ;;  %v7341_v5 = vld [vmem:[#allocation11 + $0x578] sm:$0xf]  ;;  %v8007_v3 = vld [vmem:[#allocation11 + $0xb04] sm:$0xf0] }
 0x451   : > { %5416 = vmatpush.bf16.msra.mxu2 %v6666_v19  ;;  %v8666_v19 = vld [vmem:[#allocation11 + $0x76c] sm:$0xf] }
 0x452   : > { %v5022_v45 = vpop.f32.mrf.mxu0  ;;  %5380 = vmatpush.bf16.msra.mxu0 %v7334_v4  ;;  %v7590_v6 = vor.u32 %v8666_v19, %v7587_v7  ;;  %v8677_v4 = vld [vmem:[#allocation11 + $0x7c0] sm:$0xf0]  ;;  %v8583_v19 = vld [vmem:[#allocation11 + $0x4d4] sm:$0xf]  ;;  %v7259_v7 = vld [vmem:[#allocation11 + $0x524] sm:$0xf0] }
 0x453   : > { %8311 = vmatmul.msk.bf16.vlgmr.msrb.gmra.mxu3 %vm4637_vm5, %v10386_v17  ;;  %8313 = vmatmul.msk.bf16.vlgmr.msrb.gmra.mxu2 %vm4637_vm5, %v10386_v17  ;;  %v7594_v24 = vor.u32 %v8677_v4, %v7593_v12  ;;  %v7262_v12 = vor.u32 %v8583_v19, %v7259_v7  ;;  %v6669_v4 = vld [vmem:[#allocation11 + $0x38] sm:$0xf]  ;;  %v8824_v19 = vld [vmem:[#allocation11 + $0xc58] sm:$0xf0]  ;;  %v8814_v7 = vld [vmem:[#allocation11 + $0xc0c] sm:$0xf] }
 0x454   : > { %5427 = vmatpush.bf16.msrb.mxu3 %v7926_v43 }
 0x455   : > { %5309 = vmatmul.bf16.vlgmr.msrb.gmra.mxu0 %v10379_v27  ;;  %5481 = vmatpush.bf16.msrb.mxu2 %v7930_v42  ;;  %v8645_v42 = vld [vmem:[#allocation11 + $0x6c4] sm:$0xf] }
 0x456   : > { %v5004_v46 = vpop.f32.mrf.mxu3  ;;  %v10513_v21 = vpop.f32.mrf.mxu2  ;;  %5448 = vmatpush.bf16.msrb.mxu0 %v4684_v9  ;;  %v7506_v48 = vor.u32 %v8645_v42, %v7503_v38  ;;  %v8751_v38 = vld [vmem:[#allocation11 + $0xa14] sm:$0xf] }
 0x457   : > { %v5005_v35 = vadd.f32 %v5004_v46, %v10496_v47  ;;  %v10516_v10 = vpop.f32.mrf.mxu1  ;;  %v7758_v47 = vor.u32 %v8708_v50, %v7755_v40  ;;  %v8635_v40 = vld [vmem:[#allocation11 + $0x670] sm:$0xf0] }
 0x458   : > { %5428 = vmatpush.bf16.msrb.mxu3 %v7842_v22 }
 0x459   : > { %v5023_v32 = vadd.f32 %v5022_v45, %v5005_v35  ;;  %5482 = vmatpush.bf16.msrb.mxu2 %v7846_v54  ;;  %v8259_v45 = vld [vmem:[#allocation11 + $0xcfc] sm:$0xf0]  ;;  %v8175_v35 = vld [vmem:[#allocation11 + $0xc54] sm:$0xf0]  ;;  %v8509_v54 = vld [vmem:[#allocation11 + $0x280] sm:$0xf0] }
 0x45a   : > { %v5024_v28 = vpop.f32.mrf.mxu0  ;;  %5327 = vmatmul.bf16.vlgmr.msrb.gmra.mxu1 %v10381_v2  ;;  %v8262_v30 = vor.u32 %v8834_v13, %v8259_v45  ;;  %v8178_v22 = vor.u32 %v8813_v20, %v8175_v35  ;;  %v6922_v1 = vor.u32 %v8509_v54, %v6921_v11  ;;  %v8730_v11 = vld [vmem:[#allocation11 + $0x96c] sm:$0xf]  ;;  %v7847_v54 = vld [vmem:[#allocation11 + $0x9bc] sm:$0xf0] }
 0x45b   : > { %5846 = vst [vmem:[#allocation4 + $0x28] sm:$0xff] %v5023_v32  ;;  %5463 = vmatpush.bf16.msrb.mxu1 %v7258_v26  ;;  %v7419_v28 = vld [vmem:[#allocation11 + $0x66c] sm:$0xf0]  ;;  %v7425_v26 = vld [vmem:[#allocation11 + $0x620] sm:$0xf] }
 0x45c   : > { %5429 = vmatpush.bf16.msrb.mxu3 %v7758_v47  ;;  %5449 = vmatpush.bf16.msrb.mxu0 %v8262_v30  ;;  %v7422_v50 = vor.u32 %v8624_v31, %v7419_v28  ;;  %v7426_v63 = vor.u32 %v8635_v40, %v7425_v26  ;;  %v8792_v47 = vld [vmem:[#allocation11 + $0xb5c] sm:$0xf]  ;;  %v7850_v31 = vor.u32 %v8730_v11, %v7847_v54  ;;  %v8013_v54 = vld [vmem:[#allocation11 + $0xab8] sm:$0xf] }
 0x45d   : > { %5483 = vmatpush.bf16.msrb.mxu2 %v7762_v44  ;;  %v8094_v44 = vor.u32 %v8792_v47, %v8091_v41  ;;  %v8520_v47 = vld [vmem:[#allocation11 + $0x2dc] sm:$0xf]  ;;  %v7007_v41 = vld [vmem:[#allocation11 + $0x32c] sm:$0xf0] }
 0x45e   : > { %v5006_v53 = vpop.f32.mrf.mxu3  ;;  %v5060_v55 = vpop.f32.mrf.mxu2 }
 0x45f   : > { %v5042_v0 = vpop.f32.mrf.mxu1  ;;  %5464 = vmatpush.bf16.msrb.mxu1 %v7174_v58  ;;  %v6838_v58 = vor.u32 %v8488_v52, %v6837_v51  ;;  %v8709_v51 = vld [vmem:[#allocation11 + $0x8c4] sm:$0xf]  ;;  %v7763_v52 = vld [vmem:[#allocation11 + $0x914] sm:$0xf0] }
 0x460   : > { %5430 = vmatpush.bf16.msrb.mxu3 %v7674_v61  ;;  %5450 = vmatpush.bf16.msrb.mxu0 %v8178_v22  ;;  %v7338_v0 = vor.u32 %v8603_v25, %v7335_v56  ;;  %v8614_v61 = vld [vmem:[#allocation11 + $0x5c8] sm:$0xf0]  ;;  %v8845_v25 = vld [vmem:[#allocation11 + $0xd00] sm:$0xf0]  ;;  %v8835_v56 = vld [vmem:[#allocation11 + $0xcb4] sm:$0xf] }
 0x461   : > { %5484 = vmatpush.bf16.msrb.mxu2 %v7678_v62  ;;  %v7342_v8 = vor.u32 %v8614_v61, %v7341_v5  ;;  %v8771_v62 = vld [vmem:[#allocation11 + $0xab4] sm:$0xf] }
 0x462   : > { %v5027_v15 = vpop.f32.mrf.mxu0  ;;  %v8010_v14 = vor.u32 %v8771_v62, %v8007_v3  ;;  %v8499_v61 = vld [vmem:[#allocation11 + $0x234] sm:$0xf]  ;;  %v8688_v3 = vld [vmem:[#allocation11 + $0x81c] sm:$0xf] }
 0x463   : > { %8312 = vmatmul.msk.bf16.gmra.mxu3 %vm4637_vm5, %v10399_v59  ;;  %8314 = vmatmul.msk.bf16.gmra.mxu2 %vm4637_vm5, %v10399_v59  ;;  %v8467_v15 = vld [vmem:[#allocation11 + $0x130] sm:$0xf0] }
 0x464   : > { %5465 = vmatpush.bf16.msrb.mxu1 %v7090_v18  ;;  %5431 = vmatpush.bf16.msrb.mxu3 %v7590_v6  ;;  %v6754_v18 = vor.u32 %v8467_v15, %v6753_v37  ;;  %v5059_v6 = vadd.f32 %v10513_v21, %v10516_v10  ;;  %v7931_v21 = vld [vmem:[#allocation11 + $0xa64] sm:$0xf0] }
 0x465   : > { %5314 = vmatmul.bf16.gmra.mxu0 %v10390_v60  ;;  %5485 = vmatpush.bf16.msrb.mxu2 %v7594_v24  ;;  %v8446_v24 = vld [vmem:[#allocation11 + $0x88] sm:$0xf0] }
 0x466   : > { %v5009_v34 = vpop.f32.mrf.mxu3  ;;  %v5063_v43 = vpop.f32.mrf.mxu2  ;;  %5451 = vmatpush.bf16.msrb.mxu0 %v8094_v44  ;;  %v6670_v30 = vor.u32 %v8446_v24, %v6669_v4  ;;  %v7010_v44 = vor.u32 %v8520_v47, %v7007_v41  ;;  %v8183_v4 = vld [vmem:[#allocation11 + $0xc5c] sm:$0xf0]  ;;  %v8625_v41 = vld [vmem:[#allocation11 + $0x624] sm:$0xf] }
 0x467   : > { %v5045_v46 = vpop.f32.mrf.mxu1  ;;  %v8562_v43 = vld [vmem:[#allocation11 + $0x42c] sm:$0xf]  ;;  %v8186_v24 = vor.u32 %v8814_v7, %v8183_v4  ;;  %v7853_v4 = vld [vmem:[#allocation11 + $0x970] sm:$0xf] }
 0x468   : > { %5466 = vmatpush.bf16.msrb.mxu1 %v7006_v33  ;;  %5432 = vmatpush.bf16.msrb.mxu3 %v7506_v48  ;;  %v7175_v33 = vld [vmem:[#allocation11 + $0x47c] sm:$0xf0]  ;;  %v7934_v46 = vor.u32 %v8751_v38, %v7931_v21  ;;  %v2460_v48 = vld [vmem:[#allocation11 + $0xd58] sm:$0xff]  ;;  %v8793_v38 = vld [vmem:[#allocation11 + $0xb64] sm:$0xf] }
 0x469   : > { %5486 = vmatpush.bf16.msrb.mxu2 %v7510_v49  ;;  %v7178_v42 = vor.u32 %v8562_v43, %v7175_v33  ;;  %v7091_v49 = vld [vmem:[#allocation11 + $0x3d4] sm:$0xf0]  ;;  %v3769_v20 = vunpack.c.l.b16 %v2460_v48  ;;  %v3770_v35 = vunpack.c.h.b16 %v2460_v48  ;;  %v8097_v33 = vld [vmem:[#allocation11 + $0xb60] sm:$0xf] }
 0x46a   : > { %v5029_v32 = vpop.f32.mrf.mxu0  ;;  %5332 = vmatmul.bf16.gmra.mxu1 %v10394_v23  ;;  %5452 = vmatpush.bf16.msrb.mxu0 %v8010_v14  ;;  %v7094_v22 = vor.u32 %v8541_v29, %v7091_v49  ;;  %v7679_v14 = vld [vmem:[#allocation11 + $0x86c] sm:$0xf0]  ;;  %v6755_v48 = vld [vmem:[#allocation11 + $0x134] sm:$0xf0]  ;;  %v8646_v49 = vld [vmem:[#allocation11 + $0x6cc] sm:$0xf] }
 0x46b   : > { %v4210_v28 = vpack.c.b16 %v3769_v20, %v3769_v20  ;;  %v4211_v26 = vpack.c.b16 %v3770_v35, %v3770_v35  ;;  %v7511_v20 = vld [vmem:[#allocation11 + $0x71c] sm:$0xf0] }
 0x46c   : > { %5467 = vmatpush.bf16.msrb.mxu1 %v6922_v1  ;;  %5433 = vmatpush.bf16.msrb.mxu3 %v7422_v50  ;;  %v7514_v11 = vor.u32 %v8646_v49, %v7511_v20 }
 0x46d   : > { %5487 = vmatpush.bf16.msrb.mxu2 %v7426_v63  ;;  %v4687_v40 = vsel %vm583_vm0, %v4210_v28, 0  ;;  %v4690_v63 = vsel %vm583_vm0, %v4211_v26, 0  ;;  %v8015_v26 = vld [vmem:[#allocation11 + $0xb0c] sm:$0xf0] }
 0x46e   : > { %v5011_v53 = vpop.f32.mrf.mxu3  ;;  %v5065_v55 = vpop.f32.mrf.mxu2 }
 0x46f   : > { %v5047_v16 = vpop.f32.mrf.mxu1  ;;  %v7766_v55 = vor.u32 %v8709_v51, %v7763_v52 }
 0x470   : > { %5468 = vmatpush.bf16.msrb.mxu1 %v6838_v58  ;;  %5434 = vmatpush.bf16.msrb.mxu3 %v7338_v0  ;;  %v8265_v58 = vld [vmem:[#allocation11 + $0xcb0] sm:$0xf]  ;;  %v8267_v16 = vld [vmem:[#allocation11 + $0xd04] sm:$0xf0] }
 0x471   : > { %5488 = vmatpush.bf16.msrb.mxu2 %v7342_v8  ;;  %v8266_v5 = vor.u32 %v8845_v25, %v8265_v58  ;;  %v8270_v0 = vor.u32 %v8835_v56, %v8267_v16  ;;  %v6923_v8 = vld [vmem:[#allocation11 + $0x284] sm:$0xf0]  ;;  %v8584_v58 = vld [vmem:[#allocation11 + $0x4dc] sm:$0xf]  ;;  %v7267_v56 = vld [vmem:[#allocation11 + $0x52c] sm:$0xf0] }
 0x472   : > { %v5094_v9 = vpop.f32.mrf.mxu0  ;;  %v6926_v62 = vor.u32 %v8499_v61, %v6923_v8  ;;  %v7937_v16 = vld [vmem:[#allocation11 + $0xa18] sm:$0xf]  ;;  %v8604_v8 = vld [vmem:[#allocation11 + $0x57c] sm:$0xf] }
 0x473   : > { %5363 = vmatmul.bf16.vlgmr.msra.gmra.mxu3 %v10379_v27  ;;  %5417 = vmatmul.bf16.vlgmr.msra.gmra.mxu2 %v10379_v27 }
 0x474   : > { %5469 = vmatpush.bf16.msrb.mxu1 %v6754_v18  ;;  %5502 = vmatpush.bf16.msra.mxu3 %v4687_v40  ;;  %v8181_v18 = vld [vmem:[#allocation11 + $0xc08] sm:$0xf]  ;;  %v8436_v40 = vld [vmem:[#allocation11 + $0x3c] sm:$0xf] }
 0x475   : > { %5381 = vmatmul.bf16.vlgmr.msra.gmra.mxu0 %v10381_v2  ;;  %5556 = vmatpush.bf16.msra.mxu2 %v4690_v63  ;;  %v6671_v63 = vld [vmem:[#allocation11 + $0x8c] sm:$0xf0] }
 0x476   : > { %v5076_v13 = vpop.f32.mrf.mxu3  ;;  %v5130_v45 = vpop.f32.mrf.mxu2  ;;  %5517 = vmatpush.bf16.msra.mxu0 %v7262_v12  ;;  %v8182_v12 = vor.u32 %v8824_v19, %v8181_v18  ;;  %v6674_v47 = vor.u32 %v8436_v40, %v6671_v63  ;;  %v8563_v18 = vld [vmem:[#allocation11 + $0x434] sm:$0xf]  ;;  %v8500_v40 = vld [vmem:[#allocation11 + $0x23c] sm:$0xf] }
 0x477   : > { %v5077_v36 = vadd.f32 %v5076_v13, %v5059_v6  ;;  %v5112_v39 = vpop.f32.mrf.mxu1  ;;  %v8478_v13 = vld [vmem:[#allocation11 + $0x18c] sm:$0xf] }
 0x478   : > { %v5113_v34 = vadd.f32 %v5112_v39, %v5094_v9  ;;  %5470 = vmatpush.bf16.msrb.mxu1 %v6670_v30  ;;  %5503 = vmatpush.bf16.msra.mxu3 %v8266_v5  ;;  %v7682_v9 = vor.u32 %v8688_v3, %v7679_v14  ;;  %v7595_v39 = vld [vmem:[#allocation11 + $0x7c4] sm:$0xf0]  ;;  %v7270_v5 = vor.u32 %v8584_v58, %v7267_v56 }
 0x479   : > { %5847 = vst [vmem:[#allocation4 + $0x30] sm:$0xff] %v5077_v36  ;;  %5557 = vmatpush.bf16.msra.mxu2 %v8270_v0  ;;  %v8667_v36 = vld [vmem:[#allocation11 + $0x774] sm:$0xf]  ;;  %v8762_v0 = vld [vmem:[#allocation11 + $0xa68] sm:$0xf0] }
 0x47a   : > { %v5131_v10 = vadd.f32 %v5130_v45, %v5113_v34  ;;  %v5096_v57 = vpop.f32.mrf.mxu0  ;;  %8315 = vmatmul.msk.bf16.vlgmr.msra.gmra.mxu1 %vm4637_vm5, %v10386_v17  ;;  %5518 = vmatpush.bf16.msra.mxu0 %v7178_v42  ;;  %v6839_v45 = vld [vmem:[#allocation11 + $0x1dc] sm:$0xf0]  ;;  %v7598_v43 = vor.u32 %v8667_v36, %v7595_v39  ;;  %v8803_v42 = vld [vmem:[#allocation11 + $0xbb0] sm:$0xf0]  ;;  %v7938_v61 = vor.u32 %v8762_v0, %v7937_v16  ;;  %v8552_v36 = vld [vmem:[#allocation11 + $0x3d8] sm:$0xf0] }
 0x47b   : > { %v6842_v30 = vor.u32 %v8478_v13, %v6839_v45  ;;  %v8098_v21 = vor.u32 %v8803_v42, %v8097_v33  ;;  %v8542_v39 = vld [vmem:[#allocation11 + $0x38c] sm:$0xf]  ;;  %v7769_v42 = vld [vmem:[#allocation11 + $0x8c8] sm:$0xf]  ;;  %v8489_v16 = vld [vmem:[#allocation11 + $0x1e0] sm:$0xf0] }
 0x47c   : > { %5848 = vst [vmem:[#allocation4 + $0x38] sm:$0xff] %v5131_v10  ;;  %5535 = vmatpush.bf16.msra.mxu1 %v7934_v46  ;;  %5504 = vmatpush.bf16.msra.mxu3 %v8182_v12  ;;  %v8099_v10 = vld [vmem:[#allocation11 + $0xbb4] sm:$0xf0]  ;;  %v8457_v46 = vld [vmem:[#allocation11 + $0xe4] sm:$0xf] }
 0x47d   : > { %5558 = vmatpush.bf16.msra.mxu2 %v8186_v24  ;;  %v8102_v57 = vor.u32 %v8793_v38, %v8099_v10  ;;  %v6758_v29 = vor.u32 %v8457_v46, %v6755_v48  ;;  %v8741_v24 = vld [vmem:[#allocation11 + $0x9c0] sm:$0xf0]  ;;  %v8720_v38 = vld [vmem:[#allocation11 + $0x918] sm:$0xf0]  ;;  %v7013_v46 = vld [vmem:[#allocation11 + $0x2e0] sm:$0xf] }
 0x47e   : > { %v5078_v32 = vpop.f32.mrf.mxu3  ;;  %v5132_v1 = vpop.f32.mrf.mxu2  ;;  %5519 = vmatpush.bf16.msra.mxu0 %v7094_v22  ;;  %v7854_v13 = vor.u32 %v8741_v24, %v7853_v4  ;;  %v8531_v48 = vld [vmem:[#allocation11 + $0x330] sm:$0xf0]  ;;  %v8468_v4 = vld [vmem:[#allocation11 + $0x138] sm:$0xf0]  ;;  %v8458_v24 = vld [vmem:[#allocation11 + $0xec] sm:$0xf] }
 0x47f   : > { %v5114_v50 = vpop.f32.mrf.mxu1  ;;  %v8782_v32 = vld [vmem:[#allocation11 + $0xb08] sm:$0xf0]  ;;  %v8772_v1 = vld [vmem:[#allocation11 + $0xabc] sm:$0xf]  ;;  %v8479_v0 = vld [vmem:[#allocation11 + $0x194] sm:$0xf] }
 0x480   : > { %5536 = vmatpush.bf16.msra.mxu1 %v7850_v31  ;;  %5505 = vmatpush.bf16.msra.mxu3 %v8098_v21  ;;  %v8014_v28 = vor.u32 %v8782_v32, %v8013_v54  ;;  %v8018_v50 = vor.u32 %v8772_v1, %v8015_v26  ;;  %v7770_v21 = vor.u32 %v8720_v38, %v7769_v42  ;;  %v7685_v54 = vld [vmem:[#allocation11 + $0x820] sm:$0xf]  ;;  %v8699_v32 = vld [vmem:[#allocation11 + $0x870] sm:$0xf0]  ;;  %v6929_v26 = vld [vmem:[#allocation11 + $0x238] sm:$0xf] }
 0x481   : > { %5559 = vmatpush.bf16.msra.mxu2 %v8102_v57 }
 0x482   : > { %v5099_v53 = vpop.f32.mrf.mxu0  ;;  %5520 = vmatpush.bf16.msra.mxu0 %v7010_v44  ;;  %v7427_v44 = vld [vmem:[#allocation11 + $0x674] sm:$0xf0] }
 0x483   : > { %5368 = vmatmul.bf16.gmra.mxu3 %v10390_v60  ;;  %5422 = vmatmul.bf16.gmra.mxu2 %v10390_v60  ;;  %v7430_v52 = vor.u32 %v8625_v41, %v7427_v44  ;;  %v7265_v53 = vld [vmem:[#allocation11 + $0x4d8] sm:$0xf]  ;;  %v10550_v41 = vld [vmem:[#allocation11 + $0xd60] sm:$0xff] }
 0x484   : > { %5537 = vmatpush.bf16.msra.mxu1 %v7766_v55  ;;  %5506 = vmatpush.bf16.msra.mxu3 %v8014_v28  ;;  %v8594_v55 = vld [vmem:[#allocation11 + $0x528] sm:$0xf0] }
 0x485   : > { %5386 = vmatmul.bf16.gmra.mxu0 %v10394_v23  ;;  %5560 = vmatpush.bf16.msra.mxu2 %v8018_v50  ;;  %v7266_v25 = vor.u32 %v8594_v55, %v7265_v53  ;;  %v8510_v50 = vld [vmem:[#allocation11 + $0x288] sm:$0xf0]  ;;  %v3771_v53 = vunpack.c.l.b16 %v10550_v41 }
 0x486   : > { %v5081_v37 = vpop.f32.mrf.mxu3  ;;  %v5135_v15 = vpop.f32.mrf.mxu2  ;;  %5521 = vmatpush.bf16.msra.mxu0 %v6926_v62  ;;  %v7343_v62 = vld [vmem:[#allocation11 + $0x5cc] sm:$0xf0]  ;;  %v6930_v63 = vor.u32 %v8510_v50, %v6929_v26  ;;  %v8752_v26 = vld [vmem:[#allocation11 + $0xa1c] sm:$0xf] }
 0x487   : > { %v5117_v6 = vpop.f32.mrf.mxu1  ;;  %v7346_v37 = vor.u32 %v8604_v8, %v7343_v62  ;;  %v7181_v15 = vld [vmem:[#allocation11 + $0x430] sm:$0xf]  ;;  %v4212_v56 = vpack.c.b16 %v3771_v53, %v3771_v53  ;;  %v6847_v62 = vld [vmem:[#allocation11 + $0x1e4] sm:$0xf0] }
 0x488   : > { %5538 = vmatpush.bf16.msra.mxu1 %v7682_v9  ;;  %v8573_v9 = vld [vmem:[#allocation11 + $0x480] sm:$0xf0]  ;;  %v7183_v6 = vld [vmem:[#allocation11 + $0x484] sm:$0xf0]  ;;  %v7939_v50 = vld [vmem:[#allocation11 + $0xa6c] sm:$0xf0] }
 0x489   : > { %v7182_v7 = vor.u32 %v8573_v9, %v7181_v15  ;;  %v7186_v12 = vor.u32 %v8563_v18, %v7183_v6  ;;  %v8657_v15 = vld [vmem:[#allocation11 + $0x720] sm:$0xf0]  ;;  %v8273_v18 = vld [vmem:[#allocation11 + $0xcb8] sm:$0xf] }
 0x48a   : > { %v5101_v34 = vpop.f32.mrf.mxu0  ;;  %8316 = vmatmul.msk.bf16.gmra.mxu1 %vm4637_vm5, %v10399_v59  ;;  %5522 = vmatpush.bf16.msra.mxu0 %v6842_v30  ;;  %v7097_v30 = vld [vmem:[#allocation11 + $0x388] sm:$0xf] }
 0x48b   : > { %v7098_v34 = vor.u32 %v8552_v36, %v7097_v30  ;;  %v7433_v36 = vld [vmem:[#allocation11 + $0x628] sm:$0xf] }
 0x48c   : > { %5539 = vmatpush.bf16.msra.mxu1 %v7598_v43  ;;  %v7099_v43 = vld [vmem:[#allocation11 + $0x3dc] sm:$0xf0] }
 0x48d   : > { %v7102_v33 = vor.u32 %v8542_v39, %v7099_v43  ;;  %v8636_v39 = vld [vmem:[#allocation11 + $0x678] sm:$0xf0]  ;;  %v8189_v43 = vld [vmem:[#allocation11 + $0xc10] sm:$0xf] }
 0x48e   : > { %v5083_v35 = vpop.f32.mrf.mxu3  ;;  %v5137_v22 = vpop.f32.mrf.mxu2  ;;  %5523 = vmatpush.bf16.msra.mxu0 %v6758_v29  ;;  %v8521_v29 = vld [vmem:[#allocation11 + $0x2e4] sm:$0xf] }
 0x48f   : > { %v5119_v31 = vpop.f32.mrf.mxu1  ;;  %v7014_v35 = vor.u32 %v8531_v48, %v7013_v46  ;;  %v7015_v22 = vld [vmem:[#allocation11 + $0x334] sm:$0xf0]  ;;  %v8447_v46 = vld [vmem:[#allocation11 + $0x90] sm:$0xf0]  ;;  %v8437_v48 = vld [vmem:[#allocation11 + $0x44] sm:$0xf] }
 0x490   : > { %5540 = vmatpush.bf16.msra.mxu1 %v7514_v11  ;;  %v7018_v11 = vor.u32 %v8521_v29, %v7015_v22  ;;  %v7686_v31 = vor.u32 %v8699_v32, %v7685_v54  ;;  %v7349_v22 = vld [vmem:[#allocation11 + $0x580] sm:$0xf]  ;;  %v8105_v32 = vld [vmem:[#allocation11 + $0xb68] sm:$0xf] }
 0x492   : > { %v5166_v51 = vpop.f32.mrf.mxu0  ;;  %5524 = vmatpush.bf16.msra.mxu0 %v6674_v47  ;;  %v6931_v47 = vld [vmem:[#allocation11 + $0x28c] sm:$0xf0] }
 0x493   : > { %5435 = vmatmul.bf16.vlgmr.msrb.gmra.mxu3 %v10381_v2  ;;  %5489 = vmatmul.bf16.vlgmr.msrb.gmra.mxu2 %v10381_v2  ;;  %v6934_v44 = vor.u32 %v8500_v40, %v6931_v47  ;;  %v7601_v51 = vld [vmem:[#allocation11 + $0x778] sm:$0xf]  ;;  %v7945_v40 = vld [vmem:[#allocation11 + $0xa20] sm:$0xf]  ;;  %v8763_v47 = vld [vmem:[#allocation11 + $0xa70] sm:$0xf0] }
 0x494   : > { %5541 = vmatpush.bf16.msra.mxu1 %v7430_v52  ;;  %5571 = vmatpush.bf16.msrb.mxu3 %v7266_v25  ;;  %v8678_v52 = vld [vmem:[#allocation11 + $0x7c8] sm:$0xf0] }
 0x495   : > { %8317 = vmatmul.msk.bf16.vlgmr.msrb.gmra.mxu0 %vm4637_vm5, %v10386_v17  ;;  %5625 = vmatpush.bf16.msrb.mxu2 %v7270_v5  ;;  %v7602_v55 = vor.u32 %v8678_v52, %v7601_v51  ;;  %v6845_v5 = vld [vmem:[#allocation11 + $0x190] sm:$0xf]  ;;  %v8021_v51 = vld [vmem:[#allocation11 + $0xac0] sm:$0xf]  ;;  %v8783_v52 = vld [vmem:[#allocation11 + $0xb10] sm:$0xf0] }
 0x496   : > { %v5148_v3 = vpop.f32.mrf.mxu3  ;;  %v5202_v14 = vpop.f32.mrf.mxu2  ;;  %5589 = vmatpush.bf16.msrb.mxu0 %v7938_v61  ;;  %v6846_v8 = vor.u32 %v8489_v16, %v6845_v5  ;;  %v7861_v5 = vld [vmem:[#allocation11 + $0x978] sm:$0xf] }
 0x497   : > { %v5184_v19 = vpop.f32.mrf.mxu1  ;;  %v4693_v3 = vsel %vm583_vm0, %v4212_v56, 0  ;;  %v6850_v14 = vor.u32 %v8479_v0, %v6847_v62  ;;  %v7855_v56 = vld [vmem:[#allocation11 + $0x9c4] sm:$0xf0]  ;;  %v7273_v62 = vld [vmem:[#allocation11 + $0x4e0] sm:$0xf] }
 0x498   : > { %5542 = vmatpush.bf16.msra.mxu1 %v7346_v37  ;;  %5572 = vmatpush.bf16.msrb.mxu3 %v7182_v7  ;;  %v7517_v37 = vld [vmem:[#allocation11 + $0x6d0] sm:$0xf]  ;;  %v8846_v19 = vld [vmem:[#allocation11 + $0xd08] sm:$0xf0] }
 0x499   : > { %5626 = vmatpush.bf16.msrb.mxu2 %v7186_v12  ;;  %v7518_v9 = vor.u32 %v8657_v15, %v7517_v37  ;;  %v8274_v6 = vor.u32 %v8846_v19, %v8273_v18  ;;  %v6761_v12 = vld [vmem:[#allocation11 + $0xe8] sm:$0xf]  ;;  %v8710_v15 = vld [vmem:[#allocation11 + $0x8cc] sm:$0xf]  ;;  %v7777_v18 = vld [vmem:[#allocation11 + $0x8d0] sm:$0xf] }
 0x49a   : > { %v5168_v45 = vpop.f32.mrf.mxu0  ;;  %5471 = vmatmul.bf16.vlgmr.msrb.gmra.mxu1 %v10379_v27  ;;  %5590 = vmatpush.bf16.msrb.mxu0 %v7854_v13  ;;  %v6762_v13 = vor.u32 %v8468_v4, %v6761_v12  ;;  %v7189_v12 = vld [vmem:[#allocation11 + $0x438] sm:$0xf]  ;;  %v8574_v4 = vld [vmem:[#allocation11 + $0x488] sm:$0xf0] }
 0x49c   : > { %5573 = vmatpush.bf16.msrb.mxu3 %v7098_v34  ;;  %5610 = vmatpush.bf16.msrb.mxu1 %v4693_v3  ;;  %v7434_v34 = vor.u32 %v8636_v39, %v7433_v36  ;;  %v8595_v3 = vld [vmem:[#allocation11 + $0x530] sm:$0xf0]  ;;  %v7687_v36 = vld [vmem:[#allocation11 + $0x874] sm:$0xf0]  ;;  %v7693_v39 = vld [vmem:[#allocation11 + $0x828] sm:$0xf] }
 0x49d   : > { %5627 = vmatpush.bf16.msrb.mxu2 %v7102_v33  ;;  %v8825_v33 = vld [vmem:[#allocation11 + $0xc60] sm:$0xf0]  ;;  %v7274_v37 = vor.u32 %v8595_v3, %v7273_v62  ;;  %v8626_v3 = vld [vmem:[#allocation11 + $0x62c] sm:$0xf] }
 0x49e   : > { %v5150_v10 = vpop.f32.mrf.mxu3  ;;  %v10546_v57 = vpop.f32.mrf.mxu2  ;;  %5591 = vmatpush.bf16.msrb.mxu0 %v7770_v21  ;;  %v8190_v21 = vor.u32 %v8825_v33, %v8189_v43 }
 0x49f   : > { %v5169_v49 = vadd.f32 %v5168_v45, %v5150_v10  ;;  %v5186_v20 = vpop.f32.mrf.mxu1  ;;  %v6763_v45 = vld [vmem:[#allocation11 + $0x13c] sm:$0xf0] }
 0x4a0   : > { %5574 = vmatpush.bf16.msrb.mxu3 %v7014_v35  ;;  %v6766_v30 = vor.u32 %v8458_v24, %v6763_v45  ;;  %5611 = vmatpush.bf16.msrb.mxu1 %v8274_v6  ;;  %v6677_v10 = vld [vmem:[#allocation11 + $0x40] sm:$0xf]  ;;  %v7190_v45 = vor.u32 %v8574_v4, %v7189_v12  ;;  %v6853_v12 = vld [vmem:[#allocation11 + $0x198] sm:$0xf]  ;;  %v8490_v4 = vld [vmem:[#allocation11 + $0x1e8] sm:$0xf0] }
 0x4a1   : > { %v5187_v1 = vadd.f32 %v5186_v20, %v5169_v49  ;;  %5628 = vmatpush.bf16.msrb.mxu2 %v7018_v11  ;;  %v6678_v49 = vor.u32 %v8447_v46, %v6677_v10  ;;  %v6679_v20 = vld [vmem:[#allocation11 + $0x94] sm:$0xf0]  ;;  %v8615_v11 = vld [vmem:[#allocation11 + $0x5d0] sm:$0xf0] }
 0x4a2   : > { %v5171_v28 = vpop.f32.mrf.mxu0  ;;  %5592 = vmatpush.bf16.msrb.mxu0 %v7686_v31  ;;  %v6682_v35 = vor.u32 %v8437_v48, %v6679_v20  ;;  %v7350_v54 = vor.u32 %v8615_v11, %v7349_v22  ;;  %v7105_v48 = vld [vmem:[#allocation11 + $0x390] sm:$0xf]  ;;  %v8668_v22 = vld [vmem:[#allocation11 + $0x77c] sm:$0xf]  ;;  %v7609_v11 = vld [vmem:[#allocation11 + $0x780] sm:$0xf] }
 0x4a3   : > { %5870 = vst [vmem:[#allocation4 + $0xe8] sm:$0xff] %v5187_v1  ;;  %5440 = vmatmul.bf16.gmra.mxu3 %v10394_v23  ;;  %5494 = vmatmul.bf16.gmra.mxu2 %v10394_v23  ;;  %v8804_v1 = vld [vmem:[#allocation11 + $0xbb8] sm:$0xf0] }
 0x4a4   : > { %5575 = vmatpush.bf16.msrb.mxu3 %v6930_v63  ;;  %5612 = vmatpush.bf16.msrb.mxu1 %v8190_v21  ;;  %v8106_v28 = vor.u32 %v8804_v1, %v8105_v32  ;;  %v7942_v63 = vor.u32 %v8752_v26, %v7939_v50  ;;  %v8836_v1 = vld [vmem:[#allocation11 + $0xcbc] sm:$0xf]  ;;  %v7021_v26 = vld [vmem:[#allocation11 + $0x2e8] sm:$0xf] }
 0x4a5   : > { %8318 = vmatmul.msk.bf16.gmra.mxu0 %vm4637_vm5, %v10399_v59  ;;  %5629 = vmatpush.bf16.msrb.mxu2 %v6934_v44  ;;  %v7946_v44 = vor.u32 %v8763_v47, %v7945_v40  ;;  %v8532_v50 = vld [vmem:[#allocation11 + $0x338] sm:$0xf0] }
 0x4a6   : > { %v5153_v58 = vpop.f32.mrf.mxu3  ;;  %v5207_v25 = vpop.f32.mrf.mxu2  ;;  %5593 = vmatpush.bf16.msrb.mxu0 %v7602_v55  ;;  %v7022_v47 = vor.u32 %v8532_v50, %v7021_v26  ;;  %v8564_v26 = vld [vmem:[#allocation11 + $0x43c] sm:$0xf]  ;;  %v7191_v50 = vld [vmem:[#allocation11 + $0x48c] sm:$0xf0] }
 0x4a7   : > { %v5189_v61 = vpop.f32.mrf.mxu1  ;;  %v8022_v58 = vor.u32 %v8783_v52, %v8021_v51  ;;  %v8731_v25 = vld [vmem:[#allocation11 + $0x974] sm:$0xf]  ;;  %v7519_v51 = vld [vmem:[#allocation11 + $0x724] sm:$0xf0]  ;;  %v7525_v52 = vld [vmem:[#allocation11 + $0x6d8] sm:$0xf] }
 0x4a8   : > { %5576 = vmatpush.bf16.msrb.mxu3 %v6846_v8  ;;  %5613 = vmatpush.bf16.msrb.mxu1 %v8106_v28  ;;  %v7858_v0 = vor.u32 %v8731_v25, %v7855_v56  ;;  %v8742_v61 = vld [vmem:[#allocation11 + $0x9c8] sm:$0xf0]  ;;  %v8815_v56 = vld [vmem:[#allocation11 + $0xc14] sm:$0xf] }
 0x4a9   : > { %5630 = vmatpush.bf16.msrb.mxu2 %v6850_v14  ;;  %v7862_v8 = vor.u32 %v8742_v61, %v7861_v5  ;;  %v8191_v5 = vld [vmem:[#allocation11 + $0xc64] sm:$0xf0]  ;;  %v8511_v61 = vld [vmem:[#allocation11 + $0x290] sm:$0xf0] }
 0x4aa   : > { %v5173_v7 = vpop.f32.mrf.mxu0  ;;  %5476 = vmatmul.bf16.gmra.mxu1 %v10390_v60  ;;  %5594 = vmatpush.bf16.msrb.mxu0 %v7518_v9  ;;  %v7771_v9 = vld [vmem:[#allocation11 + $0x91c] sm:$0xf0] }
 0x4ab   : > { %v7774_v19 = vor.u32 %v8710_v15, %v7771_v9  ;;  %v8721_v7 = vld [vmem:[#allocation11 + $0x920] sm:$0xf0] }
 0x4ac   : > { %5577 = vmatpush.bf16.msrb.mxu3 %v6762_v13  ;;  %5614 = vmatpush.bf16.msrb.mxu1 %v8022_v58  ;;  %v7778_v6 = vor.u32 %v8721_v7, %v7777_v18  ;;  %v8658_v58 = vld [vmem:[#allocation11 + $0x728] sm:$0xf0]  ;;  %v8637_v9 = vld [vmem:[#allocation11 + $0x680] sm:$0xf0]  ;;  %v8107_v7 = vld [vmem:[#allocation11 + $0xbbc] sm:$0xf0] }
 0x4ad   : > { %5631 = vmatpush.bf16.msrb.mxu2 %v6766_v30  ;;  %v8689_v30 = vld [vmem:[#allocation11 + $0x824] sm:$0xf]  ;;  %v7526_v25 = vor.u32 %v8658_v58, %v7525_v52  ;;  %v2462_v52 = vld [vmem:[#allocation11 + $0xd68] sm:$0xff] }
 0x4ae   : > { %v5155_v42 = vpop.f32.mrf.mxu3  ;;  %v5209_v38 = vpop.f32.mrf.mxu2  ;;  %5595 = vmatpush.bf16.msrb.mxu0 %v7434_v34  ;;  %v3772_v34 = vunpack.c.h.b16 %v10550_v41  ;;  %v7603_v41 = vld [vmem:[#allocation11 + $0x7cc] sm:$0xf0]  ;;  %v3773_v58 = vunpack.c.l.b16 %v2462_v52 }
 0x4af   : > { %v5191_v29 = vpop.f32.mrf.mxu1  ;;  %v7690_v42 = vor.u32 %v8689_v30, %v7687_v36  ;;  %v8700_v38 = vld [vmem:[#allocation11 + $0x878] sm:$0xf0]  ;;  %v6854_v30 = vor.u32 %v8490_v4, %v6853_v12  ;;  %v8605_v36 = vld [vmem:[#allocation11 + $0x584] sm:$0xf]  ;;  %v7779_v12 = vld [vmem:[#allocation11 + $0x924] sm:$0xf0] }
 0x4b0   : > { %5578 = vmatpush.bf16.msrb.mxu3 %v6678_v49  ;;  %v7694_v21 = vor.u32 %v8700_v38, %v7693_v39  ;;  %v4213_v10 = vpack.c.b16 %v3772_v34, %v3772_v34  ;;  %v8553_v29 = vld [vmem:[#allocation11 + $0x3e0] sm:$0xf0]  ;;  %v7351_v39 = vld [vmem:[#allocation11 + $0x5d4] sm:$0xf0]  ;;  %v7357_v34 = vld [vmem:[#allocation11 + $0x588] sm:$0xf] }
 0x4b1   : > { %5632 = vmatpush.bf16.msrb.mxu2 %v6682_v35  ;;  %v7106_v35 = vor.u32 %v8553_v29, %v7105_v48  ;;  %v8616_v38 = vld [vmem:[#allocation11 + $0x5d8] sm:$0xf0]  ;;  %v6769_v29 = vld [vmem:[#allocation11 + $0xf0] sm:$0xf] }
 0x4b2   : > { %v5238_v31 = vpop.f32.mrf.mxu0  ;;  %5596 = vmatpush.bf16.msrb.mxu0 %v7350_v54  ;;  %v4696_v20 = vsel %vm583_vm0, %v4213_v10, 0  ;;  %v8679_v54 = vld [vmem:[#allocation11 + $0x7d0] sm:$0xf0]  ;;  %v8773_v10 = vld [vmem:[#allocation11 + $0xac4] sm:$0xf] }
 0x4b3   : > { %8319 = vmatmul.msk.bf16.vlgmr.msra.gmra.mxu3 %vm4637_vm5, %v10386_v17  ;;  %8321 = vmatmul.msk.bf16.vlgmr.msra.gmra.mxu2 %vm4637_vm5, %v10386_v17  ;;  %v7610_v32 = vor.u32 %v8679_v54, %v7609_v11  ;;  %v8275_v31 = vld [vmem:[#allocation11 + $0xd0c] sm:$0xf0]  ;;  %v6685_v11 = vld [vmem:[#allocation11 + $0x48] sm:$0xf]  ;;  %v8448_v54 = vld [vmem:[#allocation11 + $0x98] sm:$0xf0] }
 0x4b4   : > { %5643 = vmatpush.bf16.msra.mxu3 %v7942_v63  ;;  %v8278_v28 = vor.u32 %v8836_v1, %v8275_v31  ;;  %v6686_v31 = vor.u32 %v8448_v54, %v6685_v11  ;;  %v8199_v54 = vld [vmem:[#allocation11 + $0xc6c] sm:$0xf0] }
 0x4b5   : > { %5525 = vmatmul.bf16.vlgmr.msra.gmra.mxu0 %v10379_v27  ;;  %5697 = vmatpush.bf16.msra.mxu2 %v7946_v44  ;;  %v8647_v44 = vld [vmem:[#allocation11 + $0x6d4] sm:$0xf] }
 0x4b6   : > { %v5220_v53 = vpop.f32.mrf.mxu3  ;;  %v5274_v55 = vpop.f32.mrf.mxu2  ;;  %5664 = vmatpush.bf16.msra.mxu0 %v4696_v20 }
 0x4b7   : > { %v5256_v16 = vpop.f32.mrf.mxu1  ;;  %v7522_v55 = vor.u32 %v8647_v44, %v7519_v51 }
 0x4b8   : > { %5644 = vmatpush.bf16.msra.mxu3 %v7858_v0  ;;  %v8194_v16 = vor.u32 %v8815_v56, %v8191_v5  ;;  %v6937_v0 = vld [vmem:[#allocation11 + $0x240] sm:$0xf] }
 0x4b9   : > { %5698 = vmatpush.bf16.msra.mxu2 %v7862_v8  ;;  %v6938_v62 = vor.u32 %v8511_v61, %v6937_v0  ;;  %v7863_v0 = vld [vmem:[#allocation11 + $0x9cc] sm:$0xf0] }
 0x4ba   : > { %v5240_v14 = vpop.f32.mrf.mxu0  ;;  %5543 = vmatmul.bf16.vlgmr.msra.gmra.mxu1 %v10381_v2  ;;  %5665 = vmatpush.bf16.msra.mxu0 %v8278_v28 }
 0x4bb   : > { %5679 = vmatpush.bf16.msra.mxu1 %v7274_v37  ;;  %v7441_v37 = vld [vmem:[#allocation11 + $0x630] sm:$0xf] }
 0x4bc   : > { %5645 = vmatpush.bf16.msra.mxu3 %v7774_v19  ;;  %v7442_v18 = vor.u32 %v8637_v9, %v7441_v37  ;;  %v8794_v19 = vld [vmem:[#allocation11 + $0xb6c] sm:$0xf] }
 0x4bd   : > { %5699 = vmatpush.bf16.msra.mxu2 %v7778_v6  ;;  %v8110_v6 = vor.u32 %v8794_v19, %v8107_v7  ;;  %v8522_v7 = vld [vmem:[#allocation11 + $0x2ec] sm:$0xf] }
 0x4be   : > { %v5222_v24 = vpop.f32.mrf.mxu3  ;;  %v10563_v13 = vpop.f32.mrf.mxu2  ;;  %5666 = vmatpush.bf16.msra.mxu0 %v8194_v16  ;;  %v8732_v16 = vld [vmem:[#allocation11 + $0x97c] sm:$0xf] }
 0x4bf   : > { %v5223_v43 = vadd.f32 %v5222_v24, %v10546_v57  ;;  %v10567_v33 = vpop.f32.mrf.mxu1  ;;  %5680 = vmatpush.bf16.msra.mxu1 %v7190_v45  ;;  %v7606_v57 = vor.u32 %v8668_v22, %v7603_v41  ;;  %v8585_v22 = vld [vmem:[#allocation11 + $0x4e4] sm:$0xf]  ;;  %v7275_v41 = vld [vmem:[#allocation11 + $0x534] sm:$0xf0] }
 0x4c0   : > { %5646 = vmatpush.bf16.msra.mxu3 %v7690_v42  ;;  %v7354_v42 = vor.u32 %v8605_v36, %v7351_v39  ;;  %v5277_v56 = vadd.f32 %v10563_v13, %v10567_v33  ;;  %v8711_v33 = vld [vmem:[#allocation11 + $0x8d4] sm:$0xf]  ;;  %v8837_v39 = vld [vmem:[#allocation11 + $0xcc4] sm:$0xf] }
 0x4c1   : > { %v5241_v46 = vadd.f32 %v5240_v14, %v5223_v43  ;;  %5700 = vmatpush.bf16.msra.mxu2 %v7694_v21  ;;  %v7435_v14 = vld [vmem:[#allocation11 + $0x67c] sm:$0xf0]  ;;  %v7358_v21 = vor.u32 %v8616_v38, %v7357_v34  ;;  %v8847_v36 = vld [vmem:[#allocation11 + $0xd10] sm:$0xf0]  ;;  %v8501_v38 = vld [vmem:[#allocation11 + $0x244] sm:$0xf] }
 0x4c2   : > { %v5243_v49 = vpop.f32.mrf.mxu0  ;;  %v7438_v15 = vor.u32 %v8626_v3, %v7435_v14  ;;  %5667 = vmatpush.bf16.msra.mxu0 %v8110_v6  ;;  %v4214_v3 = vpack.c.b16 %v3773_v58, %v3773_v58  ;;  %v7023_v6 = vld [vmem:[#allocation11 + $0x33c] sm:$0xf0]  ;;  %v8459_v58 = vld [vmem:[#allocation11 + $0xf4] sm:$0xf] }
 0x4c3   : > { %5871 = vst [vmem:[#allocation4 + $0xf0] sm:$0xff] %v5241_v46  ;;  %8320 = vmatmul.msk.bf16.gmra.mxu3 %vm4637_vm5, %v10399_v59  ;;  %8322 = vmatmul.msk.bf16.gmra.mxu2 %vm4637_vm5, %v10399_v59  ;;  %v8023_v46 = vld [vmem:[#allocation11 + $0xb14] sm:$0xf0]  ;;  %v8469_v49 = vld [vmem:[#allocation11 + $0x140] sm:$0xf0]  ;;  %v7026_v13 = vor.u32 %v8522_v7, %v7023_v6 }
 0x4c4   : > { %5681 = vmatpush.bf16.msra.mxu1 %v7106_v35  ;;  %5647 = vmatpush.bf16.msra.mxu3 %v7606_v57  ;;  %v8026_v48 = vor.u32 %v8773_v10, %v8023_v46  ;;  %v6770_v35 = vor.u32 %v8469_v49, %v6769_v29  ;;  %v7278_v57 = vor.u32 %v8585_v22, %v7275_v41  ;;  %v8690_v46 = vld [vmem:[#allocation11 + $0x82c] sm:$0xf]  ;;  %v8816_v41 = vld [vmem:[#allocation11 + $0xc1c] sm:$0xf]  ;;  %v6687_v7 = vld [vmem:[#allocation11 + $0x9c] sm:$0xf0] }
 0x4c5   : > { %5530 = vmatmul.bf16.gmra.mxu0 %v10390_v60  ;;  %5701 = vmatpush.bf16.msra.mxu2 %v7610_v32  ;;  %v8826_v22 = vld [vmem:[#allocation11 + $0xc68] sm:$0xf0] }
 0x4c6   : > { %v5225_v40 = vpop.f32.mrf.mxu3  ;;  %v5279_v63 = vpop.f32.mrf.mxu2  ;;  %5668 = vmatpush.bf16.msra.mxu0 %v8026_v48  ;;  %v7695_v48 = vld [vmem:[#allocation11 + $0x87c] sm:$0xf0] }
 0x4c7   : > { %v5261_v53 = vpop.f32.mrf.mxu1  ;;  %v7194_v40 = vor.u32 %v8564_v26, %v7191_v50  ;;  %v8753_v63 = vld [vmem:[#allocation11 + $0xa24] sm:$0xf]  ;;  %v7611_v50 = vld [vmem:[#allocation11 + $0x7d4] sm:$0xf0] }
 0x4c8   : > { %5682 = vmatpush.bf16.msra.mxu1 %v7022_v47  ;;  %5648 = vmatpush.bf16.msra.mxu3 %v7522_v55  ;;  %v7947_v47 = vld [vmem:[#allocation11 + $0xa74] sm:$0xf0]  ;;  %v8543_v53 = vld [vmem:[#allocation11 + $0x394] sm:$0xf]  ;;  %v7107_v55 = vld [vmem:[#allocation11 + $0x3e4] sm:$0xf0] }
 0x4c9   : > { %5702 = vmatpush.bf16.msra.mxu2 %v7526_v25  ;;  %v7950_v51 = vor.u32 %v8753_v63, %v7947_v47  ;;  %v3774_v25 = vunpack.c.h.b16 %v2462_v52  ;;  %v7110_v5 = vor.u32 %v8543_v53, %v7107_v55  ;;  %v8669_v26 = vld [vmem:[#allocation11 + $0x784] sm:$0xf]  ;;  %v8113_v47 = vld [vmem:[#allocation11 + $0xb70] sm:$0xf]  ;;  %v8115_v53 = vld [vmem:[#allocation11 + $0xbc4] sm:$0xf0] }
 0x4ca   : > { %v5245_v8 = vpop.f32.mrf.mxu0  ;;  %5548 = vmatmul.bf16.gmra.mxu1 %v10394_v23  ;;  %v7614_v63 = vor.u32 %v8669_v26, %v7611_v50  ;;  %v7029_v50 = vld [vmem:[#allocation11 + $0x2f0] sm:$0xf] }
 0x4cb   : > { %v4215_v14 = vpack.c.b16 %v3774_v25, %v3774_v25  ;;  %v6771_v25 = vld [vmem:[#allocation11 + $0x144] sm:$0xf0] }
 0x4cc   : > { %5683 = vmatpush.bf16.msra.mxu1 %v6938_v62  ;;  %5649 = vmatpush.bf16.msra.mxu3 %v7438_v15  ;;  %v7866_v62 = vor.u32 %v8732_v16, %v7863_v0  ;;  %v7527_v16 = vld [vmem:[#allocation11 + $0x72c] sm:$0xf0] }
 0x4cd   : > { %5703 = vmatpush.bf16.msra.mxu2 %v7442_v18  ;;  %v4699_v18 = vsel %vm583_vm0, %v4214_v3, 0  ;;  %v4702_v19 = vsel %vm583_vm0, %v4215_v14, 0  ;;  %v8784_v3 = vld [vmem:[#allocation11 + $0xb18] sm:$0xf0]  ;;  %v8774_v14 = vld [vmem:[#allocation11 + $0xacc] sm:$0xf] }
 0x4ce   : > { %v5227_v24 = vpop.f32.mrf.mxu3  ;;  %v5281_v45 = vpop.f32.mrf.mxu2 }
 0x4cf   : > { %v5263_v43 = vpop.f32.mrf.mxu1  ;;  %v7782_v45 = vor.u32 %v8711_v33, %v7779_v12  ;;  %v7443_v33 = vld [vmem:[#allocation11 + $0x684] sm:$0xf0] }
 0x4d0   : > { %5684 = vmatpush.bf16.msra.mxu1 %v6854_v30  ;;  %5650 = vmatpush.bf16.msra.mxu3 %v7354_v42  ;;  %v8281_v30 = vld [vmem:[#allocation11 + $0xcc0] sm:$0xf]  ;;  %v8283_v43 = vld [vmem:[#allocation11 + $0xd14] sm:$0xf0] }
 0x4d1   : > { %5704 = vmatpush.bf16.msra.mxu2 %v7358_v21  ;;  %v8282_v34 = vor.u32 %v8847_v36, %v8281_v30  ;;  %v8286_v42 = vor.u32 %v8837_v39, %v8283_v43  ;;  %v6939_v21 = vld [vmem:[#allocation11 + $0x294] sm:$0xf0]  ;;  %v7953_v36 = vld [vmem:[#allocation11 + $0xa28] sm:$0xf]  ;;  %v8764_v39 = vld [vmem:[#allocation11 + $0xa78] sm:$0xf0] }
 0x4d2   : > { %v5310_v20 = vpop.f32.mrf.mxu0  ;;  %v6942_v10 = vor.u32 %v8501_v38, %v6939_v21  ;;  %v8606_v43 = vld [vmem:[#allocation11 + $0x58c] sm:$0xf] }
 0x4d3   : > { %5579 = vmatmul.bf16.vlgmr.msrb.gmra.mxu3 %v10379_v27  ;;  %5633 = vmatmul.bf16.vlgmr.msrb.gmra.mxu2 %v10379_v27  ;;  %v7698_v20 = vor.u32 %v8690_v46, %v7695_v48  ;;  %v7197_v46 = vld [vmem:[#allocation11 + $0x440] sm:$0xf]  ;;  %v8575_v48 = vld [vmem:[#allocation11 + $0x490] sm:$0xf0] }
 0x4d4   : > { %5685 = vmatpush.bf16.msra.mxu1 %v6770_v35  ;;  %5718 = vmatpush.bf16.msrb.mxu3 %v4699_v18  ;;  %v8197_v35 = vld [vmem:[#allocation11 + $0xc18] sm:$0xf] }
 0x4d5   : > { %5597 = vmatmul.bf16.vlgmr.msrb.gmra.mxu0 %v10381_v2  ;;  %5772 = vmatpush.bf16.msrb.mxu2 %v4702_v19  ;;  %v8198_v11 = vor.u32 %v8826_v22, %v8197_v35  ;;  %v8438_v19 = vld [vmem:[#allocation11 + $0x4c] sm:$0xf]  ;;  %v8743_v35 = vld [vmem:[#allocation11 + $0x9d0] sm:$0xf0] }
 0x4d6   : > { %v5292_v32 = vpop.f32.mrf.mxu3  ;;  %v5346_v1 = vpop.f32.mrf.mxu2  ;;  %5733 = vmatpush.bf16.msrb.mxu0 %v7278_v57  ;;  %v6690_v6 = vor.u32 %v8438_v19, %v6687_v7 }
 0x4d7   : > { %v5328_v28 = vpop.f32.mrf.mxu1  ;;  %v8202_v32 = vor.u32 %v8816_v41, %v8199_v54  ;;  %v8480_v1 = vld [vmem:[#allocation11 + $0x19c] sm:$0xf] }
 0x4d8   : > { %5686 = vmatpush.bf16.msra.mxu1 %v6686_v31  ;;  %5719 = vmatpush.bf16.msrb.mxu3 %v8282_v34  ;;  %v6855_v31 = vld [vmem:[#allocation11 + $0x1ec] sm:$0xf0]  ;;  %v7954_v34 = vor.u32 %v8764_v39, %v7953_v36  ;;  %v8470_v36 = vld [vmem:[#allocation11 + $0x148] sm:$0xf0] }
 0x4d9   : > { %5773 = vmatpush.bf16.msrb.mxu2 %v8286_v42  ;;  %v6858_v28 = vor.u32 %v8480_v1, %v6855_v31  ;;  %v7359_v42 = vld [vmem:[#allocation11 + $0x5dc] sm:$0xf0]  ;;  %v8722_v1 = vld [vmem:[#allocation11 + $0x928] sm:$0xf0] }
 0x4da   : > { %v5312_v44 = vpop.f32.mrf.mxu0  ;;  %8323 = vmatmul.msk.bf16.vlgmr.msrb.gmra.mxu1 %vm4637_vm5, %v10386_v17  ;;  %5734 = vmatpush.bf16.msrb.mxu0 %v7194_v40 }
 0x4dc   : > { %5751 = vmatpush.bf16.msrb.mxu1 %v7950_v51  ;;  %5720 = vmatpush.bf16.msrb.mxu3 %v8198_v11  ;;  %v8795_v51 = vld [vmem:[#allocation11 + $0xb74] sm:$0xf]  ;;  %v8554_v11 = vld [vmem:[#allocation11 + $0x3e8] sm:$0xf0] }
 0x4dd   : > { %5774 = vmatpush.bf16.msrb.mxu2 %v8202_v32  ;;  %v8118_v55 = vor.u32 %v8795_v51, %v8115_v53  ;;  %v7785_v32 = vld [vmem:[#allocation11 + $0x8d8] sm:$0xf]  ;;  %v7701_v51 = vld [vmem:[#allocation11 + $0x830] sm:$0xf] }
 0x4de   : > { %v5294_v61 = vpop.f32.mrf.mxu3  ;;  %v5348_v8 = vpop.f32.mrf.mxu2  ;;  %5735 = vmatpush.bf16.msrb.mxu0 %v7110_v5  ;;  %v8648_v5 = vld [vmem:[#allocation11 + $0x6dc] sm:$0xf]  ;;  %v7786_v31 = vor.u32 %v8722_v1, %v7785_v32 }
 0x4df   : > { %v5295_v37 = vadd.f32 %v5294_v61, %v5277_v56  ;;  %v5330_v15 = vpop.f32.mrf.mxu1  ;;  %v6774_v56 = vor.u32 %v8459_v58, %v6771_v25  ;;  %v6945_v25 = vld [vmem:[#allocation11 + $0x248] sm:$0xf] }
 0x4e0   : > { %v5331_v9 = vadd.f32 %v5330_v15, %v5312_v44  ;;  %5752 = vmatpush.bf16.msrb.mxu1 %v7866_v62  ;;  %v8805_v44 = vld [vmem:[#allocation11 + $0xbc0] sm:$0xf0]  ;;  %v8029_v62 = vld [vmem:[#allocation11 + $0xac8] sm:$0xf] }
 0x4e1   : > { %5872 = vst [vmem:[#allocation4 + $0xf8] sm:$0xff] %v5295_v37  ;;  %v8114_v52 = vor.u32 %v8805_v44, %v8113_v47  ;;  %5775 = vmatpush.bf16.msrb.mxu2 %v8118_v55  ;;  %v8030_v15 = vor.u32 %v8784_v3, %v8029_v62 }
 0x4e2   : > { %v5349_v4 = vadd.f32 %v5348_v8, %v5331_v9  ;;  %v5315_v24 = vpop.f32.mrf.mxu0  ;;  %5736 = vmatpush.bf16.msrb.mxu0 %v7026_v13  ;;  %v7530_v8 = vor.u32 %v8648_v5, %v7527_v16  ;;  %v8031_v9 = vld [vmem:[#allocation11 + $0xb1c] sm:$0xf0]  ;;  %v8627_v13 = vld [vmem:[#allocation11 + $0x634] sm:$0xf]  ;;  %v2463_v5 = vld [vmem:[#allocation11 + $0xd70] sm:$0xf] }
 0x4e3   : > { %5584 = vmatmul.bf16.gmra.mxu3 %v10390_v60  ;;  %5638 = vmatmul.bf16.gmra.mxu2 %v10390_v60  ;;  %v8034_v18 = vor.u32 %v8774_v14, %v8031_v9  ;;  %v7281_v24 = vld [vmem:[#allocation11 + $0x4e8] sm:$0xf]  ;;  %v8491_v9 = vld [vmem:[#allocation11 + $0x1f0] sm:$0xf0] }
 0x4e4   : > { %5873 = vst [vmem:[#allocation4 + $0x100] sm:$0xff] %v5349_v4  ;;  %5753 = vmatpush.bf16.msrb.mxu1 %v7782_v45  ;;  %5721 = vmatpush.bf16.msrb.mxu3 %v8114_v52  ;;  %v7446_v4 = vor.u32 %v8627_v13, %v7443_v33  ;;  %v8596_v45 = vld [vmem:[#allocation11 + $0x538] sm:$0xf0]  ;;  %v8701_v52 = vld [vmem:[#allocation11 + $0x880] sm:$0xf0] }
 0x4e5   : > { %5602 = vmatmul.bf16.gmra.mxu0 %v10394_v23  ;;  %5776 = vmatpush.bf16.msrb.mxu2 %v8034_v18  ;;  %v7282_v30 = vor.u32 %v8596_v45, %v7281_v24  ;;  %v7702_v55 = vor.u32 %v8701_v52, %v7701_v51  ;;  %v8659_v13 = vld [vmem:[#allocation11 + $0x730] sm:$0xf0] }
 0x4e6   : > { %v5297_v29 = vpop.f32.mrf.mxu3  ;;  %v5351_v49 = vpop.f32.mrf.mxu2  ;;  %5737 = vmatpush.bf16.msrb.mxu0 %v6942_v10  ;;  %v7362_v10 = vor.u32 %v8606_v43, %v7359_v42  ;;  %v8638_v43 = vld [vmem:[#allocation11 + $0x688] sm:$0xf0] }
 0x4e7   : > { %v5333_v57 = vpop.f32.mrf.mxu1  ;;  %v7198_v49 = vor.u32 %v8575_v48, %v7197_v46 }
 0x4e8   : > { %5754 = vmatpush.bf16.msrb.mxu1 %v7698_v20  ;;  %5722 = vmatpush.bf16.msrb.mxu3 %v8030_v15  ;;  %v7869_v20 = vld [vmem:[#allocation11 + $0x980] sm:$0xf]  ;;  %v7113_v57 = vld [vmem:[#allocation11 + $0x398] sm:$0xf] }
 0x4e9   : > { %v7870_v22 = vor.u32 %v8743_v35, %v7869_v20  ;;  %v7114_v54 = vor.u32 %v8554_v11, %v7113_v57  ;;  %v6861_v15 = vld [vmem:[#allocation11 + $0x1a0] sm:$0xf]  ;;  %v8121_v11 = vld [vmem:[#allocation11 + $0xb78] sm:$0xf] }
 0x4ea   : > { %v5317_v40 = vpop.f32.mrf.mxu0  ;;  %8324 = vmatmul.msk.bf16.gmra.mxu1 %vm4637_vm5, %v10399_v59  ;;  %5738 = vmatpush.bf16.msrb.mxu0 %v6858_v28  ;;  %v6862_v7 = vor.u32 %v8491_v9, %v6861_v15 }
 0x4eb   : > { %v8533_v40 = vld [vmem:[#allocation11 + $0x340] sm:$0xf0] }
 0x4ec   : > { %5755 = vmatpush.bf16.msrb.mxu1 %v7614_v63  ;;  %v7030_v44 = vor.u32 %v8533_v40, %v7029_v50 }
 0x4ee   : > { %v5299_v0 = vpop.f32.mrf.mxu3  ;;  %v5353_v61 = vpop.f32.mrf.mxu2  ;;  %5739 = vmatpush.bf16.msrb.mxu0 %v6774_v56  ;;  %v8512_v56 = vld [vmem:[#allocation11 + $0x298] sm:$0xf0] }
 0x4ef   : > { %v5335_v37 = vpop.f32.mrf.mxu1  ;;  %v6946_v16 = vor.u32 %v8512_v56, %v6945_v25  ;;  %v3775_v0 = vunpack.c.l.b16 %v2463_v5  ;;  %v7617_v61 = vld [vmem:[#allocation11 + $0x788] sm:$0xf] }
 0x4f0   : > { %5756 = vmatpush.bf16.msrb.mxu1 %v7530_v8  ;;  %v8680_v8 = vld [vmem:[#allocation11 + $0x7d8] sm:$0xf0] }
 0x4f1   : > { %v7618_v62 = vor.u32 %v8680_v8, %v7617_v61  ;;  %v4216_v3 = vpack.c.b16 %v3775_v0, %v3775_v0 }
 0x4f2   : > { %v5382_v12 = vpop.f32.mrf.mxu0  ;;  %5740 = vmatpush.bf16.msrb.mxu0 %v6690_v6  ;;  %v7533_v6 = vld [vmem:[#allocation11 + $0x6e0] sm:$0xf] }
 0x4f3   : > { %5651 = vmatmul.bf16.vlgmr.msra.gmra.mxu3 %v10381_v2  ;;  %5705 = vmatmul.bf16.vlgmr.msra.gmra.mxu2 %v10381_v2  ;;  %v4705_v19 = vsel %vm583_vm0, %v4216_v3, 0  ;;  %v7534_v33 = vor.u32 %v8659_v13, %v7533_v6  ;;  %v8289_v12 = vld [vmem:[#allocation11 + $0xcc8] sm:$0xf]  ;;  %vm5985_vm0 = vcmask 24576  }
 0x4f4   : > { %5757 = vmatpush.bf16.msrb.mxu1 %v7446_v4  ;;  %5787 = vmatpush.bf16.msra.mxu3 %v7282_v30  ;;  %v8848_v4 = vld [vmem:[#allocation11 + $0xd18] sm:$0xf0]  ;;  %v6777_v30 = vld [vmem:[#allocation11 + $0xf8] sm:$0xf] }
 0x4f5   : > { %8325 = vmatmul.msk.bf16.vlgmr.msra.gmra.mxu0 %vm4637_vm5, %v10386_v17  ;;  %v8290_v45 = vor.u32 %v8848_v4, %v8289_v12  ;;  %v6778_v39 = vor.u32 %v8470_v36, %v6777_v30 }
 0x4f6   : > { %v5364_v38 = vpop.f32.mrf.mxu3  ;;  %v5418_v21 = vpop.f32.mrf.mxu2  ;;  %5805 = vmatpush.bf16.msra.mxu0 %v7954_v34  ;;  %v7449_v34 = vld [vmem:[#allocation11 + $0x638] sm:$0xf] }
 0x4f7   : > { %v5400_v29 = vpop.f32.mrf.mxu1  ;;  %v7450_v42 = vor.u32 %v8638_v43, %v7449_v34  ;;  %v8205_v38 = vld [vmem:[#allocation11 + $0xc20] sm:$0xf]  ;;  %v8827_v21 = vld [vmem:[#allocation11 + $0xc70] sm:$0xf0] }
 0x4f8   : > { %5758 = vmatpush.bf16.msrb.mxu1 %v7362_v10  ;;  %5788 = vmatpush.bf16.msra.mxu3 %v7198_v49  ;;  %v8206_v48 = vor.u32 %v8827_v21, %v8205_v38  ;;  %v6693_v29 = vld [vmem:[#allocation11 + $0x50] sm:$0xf]  ;;  %v8449_v49 = vld [vmem:[#allocation11 + $0xa0] sm:$0xf0] }
 0x4f9   : > { %v6694_v35 = vor.u32 %v8449_v49, %v6693_v29 }
 0x4fa   : > { %v5384_v41 = vpop.f32.mrf.mxu0  ;;  %5687 = vmatmul.bf16.vlgmr.msra.gmra.mxu1 %v10379_v27  ;;  %5806 = vmatpush.bf16.msra.mxu0 %v7870_v22  ;;  %v7365_v22 = vld [vmem:[#allocation11 + $0x590] sm:$0xf] }
 0x4fc   : > { %5789 = vmatpush.bf16.msra.mxu3 %v7114_v54  ;;  %5826 = vmatpush.bf16.msra.mxu1 %v4705_v19  ;;  %v8806_v54 = vld [vmem:[#allocation11 + $0xbc8] sm:$0xf0] }
 0x4fd   : > { %v8122_v1 = vor.u32 %v8806_v54, %v8121_v11 }
 0x4fe   : > { %v5366_v28 = vpop.f32.mrf.mxu3  ;;  %v10595_v26 = vpop.f32.mrf.mxu2  ;;  %5807 = vmatpush.bf16.msra.mxu0 %v7786_v31  ;;  %v8037_v31 = vld [vmem:[#allocation11 + $0xad0] sm:$0xf] }
 0x4ff   : > { %v5385_v63 = vadd.f32 %v5384_v41, %v5366_v28  ;;  %v5402_v47 = vpop.f32.mrf.mxu1  ;;  %v8617_v41 = vld [vmem:[#allocation11 + $0x5e0] sm:$0xf0] }
 0x500   : > { %5790 = vmatpush.bf16.msra.mxu3 %v7030_v44  ;;  %5827 = vmatpush.bf16.msra.mxu1 %v8290_v45  ;;  %v7366_v57 = vor.u32 %v8617_v41, %v7365_v22  ;;  %v8785_v28 = vld [vmem:[#allocation11 + $0xb20] sm:$0xf0] }
 0x501   : > { %v5403_v53 = vadd.f32 %v5402_v47, %v5385_v63  ;;  %v8038_v63 = vor.u32 %v8785_v28, %v8037_v31 }
 0x502   : > { %v5387_v58 = vpop.f32.mrf.mxu0  ;;  %5808 = vmatpush.bf16.msra.mxu0 %v7702_v55 }
 0x503   : > { %5874 = vst [vmem:[#allocation4 + $0x108] sm:$0xff] %v5403_v53  ;;  %5656 = vmatmul.bf16.gmra.mxu3 %v10394_v23  ;;  %5710 = vmatmul.bf16.gmra.mxu2 %v10394_v23 }
 0x504   : > { %5791 = vmatpush.bf16.msra.mxu3 %v6946_v16  ;;  %5828 = vmatpush.bf16.msra.mxu1 %v8206_v48 }
 0x505   : > { %8326 = vmatmul.msk.bf16.gmra.mxu0 %vm4637_vm5, %v10399_v59 }
 0x506   : > { %v5369_v14 = vpop.f32.mrf.mxu3  ;;  %v5423_v37 = vpop.f32.mrf.mxu2  ;;  %5809 = vmatpush.bf16.msra.mxu0 %v7618_v62 }
 0x507   : > { %v5405_v18 = vpop.f32.mrf.mxu1 }
 0x508   : > { %5792 = vmatpush.bf16.msra.mxu3 %v6862_v7  ;;  %5829 = vmatpush.bf16.msra.mxu1 %v8122_v1 }
 0x50a   : > { %v5389_v24 = vpop.f32.mrf.mxu0  ;;  %5692 = vmatmul.bf16.gmra.mxu1 %v10390_v60  ;;  %5810 = vmatpush.bf16.msra.mxu0 %v7534_v33 }
 0x50c   : > { %5793 = vmatpush.bf16.msra.mxu3 %v6778_v39  ;;  %5830 = vmatpush.bf16.msra.mxu1 %v8038_v63 }
 0x50e   : > { %v5371_v10 = vpop.f32.mrf.mxu3  ;;  %v5425_v46 = vpop.f32.mrf.mxu2  ;;  %5811 = vmatpush.bf16.msra.mxu0 %v7450_v42 }
 0x50f   : > { %v5407_v20 = vpop.f32.mrf.mxu1 }
 0x510   : > { %5794 = vmatpush.bf16.msra.mxu3 %v6694_v35 }
 0x512   : > { %v5454_v32 = vpop.f32.mrf.mxu0  ;;  %5812 = vmatpush.bf16.msra.mxu0 %v7366_v57 }
 0x513   : > { %8327 = vmatmul.msk.bf16.vlgmr.msrb.gmra.mxu3 %vm4637_vm5, %v10386_v17  ;;  %8329 = vmatmul.msk.bf16.vlgmr.msrb.gmra.mxu2 %vm4637_vm5, %v10386_v17 }
 0x515   : > { %5741 = vmatmul.bf16.vlgmr.msrb.gmra.mxu0 %v10379_v27 }
 0x516   : > { %v5436_v50 = vpop.f32.mrf.mxu3  ;;  %v5490_v40 = vpop.f32.mrf.mxu2 }
 0x517   : > { %v5472_v47 = vpop.f32.mrf.mxu1 }
 0x51a   : > { %v5456_v44 = vpop.f32.mrf.mxu0  ;;  %5759 = vmatmul.bf16.vlgmr.msrb.gmra.mxu1 %v10381_v2 }
 0x51e   : > { %v5438_v51 = vpop.f32.mrf.mxu3  ;;  %v5492_v52 = vpop.f32.mrf.mxu2 }
 0x51f   : > { %v5439_v53 = vadd.f32 %v5438_v51, %v10595_v26  ;;  %v5474_v55 = vpop.f32.mrf.mxu1 }
 0x520   : > { %v5493_v9 = vadd.f32 %v5492_v52, %v5474_v55 }
 0x521   : > { %v5457_v58 = vadd.f32 %v5456_v44, %v5439_v53 }
 0x522   : > { %v5459_v25 = vpop.f32.mrf.mxu0 }
 0x523   : > { %5875 = vst [vmem:[#allocation4 + $0x110] sm:$0xff] %v5457_v58  ;;  %8328 = vmatmul.msk.bf16.gmra.mxu3 %vm4637_vm5, %v10399_v59  ;;  %8330 = vmatmul.msk.bf16.gmra.mxu2 %vm4637_vm5, %v10399_v59 }
 0x525   : > { %5746 = vmatmul.bf16.gmra.mxu0 %v10390_v60 }
 0x526   : > { %v5441_v56 = vpop.f32.mrf.mxu3  ;;  %v5495_v5 = vpop.f32.mrf.mxu2 }
 0x527   : > { %v5477_v16 = vpop.f32.mrf.mxu1 }
 0x52a   : > { %v5461_v0 = vpop.f32.mrf.mxu0  ;;  %5764 = vmatmul.bf16.gmra.mxu1 %v10394_v23 }
 0x52e   : > { %v5443_v61 = vpop.f32.mrf.mxu3  ;;  %v5497_v26 = vpop.f32.mrf.mxu2 }
 0x52f   : > { %v5479_v8 = vpop.f32.mrf.mxu1  ;;  %v5963_v61 = vld [vmem:[%s10715_s8 + $0x78] sm:$0xff] }
 0x530   : > { %5965 = vmatpush.msra.mxu2 %v5963_v61 }
 0x532   : > { %v5526_v62 = vpop.f32.mrf.mxu0 }
 0x533   : > { %5795 = vmatmul.bf16.vlgmr.msra.gmra.mxu3 %v10379_v27  ;;  %v5962_v62 = vld [vmem:[%s10715_s8 + $0x70] sm:$0xff] }
 0x534   : > { %5966 = vmatpush.msra.mxu2 %v5962_v62  ;;  %v5904_v62 = vld [vmem:[#allocation4] ss:$0 sm:$0xff] }
 0x535   : > { %5813 = vmatmul.bf16.vlgmr.msra.gmra.mxu0 %v10381_v2 }
 0x536   : > { %v5508_v3 = vpop.f32.mrf.mxu3  ;;  %v5562_v14 = vpop.f32.mrf.mxu2 }
 0x537   : > { %v5544_v37 = vpop.f32.mrf.mxu1  ;;  %v5961_v14 = vld [vmem:[%s10715_s8 + $0x68] sm:$0xff] }
 0x538   : > { %5967 = vmatpush.msra.mxu2 %v5961_v14 }
 0x53a   : > { %v5528_v15 = vpop.f32.mrf.mxu0  ;;  %8331 = vmatmul.msk.bf16.vlgmr.msra.gmra.mxu1 %vm4637_vm5, %v10386_v17 }
 0x53e   : > { %v5510_v18 = vpop.f32.mrf.mxu3  ;;  %v5564_v19 = vpop.f32.mrf.mxu2 }
 0x53f   : > { %v5511_v7 = vadd.f32 %v5510_v18, %v5493_v9  ;;  %v5546_v6 = vpop.f32.mrf.mxu1  ;;  %v5959_v9 = vld [vmem:[%s10715_s8 + $0x58] sm:$0xff] }
 0x540   : > { %v5547_v13 = vadd.f32 %v5546_v6, %v5528_v15  ;;  %v5960_v15 = vld [vmem:[%s10715_s8 + $0x60] sm:$0xff]  ;;  %v5958_v6 = vld [vmem:[%s10715_s8 + $0x50] sm:$0xff] }
 0x541   : > { %5876 = vst [vmem:[#allocation4 + $0x118] sm:$0xff] %v5511_v7  ;;  %5968 = vmatpush.msra.mxu2 %v5960_v15 }
 0x542   : > { %v5565_v33 = vadd.f32 %v5564_v19, %v5547_v13  ;;  %v5531_v12 = vpop.f32.mrf.mxu0 }
 0x543   : > { %5800 = vmatmul.bf16.gmra.mxu3 %v10390_v60  ;;  %5969 = vmatpush.msra.mxu2 %v5959_v9 }
 0x544   : > { %5877 = vst [vmem:[#allocation4 + $0x120] sm:$0xff] %v5565_v33 }
 0x545   : > { %5818 = vmatmul.bf16.gmra.mxu0 %v10394_v23  ;;  %5970 = vmatpush.msra.mxu2 %v5958_v6 }
 0x546   : > { %v5513_v27 = vpop.f32.mrf.mxu3  ;;  %v5567_v2 = vpop.f32.mrf.mxu2 }
 0x547   : > { %v5549_v4 = vpop.f32.mrf.mxu1  ;;  %v5957_v27 = vld [vmem:[%s10715_s8 + $0x48] sm:$0xff] }
 0x548   : > { %5971 = vmatpush.msra.mxu2 %v5957_v27 }
 0x54a   : > { %v5533_v24 = vpop.f32.mrf.mxu0  ;;  %8332 = vmatmul.msk.bf16.gmra.mxu1 %vm4637_vm5, %v10399_v59 }
 0x54b   : > { %v5956_v24 = vld [vmem:[%s10715_s8 + $0x40] sm:$0xff] }
 0x54c   : > { %5972 = vmatpush.msra.mxu2 %v5956_v24 }
 0x54e   : > { %v5515_v17 = vpop.f32.mrf.mxu3  ;;  %v5569_v45 = vpop.f32.mrf.mxu2 }
 0x54f   : > { %v5551_v30 = vpop.f32.mrf.mxu1  ;;  %v5955_v17 = vld [vmem:[%s10715_s8 + $0x38] sm:$0xff] }
 0x550   : > { %5973 = vmatpush.msra.mxu2 %v5955_v17 }
 0x552   : > { %v5598_v36 = vpop.f32.mrf.mxu0 }
 0x553   : > { %v5954_v36 = vld [vmem:[%s10715_s8 + $0x30] sm:$0xff] }
 0x554   : > { %5974 = vmatpush.msra.mxu2 %v5954_v36 }
 0x556   : > { %v5580_v39 = vpop.f32.mrf.mxu3  ;;  %v5634_v34 = vpop.f32.mrf.mxu2 }
 0x557   : > { %v5616_v43 = vpop.f32.mrf.mxu1  ;;  %v5953_v34 = vld [vmem:[%s10715_s8 + $0x28] sm:$0xff] }
 0x558   : > { %v5952_v43 = vld [vmem:[%s10715_s8 + $0x20] sm:$0xff]  ;;  %5975 = vmatpush.msra.mxu2 %v5953_v34 }
 0x559   : > { %v5964_v34 = vld [vmem:[#allocation14] sm:$0x1] }
 0x55a   : > { %v5600_v42 = vpop.f32.mrf.mxu0  ;;  %5976 = vmatpush.msra.mxu2 %v5952_v43 }
 0x55e   : > { %v5582_v38 = vpop.f32.mrf.mxu3  ;;  %v5636_v60 = vpop.f32.mrf.mxu2 }
 0x55f   : > { %v5618_v21 = vpop.f32.mrf.mxu1  ;;  %v5951_v38 = vld [vmem:[%s10715_s8 + $0x18] sm:$0xff]  ;;  %v5950_v60 = vld [vmem:[%s10715_s8 + $0x10] sm:$0xff] }
 0x560   : > { %5977 = vmatpush.msra.mxu2 %v5951_v38 }
 0x562   : > { %v5603_v10 = vpop.f32.mrf.mxu0  ;;  %5978 = vmatpush.msra.mxu2 %v5950_v60 }
 0x566   : > { %v5585_v23 = vpop.f32.mrf.mxu3  ;;  %v5639_v46 = vpop.f32.mrf.mxu2 }
 0x567   : > { %v5604_v48 = vadd.f32 %v5603_v10, %v5585_v23  ;;  %v5621_v29 = vpop.f32.mrf.mxu1  ;;  %v5949_v10 = vld [vmem:[%s10715_s8 + $0x8] sm:$0xff] }
 0x568   : > { %5979 = vmatpush.msra.mxu2 %v5949_v10 }
 0x569   : > { %v5622_v49 = vadd.f32 %v5621_v29, %v5604_v48 }
 0x56a   : > { %v5605_v20 = vpop.f32.mrf.mxu0 }
 0x56b   : > { %5899 = vst [vmem:[#allocation4 + $0x1d0] sm:$0x1f] %v5622_v49 }
 0x56e   : > { %v5587_v59 = vpop.f32.mrf.mxu3  ;;  %v5641_v35 = vpop.f32.mrf.mxu2 }
 0x56f   : > { %v5623_v22 = vpop.f32.mrf.mxu1  ;;  %v5919_v59 = vld [vmem:[#allocation4 + $0x127] ss:$0 sm:$0xff]  ;;  %v5911_v35 = vld [vmem:[#allocation4 + $0x3f] ss:$0 sm:$0xff] }
 0x572   : > { %v5670_v41 = vpop.f32.mrf.mxu0 }
 0x573   : > { %v5915_v41 = vld [vmem:[#allocation4 + $0x103] ss:$0 sm:$0xff] }
 0x576   : > { %v5652_v57 = vpop.f32.mrf.mxu3  ;;  %v5706_v11 = vpop.f32.mrf.mxu2 }
 0x577   : > { %v5688_v54 = vpop.f32.mrf.mxu1  ;;  %v5917_v57 = vld [vmem:[#allocation4 + $0x115] ss:$0 sm:$0xff]  ;;  %v5918_v11 = vld [vmem:[#allocation4 + $0x11e] ss:$0 sm:$0xff] }
 0x57a   : > { %v5672_v32 = vpop.f32.mrf.mxu0 }
 0x57e   : > { %v5654_v1 = vpop.f32.mrf.mxu3  ;;  %v5708_v31 = vpop.f32.mrf.mxu2 }
 0x57f   : > { %v5690_v28 = vpop.f32.mrf.mxu1  ;;  %v5907_v1 = vld [vmem:[#allocation4 + $0x1b] ss:$0 sm:$0xff]  ;;  %v5909_v31 = vld [vmem:[#allocation4 + $0x2d] ss:$0 sm:$0xff] }
 0x580   : > { %v5910_v28 = vld [vmem:[#allocation4 + $0x36] ss:$0 sm:$0xff] }
 0x582   : > { %v5675_v50 = vpop.f32.mrf.mxu0 }
 0x586   : > { %v5657_v40 = vpop.f32.mrf.mxu3  ;;  %v5711_v63 = vpop.f32.mrf.mxu2 }
 0x587   : > { %v5658_v47 = vadd.f32 %v5657_v40, %v5639_v46  ;;  %v5693_v44 = vpop.f32.mrf.mxu1  ;;  %v5948_v46 = vld [vmem:[%s10715_s8] sm:$0xff]  ;;  %v5913_v40 = vld [vmem:[#allocation4 + $0xf1] ss:$0 sm:$0xff] }
 0x588   : > { %v5712_v18 = vadd.f32 %v5711_v63, %v5693_v44  ;;  %5980 = vmatpush.msra.mxu2 %v5948_v46  ;;  %v5914_v63 = vld [vmem:[#allocation4 + $0xfa] ss:$0 sm:$0xff] }
 0x589   : > { %v5676_v51 = vadd.f32 %v5675_v50, %v5658_v47  ;;  %v5932_v50 = vadd.f32 %v5919_v59, %v5918_v11  ;;  %v5916_v47 = vld [vmem:[#allocation4 + $0x10c] ss:$0 sm:$0xff] }
 0x58a   : > { %v5677_v52 = vpop.f32.mrf.mxu0 }
 0x58b   : > { %5900 = vst [vmem:[#allocation4 + $0x1d8] sm:$0x1f] %v5676_v51  ;;  %v5905_v51 = vld [vmem:[#allocation4 + $0x9] ss:$0 sm:$0xff]  ;;  %v5906_v52 = vld [vmem:[#allocation4 + $0x12] ss:$0 sm:$0xff] }
 0x58e   : > { %v5659_v53 = vpop.f32.mrf.mxu3  ;;  %v5713_v55 = vpop.f32.mrf.mxu2 }
 0x58f   : > { %v5695_v58 = vpop.f32.mrf.mxu1  ;;  %v5928_v53 = vadd.f32 %v5911_v35, %v5910_v28  ;;  %v5930_v55 = vadd.f32 %v5915_v41, %v5914_v63 }
 0x590   : > { %v5931_v58 = vadd.f32 %v5917_v57, %v5916_v47 }
 0x592   : > { %v5742_v25 = vpop.f32.mrf.mxu0 }
 0x596   : > { %v5724_v56 = vpop.f32.mrf.mxu3  ;;  %v5778_v5 = vpop.f32.mrf.mxu2 }
 0x597   : > { %v5760_v16 = vpop.f32.mrf.mxu1  ;;  %v5908_v56 = vld [vmem:[#allocation4 + $0x24] ss:$0 sm:$0xff]  ;;  %v5912_v5 = vld [vmem:[#allocation4 + $0xe8] ss:$0 sm:$0xff] }
 0x598   : > { %v5927_v61 = vadd.f32 %v5909_v31, %v5908_v56 }
 0x59a   : > { %v5744_v0 = vpop.f32.mrf.mxu0  ;;  %v5936_v9 = vadd.f32 %v5928_v53, %v5927_v61 }
 0x59b   : > { %v5926_v0 = vadd.f32 %v5907_v1, %v5906_v52 }
 0x59e   : > { %v5726_v26 = vpop.f32.mrf.mxu3  ;;  %v5780_v8 = vpop.f32.mrf.mxu2 }
 0x59f   : > { %v5762_v3 = vpop.f32.mrf.mxu1  ;;  %v5929_v26 = vadd.f32 %v5913_v40, %v5912_v5  ;;  %v5938_v8 = vadd.f32 %v5932_v50, %v5931_v58 }
 0x5a0   : > { %v5921_v3 = vld [vmem:[#allocation4 + $0x1d9] ss:$0 sm:$0xff] }
 0x5a2   : > { %v5747_v37 = vpop.f32.mrf.mxu0 }
 0x5a6   : > { %v5729_v19 = vpop.f32.mrf.mxu3  ;;  %v5783_v7 = vpop.f32.mrf.mxu2 }
 0x5a7   : > { %v5730_v13 = vadd.f32 %v5729_v19, %v5712_v18  ;;  %v5765_v33 = vpop.f32.mrf.mxu1  ;;  %v5937_v18 = vadd.f32 %v5930_v55, %v5929_v26 }
 0x5a8   : > { %v5766_v12 = vadd.f32 %v5765_v33, %v5747_v37  ;;  %v5925_v37 = vadd.f32 %v5905_v51, %v5904_v62 }
 0x5a9   : > { %5901 = vst [vmem:[#allocation4 + $0x1e0] sm:$0x1f] %v5730_v13 }
 0x5aa   : > { %v5784_v2 = vadd.f32 %v5783_v7, %v5766_v12  ;;  %v5749_v4 = vpop.f32.mrf.mxu0  ;;  %v5920_v7 = vld [vmem:[#allocation4 + $0x1d0] ss:$0 sm:$0xff]  ;;  %v5935_v33 = vadd.f32 %v5926_v0, %v5925_v37  ;;  %v5941_v12 = vadd.f32 %v5938_v8, %v5937_v18 }
 0x5ab   : > { %v5933_v13 = vadd.f32 %v5921_v3, %v5920_v7 }
 0x5ac   : > { %5902 = vst [vmem:[#allocation4 + $0x1e8] sm:$0x1f] %v5784_v2  ;;  %v5940_v2 = vadd.f32 %v5936_v9, %v5935_v33 }
 0x5ae   : > { %v5731_v45 = vpop.f32.mrf.mxu3  ;;  %v5785_v30 = vpop.f32.mrf.mxu2  ;;  %v5943_v17 = vadd.f32 %v5941_v12, %v5940_v2 }
 0x5af   : > { %v5767_v39 = vpop.f32.mrf.mxu1  ;;  %v5945_v45 = vld [vmem:[#allocation13] sm:$0x1] }
 0x5b0   : > { %v5922_v14 = vld [vmem:[#allocation4 + $0x1e2] ss:$0 sm:$0xff] }
 0x5b2   : > { %v5814_v42 = vpop.f32.mrf.mxu0 }
 0x5b3   : > { %v5923_v16 = vld [vmem:[#allocation4 + $0x1eb] ss:$0 sm:$0xff] }
 0x5b4   : > { %v5934_v15 = vadd.f32 %v5923_v16, %v5922_v14 }
 0x5b6   : > { %v5796_v21 = vpop.f32.mrf.mxu3  ;;  %v5939_v27 = vadd.f32 %v5934_v15, %v5933_v13 }
 0x5b7   : > { %v5832_v23 = vpop.f32.mrf.mxu1 }
 0x5ba   : > { %v5816_v48 = vpop.f32.mrf.mxu0 }
 0x5be   : > { %v5798_v29 = vpop.f32.mrf.mxu3 }
 0x5bf   : > { %v5834_v49 = vpop.f32.mrf.mxu1 }
 0x5c2   : > { %v5819_v20 = vpop.f32.mrf.mxu0 }
 0x5c6   : > { %v5801_v22 = vpop.f32.mrf.mxu3 }
 0x5c7   : > { %v5820_v54 = vadd.f32 %v5819_v20, %v5801_v22  ;;  %v5837_v32 = vpop.f32.mrf.mxu1 }
 0x5c9   : > { %v5838_v44 = vadd.f32 %v5837_v32, %v5820_v54 }
 0x5ca   : > { %v5821_v25 = vpop.f32.mrf.mxu0 }
 0x5cb   : > { %5903 = vst [vmem:[#allocation4 + $0x1f0] sm:$0x1f] %v5838_v44 }
 0x5ce   : > { %v5803_v19 = vpop.f32.mrf.mxu3 }
 0x5cf   : > { %v5839_v6 = vpop.f32.mrf.mxu1 }
 0x5d2   : > { %v5924_v4 = vld [vmem:[#allocation4 + $0x1f4] ss:$0 sm:$0xff] }
 0x5d3   : > { %v5942_v24 = vadd.f32 %v5939_v27, %v5924_v4 }
 0x5d5   : > { %v5944_v30 = vadd.f32 %v5943_v17, %v5942_v24 }
 0x5d7   : > { %v5946_v36 = vadd.f32 %v5945_v45, %v5944_v30 }
 0x5d9   : > { %v5947_v39 = vmax.f32 %v5946_v36, 0.0 }
 0x5db   : > { %5981 = vmatmul.f32.vlgmr.msra.gmra.mxu2 %v5947_v39 }
 0x65e   : > { %v5982_v43 = vpop.f32.mrf.mxu2 }
 0x65f   : > { %v5983_v42 = vadd.f32 %v5982_v43, %v5964_v34 }
 0x661   : > { %v5986_v38 = vsel %vm5985_vm0, %v5983_v42, -inf }
 0x662   : > { %5987 = vmax.xlane.f32.xlu0 %v5986_v38 }
 0x6d5   : > { %v5988_v60 = vpop.xlane.xlu0 %5987 }
 0x6d6   : > { %v5989_v21 = vsub.f32 %v5983_v42, %v5988_v60 }
 0x6d8   : > { %v5990_v10 = vmul.f32 1.442695, %v5989_v21 }
 0x6da   : > { %9009 = vpow2.f32 %v5990_v10 }
 0x6e0   : > { %v9010_v23 = vpop.eup %9009 }
 0x6e1   : > { %v5992_v46 = vsel %vm5985_vm0, %v9010_v23, 0.0 }
 0x6e2   : > { %5993 = vadd.xlane.f32.xlu1 %v5992_v46 }
 0x755   : > { %v5994_v48 = vpop.xlane.xlu1 %5993 }
 0x756   : > { %9011 = vlog2.f32 %v5994_v48 }
 0x75c   : > { %v9012_v29 = vpop.eup %9011 }
 0x75d   : > { %v5996_v49 = vmul.f32 0.6931472, %v9012_v29 }
 0x75f   : > { %v5997_v20 = vsub.f32 %v5989_v21, %v5996_v49 }
 0x761   : > { %5998 = vst.msk [vmem:[%s443_s19] sm:$0x1] %vm5985_vm0, %v5997_v20 }
 0x762   : > { %9220 = shalt.err (!%p9217_p8)
}
 0x763   : > { %8882 = dma.vmem_to_hbm [thread:$0]  (%p9378_p5), %s6011_s12, 16, %s6013_s4, %s6000_s30  }
 0x764 PF: > { %p8919_p9 = scmp.ge.s32.totalorder %s9271_s16, 2  ;;  %s6024_s6 = sand.u32 1, %s9259_s13  }
 0x765   : > { %s6025_s18 = scalar_lea.sflag [#allocation7], %s6024_s6 }
 0x766   : > { %p8904_p10 = pnand %p8919_p9, %p9382_p6 }
 0x768   : > { %p8905_p11 = pneg %p8904_p10 }
 0x76a   : > { %9254 = dma.done.wait (%p8905_p11), %s6025_s18, 16  }
 0x76b   : > { %9256 = vsyncadd (%p8905_p11), %s6025_s18, 4294967280  ;;  %s10738_s16 = sld [smem:[#allocation23_spill]]  ;;  %s10741_s13 = smov %s9263_s14 }
 0x76c   : > { %s10739_s26 = sld [smem:[#allocation22_spill]] }
 0x76d   : > { %s10740_s15 = sld [smem:[#allocation24_spill]] }
 0x771   : > { %p24_p12 = scmp.ge.s32.totalorder %s10738_s16, 4  }
 0x772   : > { %s10742_s14 = smov %s10739_s26 }
 0x773   :  { %26 = sbr.rel (!%p24_p12) target bundleno = 10 (0xa), region = 122 }
 0x778   :  { %6030 = vsyncpa [#allocation6], 1 }
 0x779   :  { %6032 = vsyncpa [#allocation6 + $0x1], 1 }
 0x77a   :  { %6033 = vsyncpa [#allocation9], 1 }
 0x77b   :  { %6034 = vsyncpa [#allocation12], 1 }
 0x77c   :  { %6035 = vsyncpa [#allocation15], 1 }
 0x77d   :  { %6036 = vsyncpa [#allocation7], 1 }
 0x77e   :  { %6038 = vsyncpa [#allocation7 + $0x1], 1 }

</bundles_post_ra>
